<compile_context>
chip_gen: v7x
topology: tpu7x:2x2x1
jax: 0.10.0
libtpu: 0.0.40
codegen_flags: <defaults>
</compile_context>

<pallas_src>
import math

import numpy as np
import jax
import jax.numpy as jnp
from jax.experimental import pallas as pl
from jax.experimental.pallas import tpu as pltpu

# ---------------- model hyper-parameters (synthetic bert.config) ----------------
VOCAB = 130          # must contain token id 101 ([CLS]) used for initial_cls_embedding
HIDDEN = 32
NUM_HEADS = 2
HEAD_DIM = HIDDEN // NUM_HEADS
INTERMEDIATE = 64
NUM_BERT_LAYERS = 2
NUM_PASSAGES = 4
MAXSEQLEN = 8
BATCH = 2
LN_EPS = 1e-12
NUM_TOTAL_LAYERS = NUM_BERT_LAYERS + 2       # encoder layers + 2 aggregation layers

M_ENC = BATCH * NUM_PASSAGES * MAXSEQLEN     # 64   (batch folded into M)
M_AGG = BATCH * (NUM_PASSAGES + 1)           # 10   real aggregation rows
M_AGG_PAD = 16                               # padded to a sublane multiple

# packed-constant row layout
ROWS_PER_LAYER = 9                           # bq bk bv bo ln1g ln1b bf ln2g ln2b
AGG_ADD_BASE = NUM_TOTAL_LAYERS * ROWS_PER_LAYER   # 36
LINW_ROW = AGG_ADD_BASE + M_AGG_PAD                # 52
LINB_ROW = LINW_ROW + 1                            # 53
CONST_ROWS = LINB_ROW + 1                          # 54


# ---------------- helpers (used both in-kernel and in the reference) ----------------
def _layernorm(x, g, b):
    mu = jnp.mean(x, axis=-1, keepdims=True)
    var = jnp.mean((x - mu) ** 2, axis=-1, keepdims=True)
    return (x - mu) * jax.lax.rsqrt(var + LN_EPS) * g + b


def _gelu(x):
    # TODO(synk): HF BertLayer default "gelu" is the exact erf form; the tanh
    # approximation is used here for a TPU/EUP-friendly lowering (~1e-3 close).
    c = math.sqrt(2.0 / math.pi)
    return 0.5 * x * (1.0 + jnp.tanh(c * (x + 0.044715 * x * x * x)))


# ---------------- fused kernel: full PTParade forward (both batch elements) ----------------
def ptparade_fused_kernel(x_ref, ebias_ref, abias_ref, sel_ref,
                          wqkv_ref, wo_ref, wi_ref, wf_ref,
                          ch_ref, ci_ref, o_ref):
    H = HIDDEN
    C = ch_ref[...]                  # (CONST_ROWS, H) packed H-wide constants
    CI = ci_ref[...]                 # (NUM_TOTAL_LAYERS, INTERMEDIATE) FFN inner biases
    scale = 1.0 / math.sqrt(HEAD_DIM)

    # Hoisted per-stage head lane masks (JAX does not CSE broadcast_in_dim).
    def head_masks(m):
        lane = jax.lax.broadcasted_iota(jnp.int32, (m, H), 1)
        hm0 = (lane < HEAD_DIM).astype(jnp.float32)
        return hm0, 1.0 - hm0

    he0, he1 = head_masks(M_ENC)
    ha0, ha1 = head_masks(M_AGG_PAD)

    def bert_layer(x, bias2, li, hm0, hm1):
        m = x.shape[0]
        r = li * ROWS_PER_LAYER
        # fused QKV projection: single MXU matmul (m, 3H)
        qkv = jnp.dot(x, wqkv_ref[li], preferred_element_type=jnp.float32)
        q = qkv[:, 0:H] + C[r + 0:r + 1, :]
        k = qkv[:, H:2 * H] + C[r + 1:r + 2, :]
        v = qkv[:, 2 * H:3 * H] + C[r + 2:r + 3, :]

        # both heads packed into one QK matmul: head-masked queries stacked on sublanes
        q2 = jnp.concatenate([q * hm0, q * hm1], axis=0) * scale          # (2m, H)
        s = jnp.einsum('md,nd->mn', q2, k,
                       preferred_element_type=jnp.float32) + bias2        # (2m, m)
        mx = jnp.max(s, axis=-1, keepdims=True)
        e = jnp.exp(s - mx)
        p = e * pl.reciprocal(jnp.sum(e, axis=-1, keepdims=True), approx=True)

        # one PV matmul for both heads; split heads with lane masks afterwards
        ctx2 = jnp.dot(p, v, preferred_element_type=jnp.float32)          # (2m, H)
        ctx = ctx2[0:m] * hm0 + ctx2[m:2 * m] * hm1                       # (m, H)

        attn = jnp.dot(ctx, wo_ref[li],
                       preferred_element_type=jnp.float32) + C[r + 3:r + 4, :]
        x1 = _layernorm(x + attn, C[r + 4:r + 5, :], C[r + 5:r + 6, :])

        inter = _gelu(jnp.dot(x1, wi_ref[li],
                              preferred_element_type=jnp.float32) + CI[li:li + 1, :])
        ffn = jnp.dot(inter, wf_ref[li],
                      preferred_element_type=jnp.float32) + C[r + 6:r + 7, :]
        return _layernorm(x1 + ffn, C[r + 7:r + 8, :], C[r + 8:r + 9, :])

    # ---- BERT encoder: all batch elements & passages folded into M_ENC rows ----
    x = x_ref[...]                       # (M_ENC, H)
    ebias2 = ebias_ref[...]              # (2*M_ENC, M_ENC) block-diag + key padding
    for li in range(NUM_BERT_LAYERS):
        x = bert_layer(x, ebias2, li, he0, he1)

    # ---- aggregate_using_transformer: CLS gather via one-hot matmul + packed consts ----
    y = (jnp.dot(sel_ref[...], x, preferred_element_type=jnp.float32)
         + C[AGG_ADD_BASE:AGG_ADD_BASE + M_AGG_PAD, :])                   # (M_AGG_PAD, H)
    abias2 = abias_ref[...]              # (2*M_AGG_PAD, M_AGG_PAD) block-diag over batch
    for a in range(2):
        y = bert_layer(y, abias2, NUM_BERT_LAYERS + a, ha0, ha1)

    # ---- final scoring linear folded into a lane reduction ----
    linw = C[LINW_ROW:LINW_ROW + 1, :]                                    # (1, H)
    linb = C[LINB_ROW:LINB_ROW + 1, 0:1]                                  # (1, 1)
    scores = jnp.sum(y * linw, axis=-1, keepdims=True) + linb             # (M_AGG_PAD, 1)
    out = jnp.concatenate(
        [scores[b * (NUM_PASSAGES + 1):b * (NUM_PASSAGES + 1) + 1, :]
         for b in range(BATCH)], axis=0)                                  # (B, 1)
    o_ref[...] = out


# ---------------- wrapper: pack weights/constants, build biases, one pallas_call ----------------
def _stack_weights(layers):
    w_qkv = jnp.stack([jnp.concatenate([lp['wq'], lp['wk'], lp['wv']], axis=1)
                       for lp in layers])                     # (L, H, 3H)
    w_o = jnp.stack([lp['wo'] for lp in layers])              # (L, H, H)
    w_in = jnp.stack([lp['wi'] for lp in layers])             # (L, H, I)
    w_out = jnp.stack([lp['wf'] for lp in layers])            # (L, I, H)
    return w_qkv, w_o, w_in, w_out


def _pack_row_consts(layers, agg_add, lin_w, lin_b):
    rows = []
    for lp in layers:
        rows += [lp['bq'], lp['bk'], lp['bv'], lp['bo'],
                 lp['ln1g'], lp['ln1b'], lp['bf'], lp['ln2g'], lp['ln2b']]
    rows.append(agg_add)                                      # (M_AGG_PAD, H)
    rows.append(lin_w.T)                                      # (1, H)
    rows.append(jnp.broadcast_to(lin_b, (1, HIDDEN)))         # (1, H)
    return jnp.concatenate(rows, axis=0)                      # (CONST_ROWS, H)


def _full_spec(arr):
    nd = arr.ndim
    return pl.BlockSpec(arr.shape, lambda i, _nd=nd: (0,) * _nd)


def _layernorm_jnp(x, g, b):
    mu = jnp.mean(x, axis=-1, keepdims=True)
    var = jnp.mean((x - mu) ** 2, axis=-1, keepdims=True)
    return (x - mu) * jax.lax.rsqrt(var + LN_EPS) * g + b


def ptparade_forward(params, doc_input, doc_mask, doc_seg):
    B, P, L = doc_input.shape
    assert (B, P, L) == (BATCH, NUM_PASSAGES, MAXSEQLEN)
    H = HIDDEN

    ids = doc_input.reshape(B * P, L)
    mask = doc_mask.reshape(B * P, L).astype(jnp.float32)
    seg = doc_seg.reshape(B * P, L)

    # BERT embeddings (data-dependent gather + LayerNorm): plain JAX glue.
    emb = (params['word_emb'][ids]
           + params['type_emb'][seg]
           + params['pos_emb'][None, :L, :])
    x = _layernorm_jnp(emb, params['emb_ln_g'], params['emb_ln_b'])     # (B*P, L, H)
    x2d = x.reshape(B * P * L, H)                                       # (M_ENC, H)

    # Encoder bias: block-diagonal over (batch, passage) + key-padding mask,
    # tiled x2 on sublanes for the head-stacked score layout.
    same_block = np.kron(np.eye(B * P, dtype=np.float32),
                         np.ones((L, L), np.float32))                   # (M_ENC, M_ENC)
    key_valid = mask.reshape(B * P * L)
    keep = (jnp.asarray(same_block) > 0) & (key_valid[None, :] > 0)
    enc_bias = jnp.where(keep, 0.0, -10000.0)
    enc_bias2 = jnp.concatenate([enc_bias, enc_bias], axis=0)           # (2*M_ENC, M_ENC)

    # Aggregation bias: block-diagonal over batch; padded rows/cols fully masked.
    abias_np = np.full((M_AGG_PAD, M_AGG_PAD), -10000.0, np.float32)
    for b in range(B):
        s0 = b * (P + 1)
        abias_np[s0:s0 + P + 1, s0:s0 + P + 1] = 0.0
    agg_bias2 = jnp.asarray(np.concatenate([abias_np, abias_np], axis=0))

    # One-hot gather of each passage's CLS row; rows b*(P+1) and pad rows stay zero
    # (the initial CLS embedding is injected via the additive constant instead).
    sel_np = np.zeros((M_AGG_PAD, B * P * L), np.float32)
    for b in range(B):
        for p in range(P):
            sel_np[b * (P + 1) + p + 1, (b * P + p) * L] = 1.0
    sel = jnp.asarray(sel_np)

    # Additive constant for the aggregation input: position embeddings per batch
    # element + initial CLS embedding at rows b*(P+1); padded rows stay zero.
    fpos = params['full_pos'].reshape(P + 1, H)
    icls_rows_np = np.zeros((M_AGG_PAD, 1), np.float32)
    pos_rows_np = np.zeros((M_AGG_PAD, P + 1), np.float32)
    for b in range(B):
        icls_rows_np[b * (P + 1), 0] = 1.0
        pos_rows_np[b * (P + 1):b * (P + 1) + P + 1] = np.eye(P + 1, dtype=np.float32)
    agg_add = (jnp.asarray(pos_rows_np) @ fpos
               + jnp.asarray(icls_rows_np) * params['initial_cls'])

    all_layers = list(params['bert_layers']) + [params['agg_layer_1'],
                                                params['agg_layer_2']]
    w_qkv, w_o, w_in, w_out = _stack_weights(all_layers)
    consts_h = _pack_row_consts(all_layers, agg_add, params['lin_w'], params['lin_b'])
    consts_i = jnp.concatenate([lp['bi'] for lp in all_layers], axis=0)   # (L, I)

    inputs = (x2d, enc_bias2, agg_bias2, sel,
              w_qkv, w_o, w_in, w_out, consts_h, consts_i)

    out = pl.pallas_call(
        ptparade_fused_kernel,
        out_shape=jax.ShapeDtypeStruct((B, 1), jnp.float32),
        grid=(1,),
        in_specs=[_full_spec(a) for a in inputs],
        out_specs=pl.BlockSpec((B, 1), lambda i: (0, 0)),
        compiler_params=pltpu.CompilerParams(dimension_semantics=("arbitrary",)),
        cost_estimate=pl.CostEstimate(flops=6_000_000, transcendentals=30_000,
                                      bytes_accessed=250_000),
    )(*inputs)
    return out


# ---------------- pure-JAX reference of the same math (correctness check) ----------------
def _bert_layer_ref(x, mask3, p):
    bias = (1.0 - mask3) * -10000.0                # (N, 1, S)
    q = x @ p['wq'] + p['bq']
    k = x @ p['wk'] + p['bk']
    v = x @ p['wv'] + p['bv']
    ctx = []
    for h in range(NUM_HEADS):
        sl = slice(h * HEAD_DIM, (h + 1) * HEAD_DIM)
        s = jnp.einsum('nqd,nkd->nqk', q[..., sl], k[..., sl]) / math.sqrt(HEAD_DIM) + bias
        pr = jax.nn.softmax(s, axis=-1)
        ctx.append(jnp.einsum('nqk,nkd->nqd', pr, v[..., sl]))
    ctx = jnp.concatenate(ctx, axis=-1)
    x1 = _layernorm_jnp(x + ctx @ p['wo'] + p['bo'], p['ln1g'], p['ln1b'])
    ffn = _gelu(x1 @ p['wi'] + p['bi']) @ p['wf'] + p['bf']
    return _layernorm_jnp(x1 + ffn, p['ln2g'], p['ln2b'])


def ptparade_forward_ref(params, doc_input, doc_mask, doc_seg):
    B, P, L = doc_input.shape
    H = HIDDEN
    ids = doc_input.reshape(B * P, L)
    mask = doc_mask.reshape(B * P, L).astype(jnp.float32)
    seg = doc_seg.reshape(B * P, L)
    emb = params['word_emb'][ids] + params['type_emb'][seg] + params['pos_emb'][None, :L, :]
    x = _layernorm_jnp(emb, params['emb_ln_g'], params['emb_ln_b'])
    mask3 = mask[:, None, :]
    for lp in params['bert_layers']:
        x = _bert_layer_ref(x, mask3, lp)
    cls = x[:, 0, :].reshape(B, P, H)
    merged = jnp.concatenate(
        [jnp.broadcast_to(params['initial_cls'][None], (B, 1, H)), cls], axis=1)
    merged = merged + params['full_pos']
    ones_mask = jnp.ones((B, 1, P + 1), jnp.float32)
    y = _bert_layer_ref(merged, ones_mask, params['agg_layer_1'])
    y = _bert_layer_ref(y, ones_mask, params['agg_layer_2'])
    return y[:, 0, :] @ params['lin_w'] + params['lin_b']


# ---------------- deterministic parameter init ----------------
def _init_bert_layer(key):
    ks = jax.random.split(key, 16)
    n = lambda k, s: 0.02 * jax.random.normal(k, s, jnp.float32)
    H, I = HIDDEN, INTERMEDIATE
    return {
        'wq': n(ks[0], (H, H)), 'bq': n(ks[1], (1, H)),
        'wk': n(ks[2], (H, H)), 'bk': n(ks[3], (1, H)),
        'wv': n(ks[4], (H, H)), 'bv': n(ks[5], (1, H)),
        'wo': n(ks[6], (H, H)), 'bo': n(ks[7], (1, H)),
        'ln1g': 1.0 + n(ks[8], (1, H)), 'ln1b': n(ks[9], (1, H)),
        'wi': n(ks[10], (H, I)), 'bi': n(ks[11], (1, I)),
        'wf': n(ks[12], (I, H)), 'bf': n(ks[13], (1, H)),
        'ln2g': 1.0 + n(ks[14], (1, H)), 'ln2b': n(ks[15], (1, H)),
    }


def init_params(key):
    keys = jax.random.split(key, 16)
    n = lambda k, s: 0.02 * jax.random.normal(k, s, jnp.float32)
    word_emb = n(keys[0], (VOCAB, HIDDEN))
    return {
        'word_emb': word_emb,
        'type_emb': n(keys[1], (2, HIDDEN)),
        'pos_emb': n(keys[2], (MAXSEQLEN, HIDDEN)),
        'emb_ln_g': jnp.ones((HIDDEN,), jnp.float32),
        'emb_ln_b': jnp.zeros((HIDDEN,), jnp.float32),
        'bert_layers': [_init_bert_layer(keys[3 + i]) for i in range(NUM_BERT_LAYERS)],
        'agg_layer_1': _init_bert_layer(keys[8]),
        'agg_layer_2': _init_bert_layer(keys[9]),
        # initial_cls_embedding = input_embeddings(token_id=101).view(1, H)
        'initial_cls': word_emb[101:102, :],
        # full_position_embeddings ~ N(0, 0.02), shape (1, num_passages + 1, H)
        'full_pos': n(keys[10], (1, NUM_PASSAGES + 1, HIDDEN)),
        'lin_w': n(keys[11], (HIDDEN, 1)),
        'lin_b': n(keys[12], (1, 1)),
    }


if __name__ == "__main__":
    key = jax.random.PRNGKey(0)
    pkey, dkey, skey = jax.random.split(key, 3)
    params = init_params(pkey)

    # inputs: (batch, num_passages, maxseqlen) — same as the torch module before .view()
    doc_input = jax.random.randint(dkey, (BATCH, NUM_PASSAGES, MAXSEQLEN), 0, VOCAB,
                                   dtype=jnp.int32)
    doc_seg = jax.random.randint(skey, (BATCH, NUM_PASSAGES, MAXSEQLEN), 0, 2,
                                 dtype=jnp.int32)
    # attention mask: last two tokens of every passage are padding
    doc_mask = jnp.concatenate(
        [jnp.ones((BATCH, NUM_PASSAGES, MAXSEQLEN - 2), jnp.int32),
         jnp.zeros((BATCH, NUM_PASSAGES, 2), jnp.int32)], axis=-1)

    out = jax.jit(ptparade_forward)(params, doc_input, doc_mask, doc_seg)
    out = jax.block_until_ready(out)

    ref = ptparade_forward_ref(params, doc_input, doc_mask, doc_seg)
    assert out.shape == (BATCH, 1), out.shape
    assert bool(jnp.all(jnp.isfinite(out)))
    assert bool(jnp.allclose(out, ref, rtol=1e-2, atol=5e-3)), (out, ref)

    print("KERNEL_OK")
</pallas_src>

<mosaic_0001>
module attributes {stable_mosaic.version = 11 : i64} {
  func.func @ptparade_fused_kernel(%arg0: i32, %arg1: memref<64x32xf32, #tpu.memory_space<vmem>>, %arg2: memref<128x64xf32, #tpu.memory_space<vmem>>, %arg3: memref<32x16xf32, #tpu.memory_space<vmem>>, %arg4: memref<16x64xf32, #tpu.memory_space<vmem>>, %arg5: memref<4x32x96xf32, #tpu.memory_space<vmem>>, %arg6: memref<4x32x32xf32, #tpu.memory_space<vmem>>, %arg7: memref<4x32x64xf32, #tpu.memory_space<vmem>>, %arg8: memref<4x64x32xf32, #tpu.memory_space<vmem>>, %arg9: memref<54x32xf32, #tpu.memory_space<vmem>>, %arg10: memref<4x64xf32, #tpu.memory_space<vmem>>, %arg11: memref<2x1xf32, #tpu.memory_space<vmem>>) attributes {dimension_semantics = [#tpu.dimension_semantics<arbitrary>], iteration_bounds = array<i64: 1>, scalar_prefetch = 0 : i64, scratch_operands = 0 : i64, tpu.core_type = #tpu.core_type<tc>, window_params = [{pipeline_mode = #tpu.pipeline_mode<synchronous>, transform_indices = @transform_0, window_bounds = array<i64: 64, 32>}, {pipeline_mode = #tpu.pipeline_mode<synchronous>, transform_indices = @transform_1, window_bounds = array<i64: 128, 64>}, {pipeline_mode = #tpu.pipeline_mode<synchronous>, transform_indices = @transform_2, window_bounds = array<i64: 32, 16>}, {pipeline_mode = #tpu.pipeline_mode<synchronous>, transform_indices = @transform_3, window_bounds = array<i64: 16, 64>}, {pipeline_mode = #tpu.pipeline_mode<synchronous>, transform_indices = @transform_4, window_bounds = array<i64: 4, 32, 96>}, {pipeline_mode = #tpu.pipeline_mode<synchronous>, transform_indices = @transform_5, window_bounds = array<i64: 4, 32, 32>}, {pipeline_mode = #tpu.pipeline_mode<synchronous>, transform_indices = @transform_6, window_bounds = array<i64: 4, 32, 64>}, {pipeline_mode = #tpu.pipeline_mode<synchronous>, transform_indices = @transform_7, window_bounds = array<i64: 4, 64, 32>}, {pipeline_mode = #tpu.pipeline_mode<synchronous>, transform_indices = @transform_8, window_bounds = array<i64: 54, 32>}, {pipeline_mode = #tpu.pipeline_mode<synchronous>, transform_indices = @transform_9, window_bounds = array<i64: 4, 64>}, {pipeline_mode = #tpu.pipeline_mode<synchronous>, transform_indices = @transform_10, window_bounds = array<i64: 2, 1>}]} {
    %c0 = arith.constant 0 : index
    %c0_0 = arith.constant 0 : index
    %0 = vector.load %arg9[%c0, %c0_0] : memref<54x32xf32, #tpu.memory_space<vmem>>, vector<54x32xf32>
    %c0_1 = arith.constant 0 : index
    %c0_2 = arith.constant 0 : index
    %1 = vector.load %arg10[%c0_1, %c0_2] : memref<4x64xf32, #tpu.memory_space<vmem>>, vector<4x64xf32>
    %2 = tpu.iota {dimensions = array<i32: 1>} : vector<64x32xi32>
    %c16_i32 = arith.constant 16 : i32
    %3 = vector.broadcast %c16_i32 : i32 to vector<64x32xi32>
    %4 = arith.cmpi slt, %2, %3 : vector<64x32xi32>
    %5 = arith.extui %4 : vector<64x32xi1> to vector<64x32xi32>
    %6 = arith.sitofp %5 : vector<64x32xi32> to vector<64x32xf32>
    %cst = arith.constant 1.000000e+00 : f32
    %7 = vector.broadcast %cst : f32 to vector<64x32xf32>
    %8 = arith.subf %7, %6 : vector<64x32xf32>
    %9 = tpu.iota {dimensions = array<i32: 1>} : vector<16x32xi32>
    %c16_i32_3 = arith.constant 16 : i32
    %10 = vector.broadcast %c16_i32_3 : i32 to vector<16x32xi32>
    %11 = arith.cmpi slt, %9, %10 : vector<16x32xi32>
    %12 = arith.extui %11 : vector<16x32xi1> to vector<16x32xi32>
    %13 = arith.sitofp %12 : vector<16x32xi32> to vector<16x32xf32>
    %cst_4 = arith.constant 1.000000e+00 : f32
    %14 = vector.broadcast %cst_4 : f32 to vector<16x32xf32>
    %15 = arith.subf %14, %13 : vector<16x32xf32>
    %c0_5 = arith.constant 0 : index
    %c0_6 = arith.constant 0 : index
    %16 = vector.load %arg1[%c0_5, %c0_6] : memref<64x32xf32, #tpu.memory_space<vmem>>, vector<64x32xf32>
    %c0_7 = arith.constant 0 : index
    %c0_8 = arith.constant 0 : index
    %17 = vector.load %arg2[%c0_7, %c0_8] : memref<128x64xf32, #tpu.memory_space<vmem>>, vector<128x64xf32>
    %18 = vector.shape_cast %17 : vector<128x64xf32> to vector<128x64xf32>
    %c0_9 = arith.constant 0 : index
    %c0_10 = arith.constant 0 : index
    %c0_11 = arith.constant 0 : index
    %19 = vector.load %arg5[%c0_9, %c0_10, %c0_11] : memref<4x32x96xf32, #tpu.memory_space<vmem>>, vector<1x32x96xf32>
    %20 = vector.shape_cast %19 : vector<1x32x96xf32> to vector<32x96xf32>
    %cst_12 = arith.constant dense<0.000000e+00> : vector<64x96xf32>
    %21 = tpu.matmul %16, %20, %cst_12 {dimension_numbers = #tpu.dot_dimension_numbers<[1], [0], [0], [1], [0, 0, 1, 1], [], []>} : vector<64x32xf32>, vector<32x96xf32>, vector<64x96xf32> -> vector<64x96xf32>
    %22 = vector.extract_strided_slice %21 {offsets = [0, 0], sizes = [64, 32], strides = [1, 1]} : vector<64x96xf32> to vector<64x32xf32>
    %23 = vector.extract_strided_slice %0 {offsets = [0, 0], sizes = [1, 32], strides = [1, 1]} : vector<54x32xf32> to vector<1x32xf32>
    %24 = vector.broadcast %23 : vector<1x32xf32> to vector<64x32xf32>
    %25 = arith.addf %22, %24 : vector<64x32xf32>
    %26 = vector.extract_strided_slice %21 {offsets = [0, 32], sizes = [64, 32], strides = [1, 1]} : vector<64x96xf32> to vector<64x32xf32>
    %27 = vector.extract_strided_slice %0 {offsets = [1, 0], sizes = [1, 32], strides = [1, 1]} : vector<54x32xf32> to vector<1x32xf32>
    %28 = vector.broadcast %27 : vector<1x32xf32> to vector<64x32xf32>
    %29 = arith.addf %26, %28 : vector<64x32xf32>
    %30 = vector.extract_strided_slice %21 {offsets = [0, 64], sizes = [64, 32], strides = [1, 1]} : vector<64x96xf32> to vector<64x32xf32>
    %31 = vector.extract_strided_slice %0 {offsets = [2, 0], sizes = [1, 32], strides = [1, 1]} : vector<54x32xf32> to vector<1x32xf32>
    %32 = vector.broadcast %31 : vector<1x32xf32> to vector<64x32xf32>
    %33 = arith.addf %30, %32 : vector<64x32xf32>
    %34 = arith.mulf %25, %6 : vector<64x32xf32>
    %35 = arith.mulf %25, %8 : vector<64x32xf32>
    %36 = tpu.concatenate %34, %35 in 0 : vector<64x32xf32>, vector<64x32xf32> -> vector<128x32xf32>
    %cst_13 = arith.constant 2.500000e-01 : f32
    %37 = vector.broadcast %cst_13 : f32 to vector<128x32xf32>
    %38 = arith.mulf %36, %37 : vector<128x32xf32>
    "tpu.trace_start"() <{level = 10 : i32, message = "md,nd->mn"}> : () -> ()
    %cst_14 = arith.constant dense<0.000000e+00> : vector<128x64xf32>
    %39 = tpu.matmul %38, %29, %cst_14 {dimension_numbers = #tpu.dot_dimension_numbers<[1], [1], [0], [0], [0, 0, 1, 0], [], []>} : vector<128x32xf32>, vector<64x32xf32>, vector<128x64xf32> -> vector<128x64xf32>
    "tpu.trace_stop"() : () -> ()
    %40 = arith.addf %39, %18 : vector<128x64xf32>
    %cst_15 = arith.constant dense<0xFF800000> : vector<128xf32>
    %41 = vector.multi_reduction <maximumf>, %40, %cst_15 [1] : vector<128x64xf32> to vector<128xf32>
    %42 = vector.shape_cast %41 : vector<128xf32> to vector<128x1xf32>
    %43 = vector.broadcast %42 : vector<128x1xf32> to vector<128x64xf32>
    %44 = arith.subf %40, %43 : vector<128x64xf32>
    %45 = math.exp %44 : vector<128x64xf32>
    %cst_16 = arith.constant dense<0.000000e+00> : vector<128xf32>
    %46 = vector.multi_reduction <add>, %45, %cst_16 [1] : vector<128x64xf32> to vector<128xf32>
    %47 = vector.shape_cast %46 : vector<128xf32> to vector<128x1xf32>
    %48 = tpu.reciprocal %47 {approx = true} : vector<128x1xf32> -> vector<128x1xf32>
    %49 = vector.broadcast %48 : vector<128x1xf32> to vector<128x64xf32>
    %50 = arith.mulf %45, %49 : vector<128x64xf32>
    %cst_17 = arith.constant dense<0.000000e+00> : vector<128x32xf32>
    %51 = tpu.matmul %50, %33, %cst_17 {dimension_numbers = #tpu.dot_dimension_numbers<[1], [0], [0], [1], [0, 0, 1, 1], [], []>} : vector<128x64xf32>, vector<64x32xf32>, vector<128x32xf32> -> vector<128x32xf32>
    %52 = vector.extract_strided_slice %51 {offsets = [0, 0], sizes = [64, 32], strides = [1, 1]} : vector<128x32xf32> to vector<64x32xf32>
    %53 = arith.mulf %52, %6 : vector<64x32xf32>
    %54 = vector.extract_strided_slice %51 {offsets = [64, 0], sizes = [64, 32], strides = [1, 1]} : vector<128x32xf32> to vector<64x32xf32>
    %55 = arith.mulf %54, %8 : vector<64x32xf32>
    %56 = arith.addf %53, %55 : vector<64x32xf32>
    %c0_18 = arith.constant 0 : index
    %c0_19 = arith.constant 0 : index
    %c0_20 = arith.constant 0 : index
    %57 = vector.load %arg6[%c0_18, %c0_19, %c0_20] : memref<4x32x32xf32, #tpu.memory_space<vmem>>, vector<1x32x32xf32>
    %58 = vector.shape_cast %57 : vector<1x32x32xf32> to vector<32x32xf32>
    %cst_21 = arith.constant dense<0.000000e+00> : vector<64x32xf32>
    %59 = tpu.matmul %56, %58, %cst_21 {dimension_numbers = #tpu.dot_dimension_numbers<[1], [0], [0], [1], [0, 0, 1, 1], [], []>} : vector<64x32xf32>, vector<32x32xf32>, vector<64x32xf32> -> vector<64x32xf32>
    %60 = vector.extract_strided_slice %0 {offsets = [3, 0], sizes = [1, 32], strides = [1, 1]} : vector<54x32xf32> to vector<1x32xf32>
    %61 = vector.broadcast %60 : vector<1x32xf32> to vector<64x32xf32>
    %62 = arith.addf %59, %61 : vector<64x32xf32>
    %63 = arith.addf %16, %62 : vector<64x32xf32>
    %64 = vector.extract_strided_slice %0 {offsets = [4, 0], sizes = [1, 32], strides = [1, 1]} : vector<54x32xf32> to vector<1x32xf32>
    %65 = vector.extract_strided_slice %0 {offsets = [5, 0], sizes = [1, 32], strides = [1, 1]} : vector<54x32xf32> to vector<1x32xf32>
    %cst_22 = arith.constant dense<0.000000e+00> : vector<64xf32>
    %66 = vector.multi_reduction <add>, %63, %cst_22 [1] : vector<64x32xf32> to vector<64xf32>
    %67 = vector.shape_cast %66 : vector<64xf32> to vector<64x1xf32>
    %cst_23 = arith.constant 3.200000e+01 : f32
    %68 = vector.broadcast %cst_23 : f32 to vector<64x1xf32>
    %69 = arith.divf %67, %68 : vector<64x1xf32>
    %70 = vector.broadcast %69 : vector<64x1xf32> to vector<64x32xf32>
    %71 = arith.subf %63, %70 : vector<64x32xf32>
    %72 = arith.mulf %71, %71 : vector<64x32xf32>
    %cst_24 = arith.constant dense<0.000000e+00> : vector<64xf32>
    %73 = vector.multi_reduction <add>, %72, %cst_24 [1] : vector<64x32xf32> to vector<64xf32>
    %74 = vector.shape_cast %73 : vector<64xf32> to vector<64x1xf32>
    %cst_25 = arith.constant 3.200000e+01 : f32
    %75 = vector.broadcast %cst_25 : f32 to vector<64x1xf32>
    %76 = arith.divf %74, %75 : vector<64x1xf32>
    %77 = vector.broadcast %69 : vector<64x1xf32> to vector<64x32xf32>
    %78 = arith.subf %63, %77 : vector<64x32xf32>
    %cst_26 = arith.constant 9.99999996E-13 : f32
    %79 = vector.broadcast %cst_26 : f32 to vector<64x1xf32>
    %80 = arith.addf %76, %79 : vector<64x1xf32>
    %81 = math.rsqrt %80 : vector<64x1xf32>
    %82 = vector.broadcast %81 : vector<64x1xf32> to vector<64x32xf32>
    %83 = arith.mulf %78, %82 : vector<64x32xf32>
    %84 = vector.broadcast %64 : vector<1x32xf32> to vector<64x32xf32>
    %85 = arith.mulf %83, %84 : vector<64x32xf32>
    %86 = vector.broadcast %65 : vector<1x32xf32> to vector<64x32xf32>
    %87 = arith.addf %85, %86 : vector<64x32xf32>
    %c0_27 = arith.constant 0 : index
    %c0_28 = arith.constant 0 : index
    %c0_29 = arith.constant 0 : index
    %88 = vector.load %arg7[%c0_27, %c0_28, %c0_29] : memref<4x32x64xf32, #tpu.memory_space<vmem>>, vector<1x32x64xf32>
    %89 = vector.shape_cast %88 : vector<1x32x64xf32> to vector<32x64xf32>
    %cst_30 = arith.constant dense<0.000000e+00> : vector<64x64xf32>
    %90 = tpu.matmul %87, %89, %cst_30 {dimension_numbers = #tpu.dot_dimension_numbers<[1], [0], [0], [1], [0, 0, 1, 1], [], []>} : vector<64x32xf32>, vector<32x64xf32>, vector<64x64xf32> -> vector<64x64xf32>
    %91 = vector.extract_strided_slice %1 {offsets = [0, 0], sizes = [1, 64], strides = [1, 1]} : vector<4x64xf32> to vector<1x64xf32>
    %92 = vector.broadcast %91 : vector<1x64xf32> to vector<64x64xf32>
    %93 = arith.addf %90, %92 : vector<64x64xf32>
    %cst_31 = arith.constant 5.000000e-01 : f32
    %94 = vector.broadcast %cst_31 : f32 to vector<64x64xf32>
    %95 = arith.mulf %94, %93 : vector<64x64xf32>
    %cst_32 = arith.constant 4.471500e-02 : f32
    %96 = vector.broadcast %cst_32 : f32 to vector<64x64xf32>
    %97 = arith.mulf %96, %93 : vector<64x64xf32>
    %98 = arith.mulf %97, %93 : vector<64x64xf32>
    %99 = arith.mulf %98, %93 : vector<64x64xf32>
    %100 = arith.addf %93, %99 : vector<64x64xf32>
    %cst_33 = arith.constant 0.797884583 : f32
    %101 = vector.broadcast %cst_33 : f32 to vector<64x64xf32>
    %102 = arith.mulf %101, %100 : vector<64x64xf32>
    %103 = math.tanh %102 : vector<64x64xf32>
    %cst_34 = arith.constant 1.000000e+00 : f32
    %104 = vector.broadcast %cst_34 : f32 to vector<64x64xf32>
    %105 = arith.addf %104, %103 : vector<64x64xf32>
    %106 = arith.mulf %95, %105 : vector<64x64xf32>
    %c0_35 = arith.constant 0 : index
    %c0_36 = arith.constant 0 : index
    %c0_37 = arith.constant 0 : index
    %107 = vector.load %arg8[%c0_35, %c0_36, %c0_37] : memref<4x64x32xf32, #tpu.memory_space<vmem>>, vector<1x64x32xf32>
    %108 = vector.shape_cast %107 : vector<1x64x32xf32> to vector<64x32xf32>
    %cst_38 = arith.constant dense<0.000000e+00> : vector<64x32xf32>
    %109 = tpu.matmul %106, %108, %cst_38 {dimension_numbers = #tpu.dot_dimension_numbers<[1], [0], [0], [1], [0, 0, 1, 1], [], []>} : vector<64x64xf32>, vector<64x32xf32>, vector<64x32xf32> -> vector<64x32xf32>
    %110 = vector.extract_strided_slice %0 {offsets = [6, 0], sizes = [1, 32], strides = [1, 1]} : vector<54x32xf32> to vector<1x32xf32>
    %111 = vector.broadcast %110 : vector<1x32xf32> to vector<64x32xf32>
    %112 = arith.addf %109, %111 : vector<64x32xf32>
    %113 = arith.addf %87, %112 : vector<64x32xf32>
    %114 = vector.extract_strided_slice %0 {offsets = [7, 0], sizes = [1, 32], strides = [1, 1]} : vector<54x32xf32> to vector<1x32xf32>
    %115 = vector.extract_strided_slice %0 {offsets = [8, 0], sizes = [1, 32], strides = [1, 1]} : vector<54x32xf32> to vector<1x32xf32>
    %cst_39 = arith.constant dense<0.000000e+00> : vector<64xf32>
    %116 = vector.multi_reduction <add>, %113, %cst_39 [1] : vector<64x32xf32> to vector<64xf32>
    %117 = vector.shape_cast %116 : vector<64xf32> to vector<64x1xf32>
    %cst_40 = arith.constant 3.200000e+01 : f32
    %118 = vector.broadcast %cst_40 : f32 to vector<64x1xf32>
    %119 = arith.divf %117, %118 : vector<64x1xf32>
    %120 = vector.broadcast %119 : vector<64x1xf32> to vector<64x32xf32>
    %121 = arith.subf %113, %120 : vector<64x32xf32>
    %122 = arith.mulf %121, %121 : vector<64x32xf32>
    %cst_41 = arith.constant dense<0.000000e+00> : vector<64xf32>
    %123 = vector.multi_reduction <add>, %122, %cst_41 [1] : vector<64x32xf32> to vector<64xf32>
    %124 = vector.shape_cast %123 : vector<64xf32> to vector<64x1xf32>
    %cst_42 = arith.constant 3.200000e+01 : f32
    %125 = vector.broadcast %cst_42 : f32 to vector<64x1xf32>
    %126 = arith.divf %124, %125 : vector<64x1xf32>
    %127 = vector.broadcast %119 : vector<64x1xf32> to vector<64x32xf32>
    %128 = arith.subf %113, %127 : vector<64x32xf32>
    %cst_43 = arith.constant 9.99999996E-13 : f32
    %129 = vector.broadcast %cst_43 : f32 to vector<64x1xf32>
    %130 = arith.addf %126, %129 : vector<64x1xf32>
    %131 = math.rsqrt %130 : vector<64x1xf32>
    %132 = vector.broadcast %131 : vector<64x1xf32> to vector<64x32xf32>
    %133 = arith.mulf %128, %132 : vector<64x32xf32>
    %134 = vector.broadcast %114 : vector<1x32xf32> to vector<64x32xf32>
    %135 = arith.mulf %133, %134 : vector<64x32xf32>
    %136 = vector.broadcast %115 : vector<1x32xf32> to vector<64x32xf32>
    %137 = arith.addf %135, %136 : vector<64x32xf32>
    %c1 = arith.constant 1 : index
    %c0_44 = arith.constant 0 : index
    %c0_45 = arith.constant 0 : index
    %138 = vector.load %arg5[%c1, %c0_44, %c0_45] : memref<4x32x96xf32, #tpu.memory_space<vmem>>, vector<1x32x96xf32>
    %139 = vector.shape_cast %138 : vector<1x32x96xf32> to vector<32x96xf32>
    %cst_46 = arith.constant dense<0.000000e+00> : vector<64x96xf32>
    %140 = tpu.matmul %137, %139, %cst_46 {dimension_numbers = #tpu.dot_dimension_numbers<[1], [0], [0], [1], [0, 0, 1, 1], [], []>} : vector<64x32xf32>, vector<32x96xf32>, vector<64x96xf32> -> vector<64x96xf32>
    %141 = vector.extract_strided_slice %140 {offsets = [0, 0], sizes = [64, 32], strides = [1, 1]} : vector<64x96xf32> to vector<64x32xf32>
    %142 = vector.extract_strided_slice %0 {offsets = [9, 0], sizes = [1, 32], strides = [1, 1]} : vector<54x32xf32> to vector<1x32xf32>
    %143 = vector.broadcast %142 : vector<1x32xf32> to vector<64x32xf32>
    %144 = arith.addf %141, %143 : vector<64x32xf32>
    %145 = vector.extract_strided_slice %140 {offsets = [0, 32], sizes = [64, 32], strides = [1, 1]} : vector<64x96xf32> to vector<64x32xf32>
    %146 = vector.extract_strided_slice %0 {offsets = [10, 0], sizes = [1, 32], strides = [1, 1]} : vector<54x32xf32> to vector<1x32xf32>
    %147 = vector.broadcast %146 : vector<1x32xf32> to vector<64x32xf32>
    %148 = arith.addf %145, %147 : vector<64x32xf32>
    %149 = vector.extract_strided_slice %140 {offsets = [0, 64], sizes = [64, 32], strides = [1, 1]} : vector<64x96xf32> to vector<64x32xf32>
    %150 = vector.extract_strided_slice %0 {offsets = [11, 0], sizes = [1, 32], strides = [1, 1]} : vector<54x32xf32> to vector<1x32xf32>
    %151 = vector.broadcast %150 : vector<1x32xf32> to vector<64x32xf32>
    %152 = arith.addf %149, %151 : vector<64x32xf32>
    %153 = arith.mulf %144, %6 : vector<64x32xf32>
    %154 = arith.mulf %144, %8 : vector<64x32xf32>
    %155 = tpu.concatenate %153, %154 in 0 : vector<64x32xf32>, vector<64x32xf32> -> vector<128x32xf32>
    %cst_47 = arith.constant 2.500000e-01 : f32
    %156 = vector.broadcast %cst_47 : f32 to vector<128x32xf32>
    %157 = arith.mulf %155, %156 : vector<128x32xf32>
    "tpu.trace_start"() <{level = 10 : i32, message = "md,nd->mn"}> : () -> ()
    %cst_48 = arith.constant dense<0.000000e+00> : vector<128x64xf32>
    %158 = tpu.matmul %157, %148, %cst_48 {dimension_numbers = #tpu.dot_dimension_numbers<[1], [1], [0], [0], [0, 0, 1, 0], [], []>} : vector<128x32xf32>, vector<64x32xf32>, vector<128x64xf32> -> vector<128x64xf32>
    "tpu.trace_stop"() : () -> ()
    %159 = arith.addf %158, %18 : vector<128x64xf32>
    %cst_49 = arith.constant dense<0xFF800000> : vector<128xf32>
    %160 = vector.multi_reduction <maximumf>, %159, %cst_49 [1] : vector<128x64xf32> to vector<128xf32>
    %161 = vector.shape_cast %160 : vector<128xf32> to vector<128x1xf32>
    %162 = vector.broadcast %161 : vector<128x1xf32> to vector<128x64xf32>
    %163 = arith.subf %159, %162 : vector<128x64xf32>
    %164 = math.exp %163 : vector<128x64xf32>
    %cst_50 = arith.constant dense<0.000000e+00> : vector<128xf32>
    %165 = vector.multi_reduction <add>, %164, %cst_50 [1] : vector<128x64xf32> to vector<128xf32>
    %166 = vector.shape_cast %165 : vector<128xf32> to vector<128x1xf32>
    %167 = tpu.reciprocal %166 {approx = true} : vector<128x1xf32> -> vector<128x1xf32>
    %168 = vector.broadcast %167 : vector<128x1xf32> to vector<128x64xf32>
    %169 = arith.mulf %164, %168 : vector<128x64xf32>
    %cst_51 = arith.constant dense<0.000000e+00> : vector<128x32xf32>
    %170 = tpu.matmul %169, %152, %cst_51 {dimension_numbers = #tpu.dot_dimension_numbers<[1], [0], [0], [1], [0, 0, 1, 1], [], []>} : vector<128x64xf32>, vector<64x32xf32>, vector<128x32xf32> -> vector<128x32xf32>
    %171 = vector.extract_strided_slice %170 {offsets = [0, 0], sizes = [64, 32], strides = [1, 1]} : vector<128x32xf32> to vector<64x32xf32>
    %172 = arith.mulf %171, %6 : vector<64x32xf32>
    %173 = vector.extract_strided_slice %170 {offsets = [64, 0], sizes = [64, 32], strides = [1, 1]} : vector<128x32xf32> to vector<64x32xf32>
    %174 = arith.mulf %173, %8 : vector<64x32xf32>
    %175 = arith.addf %172, %174 : vector<64x32xf32>
    %c1_52 = arith.constant 1 : index
    %c0_53 = arith.constant 0 : index
    %c0_54 = arith.constant 0 : index
    %176 = vector.load %arg6[%c1_52, %c0_53, %c0_54] : memref<4x32x32xf32, #tpu.memory_space<vmem>>, vector<1x32x32xf32>
    %177 = vector.shape_cast %176 : vector<1x32x32xf32> to vector<32x32xf32>
    %cst_55 = arith.constant dense<0.000000e+00> : vector<64x32xf32>
    %178 = tpu.matmul %175, %177, %cst_55 {dimension_numbers = #tpu.dot_dimension_numbers<[1], [0], [0], [1], [0, 0, 1, 1], [], []>} : vector<64x32xf32>, vector<32x32xf32>, vector<64x32xf32> -> vector<64x32xf32>
    %179 = vector.extract_strided_slice %0 {offsets = [12, 0], sizes = [1, 32], strides = [1, 1]} : vector<54x32xf32> to vector<1x32xf32>
    %180 = vector.broadcast %179 : vector<1x32xf32> to vector<64x32xf32>
    %181 = arith.addf %178, %180 : vector<64x32xf32>
    %182 = arith.addf %137, %181 : vector<64x32xf32>
    %183 = vector.extract_strided_slice %0 {offsets = [13, 0], sizes = [1, 32], strides = [1, 1]} : vector<54x32xf32> to vector<1x32xf32>
    %184 = vector.extract_strided_slice %0 {offsets = [14, 0], sizes = [1, 32], strides = [1, 1]} : vector<54x32xf32> to vector<1x32xf32>
    %cst_56 = arith.constant dense<0.000000e+00> : vector<64xf32>
    %185 = vector.multi_reduction <add>, %182, %cst_56 [1] : vector<64x32xf32> to vector<64xf32>
    %186 = vector.shape_cast %185 : vector<64xf32> to vector<64x1xf32>
    %cst_57 = arith.constant 3.200000e+01 : f32
    %187 = vector.broadcast %cst_57 : f32 to vector<64x1xf32>
    %188 = arith.divf %186, %187 : vector<64x1xf32>
    %189 = vector.broadcast %188 : vector<64x1xf32> to vector<64x32xf32>
    %190 = arith.subf %182, %189 : vector<64x32xf32>
    %191 = arith.mulf %190, %190 : vector<64x32xf32>
    %cst_58 = arith.constant dense<0.000000e+00> : vector<64xf32>
    %192 = vector.multi_reduction <add>, %191, %cst_58 [1] : vector<64x32xf32> to vector<64xf32>
    %193 = vector.shape_cast %192 : vector<64xf32> to vector<64x1xf32>
    %cst_59 = arith.constant 3.200000e+01 : f32
    %194 = vector.broadcast %cst_59 : f32 to vector<64x1xf32>
    %195 = arith.divf %193, %194 : vector<64x1xf32>
    %196 = vector.broadcast %188 : vector<64x1xf32> to vector<64x32xf32>
    %197 = arith.subf %182, %196 : vector<64x32xf32>
    %cst_60 = arith.constant 9.99999996E-13 : f32
    %198 = vector.broadcast %cst_60 : f32 to vector<64x1xf32>
    %199 = arith.addf %195, %198 : vector<64x1xf32>
    %200 = math.rsqrt %199 : vector<64x1xf32>
    %201 = vector.broadcast %200 : vector<64x1xf32> to vector<64x32xf32>
    %202 = arith.mulf %197, %201 : vector<64x32xf32>
    %203 = vector.broadcast %183 : vector<1x32xf32> to vector<64x32xf32>
    %204 = arith.mulf %202, %203 : vector<64x32xf32>
    %205 = vector.broadcast %184 : vector<1x32xf32> to vector<64x32xf32>
    %206 = arith.addf %204, %205 : vector<64x32xf32>
    %c1_61 = arith.constant 1 : index
    %c0_62 = arith.constant 0 : index
    %c0_63 = arith.constant 0 : index
    %207 = vector.load %arg7[%c1_61, %c0_62, %c0_63] : memref<4x32x64xf32, #tpu.memory_space<vmem>>, vector<1x32x64xf32>
    %208 = vector.shape_cast %207 : vector<1x32x64xf32> to vector<32x64xf32>
    %cst_64 = arith.constant dense<0.000000e+00> : vector<64x64xf32>
    %209 = tpu.matmul %206, %208, %cst_64 {dimension_numbers = #tpu.dot_dimension_numbers<[1], [0], [0], [1], [0, 0, 1, 1], [], []>} : vector<64x32xf32>, vector<32x64xf32>, vector<64x64xf32> -> vector<64x64xf32>
    %210 = vector.extract_strided_slice %1 {offsets = [1, 0], sizes = [1, 64], strides = [1, 1]} : vector<4x64xf32> to vector<1x64xf32>
    %211 = vector.broadcast %210 : vector<1x64xf32> to vector<64x64xf32>
    %212 = arith.addf %209, %211 : vector<64x64xf32>
    %cst_65 = arith.constant 5.000000e-01 : f32
    %213 = vector.broadcast %cst_65 : f32 to vector<64x64xf32>
    %214 = arith.mulf %213, %212 : vector<64x64xf32>
    %cst_66 = arith.constant 4.471500e-02 : f32
    %215 = vector.broadcast %cst_66 : f32 to vector<64x64xf32>
    %216 = arith.mulf %215, %212 : vector<64x64xf32>
    %217 = arith.mulf %216, %212 : vector<64x64xf32>
    %218 = arith.mulf %217, %212 : vector<64x64xf32>
    %219 = arith.addf %212, %218 : vector<64x64xf32>
    %cst_67 = arith.constant 0.797884583 : f32
    %220 = vector.broadcast %cst_67 : f32 to vector<64x64xf32>
    %221 = arith.mulf %220, %219 : vector<64x64xf32>
    %222 = math.tanh %221 : vector<64x64xf32>
    %cst_68 = arith.constant 1.000000e+00 : f32
    %223 = vector.broadcast %cst_68 : f32 to vector<64x64xf32>
    %224 = arith.addf %223, %222 : vector<64x64xf32>
    %225 = arith.mulf %214, %224 : vector<64x64xf32>
    %c1_69 = arith.constant 1 : index
    %c0_70 = arith.constant 0 : index
    %c0_71 = arith.constant 0 : index
    %226 = vector.load %arg8[%c1_69, %c0_70, %c0_71] : memref<4x64x32xf32, #tpu.memory_space<vmem>>, vector<1x64x32xf32>
    %227 = vector.shape_cast %226 : vector<1x64x32xf32> to vector<64x32xf32>
    %cst_72 = arith.constant dense<0.000000e+00> : vector<64x32xf32>
    %228 = tpu.matmul %225, %227, %cst_72 {dimension_numbers = #tpu.dot_dimension_numbers<[1], [0], [0], [1], [0, 0, 1, 1], [], []>} : vector<64x64xf32>, vector<64x32xf32>, vector<64x32xf32> -> vector<64x32xf32>
    %229 = vector.extract_strided_slice %0 {offsets = [15, 0], sizes = [1, 32], strides = [1, 1]} : vector<54x32xf32> to vector<1x32xf32>
    %230 = vector.broadcast %229 : vector<1x32xf32> to vector<64x32xf32>
    %231 = arith.addf %228, %230 : vector<64x32xf32>
    %232 = arith.addf %206, %231 : vector<64x32xf32>
    %233 = vector.extract_strided_slice %0 {offsets = [16, 0], sizes = [1, 32], strides = [1, 1]} : vector<54x32xf32> to vector<1x32xf32>
    %234 = vector.extract_strided_slice %0 {offsets = [17, 0], sizes = [1, 32], strides = [1, 1]} : vector<54x32xf32> to vector<1x32xf32>
    %cst_73 = arith.constant dense<0.000000e+00> : vector<64xf32>
    %235 = vector.multi_reduction <add>, %232, %cst_73 [1] : vector<64x32xf32> to vector<64xf32>
    %236 = vector.shape_cast %235 : vector<64xf32> to vector<64x1xf32>
    %cst_74 = arith.constant 3.200000e+01 : f32
    %237 = vector.broadcast %cst_74 : f32 to vector<64x1xf32>
    %238 = arith.divf %236, %237 : vector<64x1xf32>
    %239 = vector.broadcast %238 : vector<64x1xf32> to vector<64x32xf32>
    %240 = arith.subf %232, %239 : vector<64x32xf32>
    %241 = arith.mulf %240, %240 : vector<64x32xf32>
    %cst_75 = arith.constant dense<0.000000e+00> : vector<64xf32>
    %242 = vector.multi_reduction <add>, %241, %cst_75 [1] : vector<64x32xf32> to vector<64xf32>
    %243 = vector.shape_cast %242 : vector<64xf32> to vector<64x1xf32>
    %cst_76 = arith.constant 3.200000e+01 : f32
    %244 = vector.broadcast %cst_76 : f32 to vector<64x1xf32>
    %245 = arith.divf %243, %244 : vector<64x1xf32>
    %246 = vector.broadcast %238 : vector<64x1xf32> to vector<64x32xf32>
    %247 = arith.subf %232, %246 : vector<64x32xf32>
    %cst_77 = arith.constant 9.99999996E-13 : f32
    %248 = vector.broadcast %cst_77 : f32 to vector<64x1xf32>
    %249 = arith.addf %245, %248 : vector<64x1xf32>
    %250 = math.rsqrt %249 : vector<64x1xf32>
    %251 = vector.broadcast %250 : vector<64x1xf32> to vector<64x32xf32>
    %252 = arith.mulf %247, %251 : vector<64x32xf32>
    %253 = vector.broadcast %233 : vector<1x32xf32> to vector<64x32xf32>
    %254 = arith.mulf %252, %253 : vector<64x32xf32>
    %255 = vector.broadcast %234 : vector<1x32xf32> to vector<64x32xf32>
    %256 = arith.addf %254, %255 : vector<64x32xf32>
    %c0_78 = arith.constant 0 : index
    %c0_79 = arith.constant 0 : index
    %257 = vector.load %arg4[%c0_78, %c0_79] : memref<16x64xf32, #tpu.memory_space<vmem>>, vector<16x64xf32>
    %cst_80 = arith.constant dense<0.000000e+00> : vector<16x32xf32>
    %258 = tpu.matmul %257, %256, %cst_80 {dimension_numbers = #tpu.dot_dimension_numbers<[1], [0], [0], [1], [0, 0, 1, 1], [], []>} : vector<16x64xf32>, vector<64x32xf32>, vector<16x32xf32> -> vector<16x32xf32>
    %259 = vector.extract_strided_slice %0 {offsets = [36, 0], sizes = [16, 32], strides = [1, 1]} : vector<54x32xf32> to vector<16x32xf32>
    %260 = arith.addf %258, %259 : vector<16x32xf32>
    %c0_81 = arith.constant 0 : index
    %c0_82 = arith.constant 0 : index
    %261 = vector.load %arg3[%c0_81, %c0_82] : memref<32x16xf32, #tpu.memory_space<vmem>>, vector<32x16xf32>
    %c2 = arith.constant 2 : index
    %c0_83 = arith.constant 0 : index
    %c0_84 = arith.constant 0 : index
    %262 = vector.load %arg5[%c2, %c0_83, %c0_84] : memref<4x32x96xf32, #tpu.memory_space<vmem>>, vector<1x32x96xf32>
    %263 = vector.shape_cast %262 : vector<1x32x96xf32> to vector<32x96xf32>
    %cst_85 = arith.constant dense<0.000000e+00> : vector<16x96xf32>
    %264 = tpu.matmul %260, %263, %cst_85 {dimension_numbers = #tpu.dot_dimension_numbers<[1], [0], [0], [1], [0, 0, 1, 1], [], []>} : vector<16x32xf32>, vector<32x96xf32>, vector<16x96xf32> -> vector<16x96xf32>
    %265 = vector.extract_strided_slice %264 {offsets = [0, 0], sizes = [16, 32], strides = [1, 1]} : vector<16x96xf32> to vector<16x32xf32>
    %266 = vector.extract_strided_slice %0 {offsets = [18, 0], sizes = [1, 32], strides = [1, 1]} : vector<54x32xf32> to vector<1x32xf32>
    %267 = vector.broadcast %266 : vector<1x32xf32> to vector<16x32xf32>
    %268 = arith.addf %265, %267 : vector<16x32xf32>
    %269 = vector.extract_strided_slice %264 {offsets = [0, 32], sizes = [16, 32], strides = [1, 1]} : vector<16x96xf32> to vector<16x32xf32>
    %270 = vector.extract_strided_slice %0 {offsets = [19, 0], sizes = [1, 32], strides = [1, 1]} : vector<54x32xf32> to vector<1x32xf32>
    %271 = vector.broadcast %270 : vector<1x32xf32> to vector<16x32xf32>
    %272 = arith.addf %269, %271 : vector<16x32xf32>
    %273 = vector.extract_strided_slice %264 {offsets = [0, 64], sizes = [16, 32], strides = [1, 1]} : vector<16x96xf32> to vector<16x32xf32>
    %274 = vector.extract_strided_slice %0 {offsets = [20, 0], sizes = [1, 32], strides = [1, 1]} : vector<54x32xf32> to vector<1x32xf32>
    %275 = vector.broadcast %274 : vector<1x32xf32> to vector<16x32xf32>
    %276 = arith.addf %273, %275 : vector<16x32xf32>
    %277 = arith.mulf %268, %13 : vector<16x32xf32>
    %278 = arith.mulf %268, %15 : vector<16x32xf32>
    %279 = tpu.concatenate %277, %278 in 0 : vector<16x32xf32>, vector<16x32xf32> -> vector<32x32xf32>
    %cst_86 = arith.constant 2.500000e-01 : f32
    %280 = vector.broadcast %cst_86 : f32 to vector<32x32xf32>
    %281 = arith.mulf %279, %280 : vector<32x32xf32>
    "tpu.trace_start"() <{level = 10 : i32, message = "md,nd->mn"}> : () -> ()
    %cst_87 = arith.constant dense<0.000000e+00> : vector<32x16xf32>
    %282 = tpu.matmul %281, %272, %cst_87 {dimension_numbers = #tpu.dot_dimension_numbers<[1], [1], [0], [0], [0, 0, 1, 0], [], []>} : vector<32x32xf32>, vector<16x32xf32>, vector<32x16xf32> -> vector<32x16xf32>
    "tpu.trace_stop"() : () -> ()
    %283 = arith.addf %282, %261 : vector<32x16xf32>
    %cst_88 = arith.constant dense<0xFF800000> : vector<32xf32>
    %284 = vector.multi_reduction <maximumf>, %283, %cst_88 [1] : vector<32x16xf32> to vector<32xf32>
    %285 = vector.shape_cast %284 : vector<32xf32> to vector<32x1xf32>
    %286 = vector.broadcast %285 : vector<32x1xf32> to vector<32x16xf32>
    %287 = arith.subf %283, %286 : vector<32x16xf32>
    %288 = math.exp %287 : vector<32x16xf32>
    %cst_89 = arith.constant dense<0.000000e+00> : vector<32xf32>
    %289 = vector.multi_reduction <add>, %288, %cst_89 [1] : vector<32x16xf32> to vector<32xf32>
    %290 = vector.shape_cast %289 : vector<32xf32> to vector<32x1xf32>
    %291 = tpu.reciprocal %290 {approx = true} : vector<32x1xf32> -> vector<32x1xf32>
    %292 = vector.broadcast %291 : vector<32x1xf32> to vector<32x16xf32>
    %293 = arith.mulf %288, %292 : vector<32x16xf32>
    %cst_90 = arith.constant dense<0.000000e+00> : vector<32x32xf32>
    %294 = tpu.matmul %293, %276, %cst_90 {dimension_numbers = #tpu.dot_dimension_numbers<[1], [0], [0], [1], [0, 0, 1, 1], [], []>} : vector<32x16xf32>, vector<16x32xf32>, vector<32x32xf32> -> vector<32x32xf32>
    %295 = vector.extract_strided_slice %294 {offsets = [0, 0], sizes = [16, 32], strides = [1, 1]} : vector<32x32xf32> to vector<16x32xf32>
    %296 = arith.mulf %295, %13 : vector<16x32xf32>
    %297 = vector.extract_strided_slice %294 {offsets = [16, 0], sizes = [16, 32], strides = [1, 1]} : vector<32x32xf32> to vector<16x32xf32>
    %298 = arith.mulf %297, %15 : vector<16x32xf32>
    %299 = arith.addf %296, %298 : vector<16x32xf32>
    %c2_91 = arith.constant 2 : index
    %c0_92 = arith.constant 0 : index
    %c0_93 = arith.constant 0 : index
    %300 = vector.load %arg6[%c2_91, %c0_92, %c0_93] : memref<4x32x32xf32, #tpu.memory_space<vmem>>, vector<1x32x32xf32>
    %301 = vector.shape_cast %300 : vector<1x32x32xf32> to vector<32x32xf32>
    %cst_94 = arith.constant dense<0.000000e+00> : vector<16x32xf32>
    %302 = tpu.matmul %299, %301, %cst_94 {dimension_numbers = #tpu.dot_dimension_numbers<[1], [0], [0], [1], [0, 0, 1, 1], [], []>} : vector<16x32xf32>, vector<32x32xf32>, vector<16x32xf32> -> vector<16x32xf32>
    %303 = vector.extract_strided_slice %0 {offsets = [21, 0], sizes = [1, 32], strides = [1, 1]} : vector<54x32xf32> to vector<1x32xf32>
    %304 = vector.broadcast %303 : vector<1x32xf32> to vector<16x32xf32>
    %305 = arith.addf %302, %304 : vector<16x32xf32>
    %306 = arith.addf %260, %305 : vector<16x32xf32>
    %307 = vector.extract_strided_slice %0 {offsets = [22, 0], sizes = [1, 32], strides = [1, 1]} : vector<54x32xf32> to vector<1x32xf32>
    %308 = vector.extract_strided_slice %0 {offsets = [23, 0], sizes = [1, 32], strides = [1, 1]} : vector<54x32xf32> to vector<1x32xf32>
    %cst_95 = arith.constant dense<0.000000e+00> : vector<16xf32>
    %309 = vector.multi_reduction <add>, %306, %cst_95 [1] : vector<16x32xf32> to vector<16xf32>
    %310 = vector.shape_cast %309 : vector<16xf32> to vector<16x1xf32>
    %cst_96 = arith.constant 3.200000e+01 : f32
    %311 = vector.broadcast %cst_96 : f32 to vector<16x1xf32>
    %312 = arith.divf %310, %311 : vector<16x1xf32>
    %313 = vector.broadcast %312 : vector<16x1xf32> to vector<16x32xf32>
    %314 = arith.subf %306, %313 : vector<16x32xf32>
    %315 = arith.mulf %314, %314 : vector<16x32xf32>
    %cst_97 = arith.constant dense<0.000000e+00> : vector<16xf32>
    %316 = vector.multi_reduction <add>, %315, %cst_97 [1] : vector<16x32xf32> to vector<16xf32>
    %317 = vector.shape_cast %316 : vector<16xf32> to vector<16x1xf32>
    %cst_98 = arith.constant 3.200000e+01 : f32
    %318 = vector.broadcast %cst_98 : f32 to vector<16x1xf32>
    %319 = arith.divf %317, %318 : vector<16x1xf32>
    %320 = vector.broadcast %312 : vector<16x1xf32> to vector<16x32xf32>
    %321 = arith.subf %306, %320 : vector<16x32xf32>
    %cst_99 = arith.constant 9.99999996E-13 : f32
    %322 = vector.broadcast %cst_99 : f32 to vector<16x1xf32>
    %323 = arith.addf %319, %322 : vector<16x1xf32>
    %324 = math.rsqrt %323 : vector<16x1xf32>
    %325 = vector.broadcast %324 : vector<16x1xf32> to vector<16x32xf32>
    %326 = arith.mulf %321, %325 : vector<16x32xf32>
    %327 = vector.broadcast %307 : vector<1x32xf32> to vector<16x32xf32>
    %328 = arith.mulf %326, %327 : vector<16x32xf32>
    %329 = vector.broadcast %308 : vector<1x32xf32> to vector<16x32xf32>
    %330 = arith.addf %328, %329 : vector<16x32xf32>
    %c2_100 = arith.constant 2 : index
    %c0_101 = arith.constant 0 : index
    %c0_102 = arith.constant 0 : index
    %331 = vector.load %arg7[%c2_100, %c0_101, %c0_102] : memref<4x32x64xf32, #tpu.memory_space<vmem>>, vector<1x32x64xf32>
    %332 = vector.shape_cast %331 : vector<1x32x64xf32> to vector<32x64xf32>
    %cst_103 = arith.constant dense<0.000000e+00> : vector<16x64xf32>
    %333 = tpu.matmul %330, %332, %cst_103 {dimension_numbers = #tpu.dot_dimension_numbers<[1], [0], [0], [1], [0, 0, 1, 1], [], []>} : vector<16x32xf32>, vector<32x64xf32>, vector<16x64xf32> -> vector<16x64xf32>
    %334 = vector.extract_strided_slice %1 {offsets = [2, 0], sizes = [1, 64], strides = [1, 1]} : vector<4x64xf32> to vector<1x64xf32>
    %335 = vector.broadcast %334 : vector<1x64xf32> to vector<16x64xf32>
    %336 = arith.addf %333, %335 : vector<16x64xf32>
    %cst_104 = arith.constant 5.000000e-01 : f32
    %337 = vector.broadcast %cst_104 : f32 to vector<16x64xf32>
    %338 = arith.mulf %337, %336 : vector<16x64xf32>
    %cst_105 = arith.constant 4.471500e-02 : f32
    %339 = vector.broadcast %cst_105 : f32 to vector<16x64xf32>
    %340 = arith.mulf %339, %336 : vector<16x64xf32>
    %341 = arith.mulf %340, %336 : vector<16x64xf32>
    %342 = arith.mulf %341, %336 : vector<16x64xf32>
    %343 = arith.addf %336, %342 : vector<16x64xf32>
    %cst_106 = arith.constant 0.797884583 : f32
    %344 = vector.broadcast %cst_106 : f32 to vector<16x64xf32>
    %345 = arith.mulf %344, %343 : vector<16x64xf32>
    %346 = math.tanh %345 : vector<16x64xf32>
    %cst_107 = arith.constant 1.000000e+00 : f32
    %347 = vector.broadcast %cst_107 : f32 to vector<16x64xf32>
    %348 = arith.addf %347, %346 : vector<16x64xf32>
    %349 = arith.mulf %338, %348 : vector<16x64xf32>
    %c2_108 = arith.constant 2 : index
    %c0_109 = arith.constant 0 : index
    %c0_110 = arith.constant 0 : index
    %350 = vector.load %arg8[%c2_108, %c0_109, %c0_110] : memref<4x64x32xf32, #tpu.memory_space<vmem>>, vector<1x64x32xf32>
    %351 = vector.shape_cast %350 : vector<1x64x32xf32> to vector<64x32xf32>
    %cst_111 = arith.constant dense<0.000000e+00> : vector<16x32xf32>
    %352 = tpu.matmul %349, %351, %cst_111 {dimension_numbers = #tpu.dot_dimension_numbers<[1], [0], [0], [1], [0, 0, 1, 1], [], []>} : vector<16x64xf32>, vector<64x32xf32>, vector<16x32xf32> -> vector<16x32xf32>
    %353 = vector.extract_strided_slice %0 {offsets = [24, 0], sizes = [1, 32], strides = [1, 1]} : vector<54x32xf32> to vector<1x32xf32>
    %354 = vector.broadcast %353 : vector<1x32xf32> to vector<16x32xf32>
    %355 = arith.addf %352, %354 : vector<16x32xf32>
    %356 = arith.addf %330, %355 : vector<16x32xf32>
    %357 = vector.extract_strided_slice %0 {offsets = [25, 0], sizes = [1, 32], strides = [1, 1]} : vector<54x32xf32> to vector<1x32xf32>
    %358 = vector.extract_strided_slice %0 {offsets = [26, 0], sizes = [1, 32], strides = [1, 1]} : vector<54x32xf32> to vector<1x32xf32>
    %cst_112 = arith.constant dense<0.000000e+00> : vector<16xf32>
    %359 = vector.multi_reduction <add>, %356, %cst_112 [1] : vector<16x32xf32> to vector<16xf32>
    %360 = vector.shape_cast %359 : vector<16xf32> to vector<16x1xf32>
    %cst_113 = arith.constant 3.200000e+01 : f32
    %361 = vector.broadcast %cst_113 : f32 to vector<16x1xf32>
    %362 = arith.divf %360, %361 : vector<16x1xf32>
    %363 = vector.broadcast %362 : vector<16x1xf32> to vector<16x32xf32>
    %364 = arith.subf %356, %363 : vector<16x32xf32>
    %365 = arith.mulf %364, %364 : vector<16x32xf32>
    %cst_114 = arith.constant dense<0.000000e+00> : vector<16xf32>
    %366 = vector.multi_reduction <add>, %365, %cst_114 [1] : vector<16x32xf32> to vector<16xf32>
    %367 = vector.shape_cast %366 : vector<16xf32> to vector<16x1xf32>
    %cst_115 = arith.constant 3.200000e+01 : f32
    %368 = vector.broadcast %cst_115 : f32 to vector<16x1xf32>
    %369 = arith.divf %367, %368 : vector<16x1xf32>
    %370 = vector.broadcast %362 : vector<16x1xf32> to vector<16x32xf32>
    %371 = arith.subf %356, %370 : vector<16x32xf32>
    %cst_116 = arith.constant 9.99999996E-13 : f32
    %372 = vector.broadcast %cst_116 : f32 to vector<16x1xf32>
    %373 = arith.addf %369, %372 : vector<16x1xf32>
    %374 = math.rsqrt %373 : vector<16x1xf32>
    %375 = vector.broadcast %374 : vector<16x1xf32> to vector<16x32xf32>
    %376 = arith.mulf %371, %375 : vector<16x32xf32>
    %377 = vector.broadcast %357 : vector<1x32xf32> to vector<16x32xf32>
    %378 = arith.mulf %376, %377 : vector<16x32xf32>
    %379 = vector.broadcast %358 : vector<1x32xf32> to vector<16x32xf32>
    %380 = arith.addf %378, %379 : vector<16x32xf32>
    %c3 = arith.constant 3 : index
    %c0_117 = arith.constant 0 : index
    %c0_118 = arith.constant 0 : index
    %381 = vector.load %arg5[%c3, %c0_117, %c0_118] : memref<4x32x96xf32, #tpu.memory_space<vmem>>, vector<1x32x96xf32>
    %382 = vector.shape_cast %381 : vector<1x32x96xf32> to vector<32x96xf32>
    %cst_119 = arith.constant dense<0.000000e+00> : vector<16x96xf32>
    %383 = tpu.matmul %380, %382, %cst_119 {dimension_numbers = #tpu.dot_dimension_numbers<[1], [0], [0], [1], [0, 0, 1, 1], [], []>} : vector<16x32xf32>, vector<32x96xf32>, vector<16x96xf32> -> vector<16x96xf32>
    %384 = vector.extract_strided_slice %383 {offsets = [0, 0], sizes = [16, 32], strides = [1, 1]} : vector<16x96xf32> to vector<16x32xf32>
    %385 = vector.extract_strided_slice %0 {offsets = [27, 0], sizes = [1, 32], strides = [1, 1]} : vector<54x32xf32> to vector<1x32xf32>
    %386 = vector.broadcast %385 : vector<1x32xf32> to vector<16x32xf32>
    %387 = arith.addf %384, %386 : vector<16x32xf32>
    %388 = vector.extract_strided_slice %383 {offsets = [0, 32], sizes = [16, 32], strides = [1, 1]} : vector<16x96xf32> to vector<16x32xf32>
    %389 = vector.extract_strided_slice %0 {offsets = [28, 0], sizes = [1, 32], strides = [1, 1]} : vector<54x32xf32> to vector<1x32xf32>
    %390 = vector.broadcast %389 : vector<1x32xf32> to vector<16x32xf32>
    %391 = arith.addf %388, %390 : vector<16x32xf32>
    %392 = vector.extract_strided_slice %383 {offsets = [0, 64], sizes = [16, 32], strides = [1, 1]} : vector<16x96xf32> to vector<16x32xf32>
    %393 = vector.extract_strided_slice %0 {offsets = [29, 0], sizes = [1, 32], strides = [1, 1]} : vector<54x32xf32> to vector<1x32xf32>
    %394 = vector.broadcast %393 : vector<1x32xf32> to vector<16x32xf32>
    %395 = arith.addf %392, %394 : vector<16x32xf32>
    %396 = arith.mulf %387, %13 : vector<16x32xf32>
    %397 = arith.mulf %387, %15 : vector<16x32xf32>
    %398 = tpu.concatenate %396, %397 in 0 : vector<16x32xf32>, vector<16x32xf32> -> vector<32x32xf32>
    %cst_120 = arith.constant 2.500000e-01 : f32
    %399 = vector.broadcast %cst_120 : f32 to vector<32x32xf32>
    %400 = arith.mulf %398, %399 : vector<32x32xf32>
    "tpu.trace_start"() <{level = 10 : i32, message = "md,nd->mn"}> : () -> ()
    %cst_121 = arith.constant dense<0.000000e+00> : vector<32x16xf32>
    %401 = tpu.matmul %400, %391, %cst_121 {dimension_numbers = #tpu.dot_dimension_numbers<[1], [1], [0], [0], [0, 0, 1, 0], [], []>} : vector<32x32xf32>, vector<16x32xf32>, vector<32x16xf32> -> vector<32x16xf32>
    "tpu.trace_stop"() : () -> ()
    %402 = arith.addf %401, %261 : vector<32x16xf32>
    %cst_122 = arith.constant dense<0xFF800000> : vector<32xf32>
    %403 = vector.multi_reduction <maximumf>, %402, %cst_122 [1] : vector<32x16xf32> to vector<32xf32>
    %404 = vector.shape_cast %403 : vector<32xf32> to vector<32x1xf32>
    %405 = vector.broadcast %404 : vector<32x1xf32> to vector<32x16xf32>
    %406 = arith.subf %402, %405 : vector<32x16xf32>
    %407 = math.exp %406 : vector<32x16xf32>
    %cst_123 = arith.constant dense<0.000000e+00> : vector<32xf32>
    %408 = vector.multi_reduction <add>, %407, %cst_123 [1] : vector<32x16xf32> to vector<32xf32>
    %409 = vector.shape_cast %408 : vector<32xf32> to vector<32x1xf32>
    %410 = tpu.reciprocal %409 {approx = true} : vector<32x1xf32> -> vector<32x1xf32>
    %411 = vector.broadcast %410 : vector<32x1xf32> to vector<32x16xf32>
    %412 = arith.mulf %407, %411 : vector<32x16xf32>
    %cst_124 = arith.constant dense<0.000000e+00> : vector<32x32xf32>
    %413 = tpu.matmul %412, %395, %cst_124 {dimension_numbers = #tpu.dot_dimension_numbers<[1], [0], [0], [1], [0, 0, 1, 1], [], []>} : vector<32x16xf32>, vector<16x32xf32>, vector<32x32xf32> -> vector<32x32xf32>
    %414 = vector.extract_strided_slice %413 {offsets = [0, 0], sizes = [16, 32], strides = [1, 1]} : vector<32x32xf32> to vector<16x32xf32>
    %415 = arith.mulf %414, %13 : vector<16x32xf32>
    %416 = vector.extract_strided_slice %413 {offsets = [16, 0], sizes = [16, 32], strides = [1, 1]} : vector<32x32xf32> to vector<16x32xf32>
    %417 = arith.mulf %416, %15 : vector<16x32xf32>
    %418 = arith.addf %415, %417 : vector<16x32xf32>
    %c3_125 = arith.constant 3 : index
    %c0_126 = arith.constant 0 : index
    %c0_127 = arith.constant 0 : index
    %419 = vector.load %arg6[%c3_125, %c0_126, %c0_127] : memref<4x32x32xf32, #tpu.memory_space<vmem>>, vector<1x32x32xf32>
    %420 = vector.shape_cast %419 : vector<1x32x32xf32> to vector<32x32xf32>
    %cst_128 = arith.constant dense<0.000000e+00> : vector<16x32xf32>
    %421 = tpu.matmul %418, %420, %cst_128 {dimension_numbers = #tpu.dot_dimension_numbers<[1], [0], [0], [1], [0, 0, 1, 1], [], []>} : vector<16x32xf32>, vector<32x32xf32>, vector<16x32xf32> -> vector<16x32xf32>
    %422 = vector.extract_strided_slice %0 {offsets = [30, 0], sizes = [1, 32], strides = [1, 1]} : vector<54x32xf32> to vector<1x32xf32>
    %423 = vector.broadcast %422 : vector<1x32xf32> to vector<16x32xf32>
    %424 = arith.addf %421, %423 : vector<16x32xf32>
    %425 = arith.addf %380, %424 : vector<16x32xf32>
    %426 = vector.extract_strided_slice %0 {offsets = [31, 0], sizes = [1, 32], strides = [1, 1]} : vector<54x32xf32> to vector<1x32xf32>
    %427 = vector.extract_strided_slice %0 {offsets = [32, 0], sizes = [1, 32], strides = [1, 1]} : vector<54x32xf32> to vector<1x32xf32>
    %cst_129 = arith.constant dense<0.000000e+00> : vector<16xf32>
    %428 = vector.multi_reduction <add>, %425, %cst_129 [1] : vector<16x32xf32> to vector<16xf32>
    %429 = vector.shape_cast %428 : vector<16xf32> to vector<16x1xf32>
    %cst_130 = arith.constant 3.200000e+01 : f32
    %430 = vector.broadcast %cst_130 : f32 to vector<16x1xf32>
    %431 = arith.divf %429, %430 : vector<16x1xf32>
    %432 = vector.broadcast %431 : vector<16x1xf32> to vector<16x32xf32>
    %433 = arith.subf %425, %432 : vector<16x32xf32>
    %434 = arith.mulf %433, %433 : vector<16x32xf32>
    %cst_131 = arith.constant dense<0.000000e+00> : vector<16xf32>
    %435 = vector.multi_reduction <add>, %434, %cst_131 [1] : vector<16x32xf32> to vector<16xf32>
    %436 = vector.shape_cast %435 : vector<16xf32> to vector<16x1xf32>
    %cst_132 = arith.constant 3.200000e+01 : f32
    %437 = vector.broadcast %cst_132 : f32 to vector<16x1xf32>
    %438 = arith.divf %436, %437 : vector<16x1xf32>
    %439 = vector.broadcast %431 : vector<16x1xf32> to vector<16x32xf32>
    %440 = arith.subf %425, %439 : vector<16x32xf32>
    %cst_133 = arith.constant 9.99999996E-13 : f32
    %441 = vector.broadcast %cst_133 : f32 to vector<16x1xf32>
    %442 = arith.addf %438, %441 : vector<16x1xf32>
    %443 = math.rsqrt %442 : vector<16x1xf32>
    %444 = vector.broadcast %443 : vector<16x1xf32> to vector<16x32xf32>
    %445 = arith.mulf %440, %444 : vector<16x32xf32>
    %446 = vector.broadcast %426 : vector<1x32xf32> to vector<16x32xf32>
    %447 = arith.mulf %445, %446 : vector<16x32xf32>
    %448 = vector.broadcast %427 : vector<1x32xf32> to vector<16x32xf32>
    %449 = arith.addf %447, %448 : vector<16x32xf32>
    %c3_134 = arith.constant 3 : index
    %c0_135 = arith.constant 0 : index
    %c0_136 = arith.constant 0 : index
    %450 = vector.load %arg7[%c3_134, %c0_135, %c0_136] : memref<4x32x64xf32, #tpu.memory_space<vmem>>, vector<1x32x64xf32>
    %451 = vector.shape_cast %450 : vector<1x32x64xf32> to vector<32x64xf32>
    %cst_137 = arith.constant dense<0.000000e+00> : vector<16x64xf32>
    %452 = tpu.matmul %449, %451, %cst_137 {dimension_numbers = #tpu.dot_dimension_numbers<[1], [0], [0], [1], [0, 0, 1, 1], [], []>} : vector<16x32xf32>, vector<32x64xf32>, vector<16x64xf32> -> vector<16x64xf32>
    %453 = vector.extract_strided_slice %1 {offsets = [3, 0], sizes = [1, 64], strides = [1, 1]} : vector<4x64xf32> to vector<1x64xf32>
    %454 = vector.broadcast %453 : vector<1x64xf32> to vector<16x64xf32>
    %455 = arith.addf %452, %454 : vector<16x64xf32>
    %cst_138 = arith.constant 5.000000e-01 : f32
    %456 = vector.broadcast %cst_138 : f32 to vector<16x64xf32>
    %457 = arith.mulf %456, %455 : vector<16x64xf32>
    %cst_139 = arith.constant 4.471500e-02 : f32
    %458 = vector.broadcast %cst_139 : f32 to vector<16x64xf32>
    %459 = arith.mulf %458, %455 : vector<16x64xf32>
    %460 = arith.mulf %459, %455 : vector<16x64xf32>
    %461 = arith.mulf %460, %455 : vector<16x64xf32>
    %462 = arith.addf %455, %461 : vector<16x64xf32>
    %cst_140 = arith.constant 0.797884583 : f32
    %463 = vector.broadcast %cst_140 : f32 to vector<16x64xf32>
    %464 = arith.mulf %463, %462 : vector<16x64xf32>
    %465 = math.tanh %464 : vector<16x64xf32>
    %cst_141 = arith.constant 1.000000e+00 : f32
    %466 = vector.broadcast %cst_141 : f32 to vector<16x64xf32>
    %467 = arith.addf %466, %465 : vector<16x64xf32>
    %468 = arith.mulf %457, %467 : vector<16x64xf32>
    %c3_142 = arith.constant 3 : index
    %c0_143 = arith.constant 0 : index
    %c0_144 = arith.constant 0 : index
    %469 = vector.load %arg8[%c3_142, %c0_143, %c0_144] : memref<4x64x32xf32, #tpu.memory_space<vmem>>, vector<1x64x32xf32>
    %470 = vector.shape_cast %469 : vector<1x64x32xf32> to vector<64x32xf32>
    %cst_145 = arith.constant dense<0.000000e+00> : vector<16x32xf32>
    %471 = tpu.matmul %468, %470, %cst_145 {dimension_numbers = #tpu.dot_dimension_numbers<[1], [0], [0], [1], [0, 0, 1, 1], [], []>} : vector<16x64xf32>, vector<64x32xf32>, vector<16x32xf32> -> vector<16x32xf32>
    %472 = vector.extract_strided_slice %0 {offsets = [33, 0], sizes = [1, 32], strides = [1, 1]} : vector<54x32xf32> to vector<1x32xf32>
    %473 = vector.broadcast %472 : vector<1x32xf32> to vector<16x32xf32>
    %474 = arith.addf %471, %473 : vector<16x32xf32>
    %475 = arith.addf %449, %474 : vector<16x32xf32>
    %476 = vector.extract_strided_slice %0 {offsets = [34, 0], sizes = [1, 32], strides = [1, 1]} : vector<54x32xf32> to vector<1x32xf32>
    %477 = vector.extract_strided_slice %0 {offsets = [35, 0], sizes = [1, 32], strides = [1, 1]} : vector<54x32xf32> to vector<1x32xf32>
    %cst_146 = arith.constant dense<0.000000e+00> : vector<16xf32>
    %478 = vector.multi_reduction <add>, %475, %cst_146 [1] : vector<16x32xf32> to vector<16xf32>
    %479 = vector.shape_cast %478 : vector<16xf32> to vector<16x1xf32>
    %cst_147 = arith.constant 3.200000e+01 : f32
    %480 = vector.broadcast %cst_147 : f32 to vector<16x1xf32>
    %481 = arith.divf %479, %480 : vector<16x1xf32>
    %482 = vector.broadcast %481 : vector<16x1xf32> to vector<16x32xf32>
    %483 = arith.subf %475, %482 : vector<16x32xf32>
    %484 = arith.mulf %483, %483 : vector<16x32xf32>
    %cst_148 = arith.constant dense<0.000000e+00> : vector<16xf32>
    %485 = vector.multi_reduction <add>, %484, %cst_148 [1] : vector<16x32xf32> to vector<16xf32>
    %486 = vector.shape_cast %485 : vector<16xf32> to vector<16x1xf32>
    %cst_149 = arith.constant 3.200000e+01 : f32
    %487 = vector.broadcast %cst_149 : f32 to vector<16x1xf32>
    %488 = arith.divf %486, %487 : vector<16x1xf32>
    %489 = vector.broadcast %481 : vector<16x1xf32> to vector<16x32xf32>
    %490 = arith.subf %475, %489 : vector<16x32xf32>
    %cst_150 = arith.constant 9.99999996E-13 : f32
    %491 = vector.broadcast %cst_150 : f32 to vector<16x1xf32>
    %492 = arith.addf %488, %491 : vector<16x1xf32>
    %493 = math.rsqrt %492 : vector<16x1xf32>
    %494 = vector.broadcast %493 : vector<16x1xf32> to vector<16x32xf32>
    %495 = arith.mulf %490, %494 : vector<16x32xf32>
    %496 = vector.broadcast %476 : vector<1x32xf32> to vector<16x32xf32>
    %497 = arith.mulf %495, %496 : vector<16x32xf32>
    %498 = vector.broadcast %477 : vector<1x32xf32> to vector<16x32xf32>
    %499 = arith.addf %497, %498 : vector<16x32xf32>
    %500 = vector.extract_strided_slice %0 {offsets = [52, 0], sizes = [1, 32], strides = [1, 1]} : vector<54x32xf32> to vector<1x32xf32>
    %501 = vector.extract_strided_slice %0 {offsets = [53, 0], sizes = [1, 1], strides = [1, 1]} : vector<54x32xf32> to vector<1x1xf32>
    %502 = vector.broadcast %500 : vector<1x32xf32> to vector<16x32xf32>
    %503 = arith.mulf %499, %502 : vector<16x32xf32>
    %cst_151 = arith.constant dense<0.000000e+00> : vector<16xf32>
    %504 = vector.multi_reduction <add>, %503, %cst_151 [1] : vector<16x32xf32> to vector<16xf32>
    %505 = vector.shape_cast %504 : vector<16xf32> to vector<16x1xf32>
    %506 = vector.broadcast %501 : vector<1x1xf32> to vector<16x1xf32>
    %507 = arith.addf %505, %506 : vector<16x1xf32>
    %508 = vector.extract_strided_slice %507 {offsets = [0, 0], sizes = [1, 1], strides = [1, 1]} : vector<16x1xf32> to vector<1x1xf32>
    %509 = vector.extract_strided_slice %507 {offsets = [5, 0], sizes = [1, 1], strides = [1, 1]} : vector<16x1xf32> to vector<1x1xf32>
    %510 = tpu.concatenate %508, %509 in 0 : vector<1x1xf32>, vector<1x1xf32> -> vector<2x1xf32>
    %c0_152 = arith.constant 0 : index
    %c0_153 = arith.constant 0 : index
    %511 = vector.load %arg11[%c0_152, %c0_153] : memref<2x1xf32, #tpu.memory_space<vmem>>, vector<2x1xf32>
    tpu.vector_store %arg11[%c0_152, %c0_153], %510 {strides = array<i32>} : memref<2x1xf32, #tpu.memory_space<vmem>>, vector<2x1xf32>,
    return
  }
  func.func @transform_0(%arg0: i32) -> (i32, i32) {
    %c0_i32 = arith.constant 0 : i32
    %c0_i32_0 = arith.constant 0 : i32
    %c0_i32_1 = arith.constant 0 : i32
    return %c0_i32, %c0_i32_0 : i32, i32
  }
  func.func @transform_1(%arg0: i32) -> (i32, i32) {
    %c0_i32 = arith.constant 0 : i32
    %c0_i32_0 = arith.constant 0 : i32
    %c0_i32_1 = arith.constant 0 : i32
    return %c0_i32, %c0_i32_0 : i32, i32
  }
  func.func @transform_2(%arg0: i32) -> (i32, i32) {
    %c0_i32 = arith.constant 0 : i32
    %c0_i32_0 = arith.constant 0 : i32
    %c0_i32_1 = arith.constant 0 : i32
    return %c0_i32, %c0_i32_0 : i32, i32
  }
  func.func @transform_3(%arg0: i32) -> (i32, i32) {
    %c0_i32 = arith.constant 0 : i32
    %c0_i32_0 = arith.constant 0 : i32
    %c0_i32_1 = arith.constant 0 : i32
    return %c0_i32, %c0_i32_0 : i32, i32
  }
  func.func @transform_4(%arg0: i32) -> (i32, i32, i32) {
    %c0_i32 = arith.constant 0 : i32
    %c0_i32_0 = arith.constant 0 : i32
    %c0_i32_1 = arith.constant 0 : i32
    %c0_i32_2 = arith.constant 0 : i32
    return %c0_i32, %c0_i32_0, %c0_i32_1 : i32, i32, i32
  }
  func.func @transform_5(%arg0: i32) -> (i32, i32, i32) {
    %c0_i32 = arith.constant 0 : i32
    %c0_i32_0 = arith.constant 0 : i32
    %c0_i32_1 = arith.constant 0 : i32
    %c0_i32_2 = arith.constant 0 : i32
    return %c0_i32, %c0_i32_0, %c0_i32_1 : i32, i32, i32
  }
  func.func @transform_6(%arg0: i32) -> (i32, i32, i32) {
    %c0_i32 = arith.constant 0 : i32
    %c0_i32_0 = arith.constant 0 : i32
    %c0_i32_1 = arith.constant 0 : i32
    %c0_i32_2 = arith.constant 0 : i32
    return %c0_i32, %c0_i32_0, %c0_i32_1 : i32, i32, i32
  }
  func.func @transform_7(%arg0: i32) -> (i32, i32, i32) {
    %c0_i32 = arith.constant 0 : i32
    %c0_i32_0 = arith.constant 0 : i32
    %c0_i32_1 = arith.constant 0 : i32
    %c0_i32_2 = arith.constant 0 : i32
    return %c0_i32, %c0_i32_0, %c0_i32_1 : i32, i32, i32
  }
  func.func @transform_8(%arg0: i32) -> (i32, i32) {
    %c0_i32 = arith.constant 0 : i32
    %c0_i32_0 = arith.constant 0 : i32
    %c0_i32_1 = arith.constant 0 : i32
    return %c0_i32, %c0_i32_0 : i32, i32
  }
  func.func @transform_9(%arg0: i32) -> (i32, i32) {
    %c0_i32 = arith.constant 0 : i32
    %c0_i32_0 = arith.constant 0 : i32
    %c0_i32_1 = arith.constant 0 : i32
    return %c0_i32, %c0_i32_0 : i32, i32
  }
  func.func @transform_10(%arg0: i32) -> (i32, i32) {
    %c0_i32 = arith.constant 0 : i32
    %c0_i32_0 = arith.constant 0 : i32
    %c0_i32_1 = arith.constant 0 : i32
    return %c0_i32, %c0_i32_0 : i32, i32
  }
}

</mosaic_0001>

<bundles_post_ra>
// kernel: ptparade_forward.1
= control target key start
LH: loop header
LB: loop body
LE: loop exit
PB: predicated region body
PF: predicated region fallthrough
CT: control target
= control target key end

     0   :  { %vm77_vm0 = vcmask 261120   ;;  %v43_v0 = vlaneseq  ;;  %s6666_s25 = smov 32   ;;  %v6667_v29 = vmov 0.0   ;;  %s6668_s20 = smov 96   ;;  %v8567_v58 = vmov 0  ;;  %s8552_s4 = inlined_call_operand.vmem [shape: f32[4,32,96], index: 4, kind: input, shape index: {}]   ;;  %s8553_s0 = inlined_call_operand.vmem [shape: f32[64,32], index: 0, kind: input, shape index: {}]   ;;  %s8554_s8 = inlined_call_operand.vmem [shape: f32[54,32], index: 8, kind: input, shape index: {}]   ;;  %s8555_s1 = inlined_call_operand.vmem [shape: f32[128,64], index: 1, kind: input, shape index: {}]   ;;  %s8556_s5 = inlined_call_operand.vmem [shape: f32[4,32,32], index: 5, kind: input, shape index: {}]   ;;  %s8557_s6 = inlined_call_operand.vmem [shape: f32[4,32,64], index: 6, kind: input, shape index: {}]   ;;  %s8558_s7 = inlined_call_operand.vmem [shape: f32[4,64,32], index: 7, kind: input, shape index: {}]   ;;  %s8559_s9 = inlined_call_operand.vmem [shape: f32[4,64], index: 9, kind: input, shape index: {}]   ;;  %s8560_s3 = inlined_call_operand.vmem [shape: f32[16,64], index: 3, kind: input, shape index: {}]   ;;  %s8561_s2 = inlined_call_operand.vmem [shape: f32[32,16], index: 2, kind: input, shape index: {}]   ;;  %s8562_s10 = inlined_call_operand.vmem [shape: f32[2,1], index: 10, kind: output, shape index: {}]  }
   0x1   :  { %v73_v1 = vld [vmem:[%s8552_s4] sm:$0xff]  ;;  %v74_v2 = vld [vmem:[%s8552_s4 + $0x8] sm:$0xff]  ;;  %v75_v3 = vld [vmem:[%s8552_s4 + $0x10] sm:$0xff]  ;;  %vm516_vm3 = vcmask 523264   ;;  %s6669_s12 = smov 64   ;;  %vm3337_vm4 = vcmask 1043456  }
   0x2   :  { %v5978_v4 = vpack.c.bf16 %v74_v2, %v73_v1  ;;  %v76_v5 = vld [vmem:[%s8552_s4 + $0x18] sm:$0xff]  ;;  %v49_v6 = vld [vmem:[%s8553_s0] sm:$0xff]  ;;  %v6740_v7 = vshrl.u32 %v43_v0, 7  ;;  %v50_v12 = vld [vmem:[%s8553_s0 + $0x8] sm:$0xff]  ;;  %v44_v20 = vand.u32 127, %v43_v0  ;;  %vm3657_vm5 = vcmask 130048  }
   0x3   :  { %v5982_v8 = vpack.c.bf16 %v76_v5, %v75_v3  ;;  %5487 = vmatprep.mubr.msk.f32.mxu1 %vm77_vm0, %v49_v6  ;;  %v6749_v10 = vld [vmem:[%s8554_s8] sm:$0xff]  ;;  %v51_v13 = vld [vmem:[%s8553_s0 + $0x10] sm:$0xff]  ;;  %v52_v14 = vld [vmem:[%s8553_s0 + $0x18] sm:$0xff]  ;;  %vm4938_vm6 = vcmask 1040384   ;;  %vm4940_vm7 = vcmask 1024  }
   0x4   :  { %5979 = vmatprep.subr.bf16.mxu1 %v5978_v4  ;;  %v6744_v9 = vsub.s32 1, %v6740_v7  ;;  %v53_v15 = vld [vmem:[%s8553_s0 + $0x20] sm:$0xff]  ;;  %v54_v16 = vld [vmem:[%s8553_s0 + $0x28] sm:$0xff]  ;;  %v55_v17 = vld [vmem:[%s8553_s0 + $0x30] sm:$0xff]  ;;  %v6783_v19 = vsub.s32 0, %v6740_v7  ;;  %vm45_vm1 = vcmp.lt.s32.totalorder %v44_v20, 16 }
   0x5   :  { %5981 = vmatpush3.bf16.msra.mxu1 %v5978_v4  ;;  %v56_v18 = vld [vmem:[%s8553_s0 + $0x38] sm:$0xff]  ;;  %v6799_v30 = vsel %vm45_vm1, 1.0, %v6667_v29  ;;  %vm6846_vm2 = vmpackc.low %vm77_vm0, %vm77_vm0 }
   0x6   :  { %5983 = vmatprep.subr.bf16.mxu1 %v5982_v8  ;;  %v222_v11 = vrot.slane %v6749_v10, %v6744_v9  ;;  %v210_v21 = vrot.slane %v6749_v10, %v6783_v19  ;;  %v8568_v58 = vsel %vm6846_vm2, 4294967295, %v8567_v58  ;;  %v6879_v20 = vsub.f32 1.0, %v6799_v30 }
   0x7   :  { %8569 = vst [vmem:[#allocation2_spill] sm:$0xff] %v8568_v58 }
   0x8   :  { %224 = vrot.lane.b32.xlu0 %v222_v11, %s6666_s25 }
   0x9   :  { %5985 = vmatpush3.bf16.msra.mxu1 %v5982_v8 }
   0xc   :  { %5488 = vmatmul.mubr.msk.f32.vlgmr.msra.gmra.mrb[0].mxu1 %vm77_vm0, %v50_v12 }
   0xd   :  { %5490 = vmatprep.mubr.msk.f32.mxu1 %vm77_vm0, %v51_v13 }
  0x10   :  { %5491 = vmatmul.mubr.msk.f32.gmra.mrb[2].mxu1 %vm77_vm0, %v52_v14 }
  0x11   :  { %5493 = vmatprep.mubr.msk.f32.mxu1 %vm77_vm0, %v53_v15 }
  0x14   :  { %5494 = vmatmul.mubr.msk.f32.gmra.mrb[4].mxu1 %vm77_vm0, %v54_v16 }
  0x15   :  { %5496 = vmatprep.mubr.msk.f32.mxu1 %vm77_vm0, %v55_v17 }
  0x18   :  { %5497 = vmatmul.mubr.msk.f32.gmra.mrb[6].mxu1 %vm77_vm0, %v56_v18 }
  0x7a   :  { %v225_v22 = vpop.permute.xlu0 %224 }
  0xdf   :  { %v6787_v23 = vpop.f32.mrb[0].mxu1 }
  0xe0   :  { %v6790_v24 = vadd.f32 %v6787_v23, %v210_v21  ;;  %v228_v25 = vadd.f32 %v6787_v23, %v225_v22  ;;  %v6793_v26 = vpop.f32.mrb[1].mxu1 }
  0xe1   :  { %v6796_v27 = vadd.f32 %v210_v21, %v6793_v26  ;;  %v227_v28 = vadd.f32 %v225_v22, %v6793_v26 }
  0xe2   :  { %v252_v11 = vmul.f32 %v6799_v30, %v6790_v24 }
  0xe3   :  { %v251_v31 = vmul.f32 %v6799_v30, %v6796_v27  ;;  %v6803_v32 = vpop.f32.mrb[2].mxu1  ;;  %v6258_v33 = vpack.i.bf16 %v228_v25, %v227_v28  ;;  %v259_v29 = vmul.f32 %v6796_v27, %v6879_v20 }
  0xe4   :  { %v6806_v34 = vadd.f32 %v6803_v32, %v210_v21  ;;  %v6808_v35 = vpop.f32.mrb[3].mxu1  ;;  %v230_v36 = vadd.f32 %v6803_v32, %v225_v22  ;;  %v268_v13 = vmul.f32 0.25, %v252_v11 }
  0xe5   :  { %v267_v37 = vmul.f32 0.25, %v251_v31  ;;  %v6812_v38 = vadd.f32 %v210_v21, %v6808_v35  ;;  %6259 = vrot.lane.b32.xlu0 %v6258_v33, %s6668_s20  ;;  %v229_v39 = vadd.f32 %v225_v22, %v6808_v35  ;;  %v260_v33 = vmul.f32 %v6790_v24, %v6879_v20 }
  0xe6   :  { %v254_v14 = vmul.f32 %v6799_v30, %v6806_v34  ;;  %v262_v27 = vmul.f32 %v6806_v34, %v6879_v20 }
  0xe7   :  { %v6816_v40 = vpop.f32.mrb[4].mxu1  ;;  %5515 = vmatprep.mubr.msk.f32.mxu1 %vm77_vm0, %v267_v37  ;;  %v6263_v41 = vpack.i.bf16 %v230_v36, %v229_v39  ;;  %v253_v12 = vmul.f32 %v6799_v30, %v6812_v38  ;;  %v275_v37 = vmul.f32 0.25, %v259_v29  ;;  %v261_v39 = vmul.f32 %v6812_v38, %v6879_v20 }
  0xe8   :  { %v6820_v42 = vadd.f32 %v6816_v40, %v210_v21  ;;  %v232_v43 = vadd.f32 %v6816_v40, %v225_v22  ;;  %v6823_v44 = vpop.f32.mrb[5].mxu1  ;;  %v270_v17 = vmul.f32 0.25, %v254_v14  ;;  %v278_v24 = vmul.f32 0.25, %v262_v27  ;;  %v64_v14 = vld [vmem:[%s8555_s1 + $0x38] sm:$0xff] }
  0xe9   :  { %v6826_v45 = vadd.f32 %v210_v21, %v6823_v44  ;;  %v231_v46 = vadd.f32 %v225_v22, %v6823_v44  ;;  %6264 = vrot.lane.b32.xlu1 %v6263_v41, %s6668_s20  ;;  %v269_v15 = vmul.f32 0.25, %v253_v12  ;;  %v276_v41 = vmul.f32 0.25, %v260_v33  ;;  %v68_v27 = vld [vmem:[%s8555_s1 + $0x58] sm:$0xff] }
  0xea   :  { %v256_v18 = vmul.f32 %v6799_v30, %v6820_v42  ;;  %v264_v38 = vmul.f32 %v6820_v42, %v6879_v20  ;;  %v58_v42 = vld [vmem:[%s8555_s1 + $0x8] sm:$0xff] }
  0xeb   :  { %v6830_v47 = vpop.f32.mrb[6].mxu1  ;;  %v6268_v48 = vpack.i.bf16 %v232_v43, %v231_v46  ;;  %v255_v16 = vmul.f32 %v6799_v30, %v6826_v45  ;;  %v277_v43 = vmul.f32 0.25, %v261_v39  ;;  %v263_v46 = vmul.f32 %v6826_v45, %v6879_v20 }
  0xec   :  { %v6833_v49 = vadd.f32 %v6830_v47, %v210_v21  ;;  %v234_v50 = vadd.f32 %v6830_v47, %v225_v22  ;;  %v6836_v51 = vpop.f32.mrb[7].mxu1  ;;  %v272_v25 = vmul.f32 0.25, %v256_v18  ;;  %v280_v34 = vmul.f32 0.25, %v264_v38 }
  0xed   :  { %v6839_v52 = vadd.f32 %v210_v21, %v6836_v51  ;;  %v233_v53 = vadd.f32 %v225_v22, %v6836_v51  ;;  %6269 = vrot.lane.b32.xlu1 %v6268_v48, %s6668_s20  ;;  %v271_v21 = vmul.f32 0.25, %v255_v16  ;;  %v279_v48 = vmul.f32 0.25, %v263_v46  ;;  %v63_v16 = vld [vmem:[%s8555_s1 + $0x30] sm:$0xff] }
  0xee   :  { %v258_v28 = vmul.f32 %v6799_v30, %v6833_v49  ;;  %v266_v45 = vmul.f32 %v6833_v49, %v6879_v20  ;;  %v67_v46 = vld [vmem:[%s8555_s1 + $0x50] sm:$0xff] }
  0xef   :  { %v6273_v54 = vpack.i.bf16 %v234_v50, %v233_v53  ;;  %v257_v22 = vmul.f32 %v6799_v30, %v6839_v52  ;;  %v265_v50 = vmul.f32 %v6839_v52, %v6879_v20  ;;  %v57_v52 = vld [vmem:[%s8555_s1] sm:$0xff] }
  0xf0   :  { %v274_v36 = vmul.f32 0.25, %v258_v28  ;;  %v66_v28 = vld [vmem:[%s8555_s1 + $0x48] sm:$0xff] }
  0xf1   :  { %6274 = vrot.lane.b32.xlu0 %v6273_v54, %s6668_s20  ;;  %v273_v31 = vmul.f32 0.25, %v257_v22  ;;  %v281_v53 = vmul.f32 0.25, %v265_v50  ;;  %v282_v54 = vmul.f32 0.25, %v266_v45  ;;  %v70_v45 = vld [vmem:[%s8555_s1 + $0x68] sm:$0xff] }
 0x157   :  { %v6260_v55 = vpop.permute.xlu0 %6259 }
 0x158   :  { %v6262_v56 = vunpack.i.h.bf16 %v6260_v55  ;;  %v6261_v57 = vunpack.i.l.bf16 %v6260_v55 }
 0x15a   :  { %v5986_v59 = vpack.c.bf16 %v6262_v56, %v6261_v57 }
 0x15b   :  { %v6265_v60 = vpop.permute.xlu1 %6264 }
 0x15c   :  { %v6267_v61 = vunpack.i.h.bf16 %v6265_v60  ;;  %v6266_v62 = vunpack.i.l.bf16 %v6265_v60  ;;  %5988 = vmatprep.subr.msk.bf16.mxu1 %vm6846_vm2, %v5986_v59 }
 0x15d   :  { %5991 = vmatpush3.bf16.xpose.msk.msra.mxu1 %vm6846_vm2, %v5986_v59  ;;  %v60_v59 = vld [vmem:[%s8555_s1 + $0x18] sm:$0xff] }
 0x15e   :  { %v5992_v63 = vpack.c.bf16 %v6267_v61, %v6266_v62  ;;  %v59_v61 = vld [vmem:[%s8555_s1 + $0x10] sm:$0xff] }
 0x15f   :  { %v6270_v0 = vpop.permute.xlu1 %6269 }
 0x160   :  { %v6272_v1 = vunpack.i.h.bf16 %v6270_v0  ;;  %v6271_v2 = vunpack.i.l.bf16 %v6270_v0  ;;  %5994 = vmatprep.subr.msk.bf16.mxu1 %vm6846_vm2, %v5992_v63 }
 0x162   :  { %v5998_v3 = vpack.c.bf16 %v6272_v1, %v6271_v2 }
 0x163   :  { %v6275_v4 = vpop.permute.xlu0 %6274 }
 0x164   :  { %v6277_v5 = vunpack.i.h.bf16 %v6275_v4  ;;  %v6276_v6 = vunpack.i.l.bf16 %v6275_v4  ;;  %v61_v4 = vld [vmem:[%s8555_s1 + $0x20] sm:$0xff] }
 0x165   :  { %5997 = vmatpush3.bf16.xpose.msk.msra.mxu1 %vm6846_vm2, %v5992_v63 }
 0x166   :  { %6000 = vmatprep.subr.msk.bf16.mxu1 %vm6846_vm2, %v5998_v3  ;;  %v6004_v8 = vpack.c.bf16 %v6277_v5, %v6276_v6 }
 0x16d   :  { %6003 = vmatpush3.bf16.xpose.msk.msra.mxu1 %vm6846_vm2, %v5998_v3  ;;  %v62_v3 = vld [vmem:[%s8555_s1 + $0x28] sm:$0xff] }
 0x16e   :  { %6006 = vmatprep.subr.msk.bf16.mxu1 %vm6846_vm2, %v6004_v8 }
 0x175   :  { %6009 = vmatpush3.bf16.xpose.msk.msra.mxu1 %vm6846_vm2, %v6004_v8 }
 0x17c   :  { %5516 = vmatmul.mubr.msk.f32.vlgmr.msra.gmra.mrb[8].mxu1 %vm77_vm0, %v268_v13 }
 0x17d   :  { %5518 = vmatprep.mubr.msk.f32.mxu1 %vm77_vm0, %v269_v15 }
 0x180   :  { %5519 = vmatmul.mubr.msk.f32.gmra.mrb[10].mxu1 %vm77_vm0, %v270_v17 }
 0x181   :  { %5521 = vmatprep.mubr.msk.f32.mxu1 %vm77_vm0, %v271_v21 }
 0x184   :  { %5522 = vmatmul.mubr.msk.f32.gmra.mrb[12].mxu1 %vm77_vm0, %v272_v25 }
 0x185   :  { %5524 = vmatprep.mubr.msk.f32.mxu1 %vm77_vm0, %v273_v31  ;;  %v65_v31 = vld [vmem:[%s8555_s1 + $0x40] sm:$0xff] }
 0x188   :  { %5525 = vmatmul.mubr.msk.f32.gmra.mrb[14].mxu1 %vm77_vm0, %v274_v36 }
 0x189   :  { %5527 = vmatprep.mubr.msk.f32.mxu1 %vm77_vm0, %v275_v37 }
 0x18c   :  { %5528 = vmatmul.mubr.msk.f32.gmra.mrb[16].mxu1 %vm77_vm0, %v276_v41 }
 0x18d   :  { %5530 = vmatprep.mubr.msk.f32.mxu1 %vm77_vm0, %v277_v43 }
 0x190   :  { %5531 = vmatmul.mubr.msk.f32.gmra.mrb[18].mxu1 %vm77_vm0, %v278_v24 }
 0x191   :  { %5533 = vmatprep.mubr.msk.f32.mxu1 %vm77_vm0, %v279_v48 }
 0x194   :  { %5534 = vmatmul.mubr.msk.f32.gmra.mrb[20].mxu1 %vm77_vm0, %v280_v34 }
 0x195   :  { %5536 = vmatprep.mubr.msk.f32.mxu1 %vm77_vm0, %v281_v53 }
 0x198   :  { %5537 = vmatmul.mubr.msk.f32.gmra.mrb[22].mxu1 %vm77_vm0, %v282_v54  ;;  %v69_v54 = vld [vmem:[%s8555_s1 + $0x60] sm:$0xff] }
 0x24f   :  { %v5517_v55 = vpop.f32.mrb[8].mxu1 }
 0x250   :  { %v6920_v56 = vadd.f32 %v5517_v55, %v58_v42  ;;  %v437_v49 = vpop.f32.mrb[9].mxu1 }
 0x251   :  { %v6922_v57 = vadd.f32 %v437_v49, %v57_v52 }
 0x252   :  { %v520_v60 = vsel %vm516_vm3, %v6920_v56, -inf }
 0x253   :  { %521 = vmax.xlane.f32.xlu0 %v520_v60  ;;  %v5520_v62 = vpop.f32.mrb[10].mxu1  ;;  %v517_v63 = vsel %vm516_vm3, %v6922_v57, -inf }
 0x254   :  { %v6934_v0 = vadd.f32 %v5520_v62, %v60_v59  ;;  %v447_v1 = vpop.f32.mrb[11].mxu1  ;;  %518 = vmax.xlane.f32.xlu1 %v517_v63 }
 0x255   :  { %v6936_v2 = vadd.f32 %v447_v1, %v59_v61  ;;  %v7014_v1 = vsub.s32 2, %v6740_v7 }
 0x256   :  { %v526_v5 = vsel %vm516_vm3, %v6934_v0, -inf }
 0x257   :  { %v5523_v6 = vpop.f32.mrb[12].mxu1  ;;  %v523_v8 = vsel %vm516_vm3, %v6936_v2, -inf  ;;  %8570 = vst [vmem:[#allocation3_spill] sm:$0xff] %v7014_v1 }
 0x258   :  { %v6948_v11 = vadd.f32 %v5523_v6, %v62_v3  ;;  %v457_v12 = vpop.f32.mrb[13].mxu1  ;;  %524 = vmax.xlane.f32.xlu0 %v523_v8  ;;  %527 = vmax.xlane.f32.xlu1 %v526_v5  ;;  %v238_v3 = vrot.slane %v6749_v10, %v7014_v1 }
 0x259   :  { %v6950_v13 = vadd.f32 %v457_v12, %v61_v4 }
 0x25a   :  { %v532_v15 = vsel %vm516_vm3, %v6948_v11, -inf }
 0x25b   :  { %v5526_v17 = vpop.f32.mrb[14].mxu1  ;;  %v529_v18 = vsel %vm516_vm3, %v6950_v13, -inf }
 0x25c   :  { %v6962_v21 = vadd.f32 %v5526_v17, %v64_v14  ;;  %530 = vmax.xlane.f32.xlu0 %v529_v18  ;;  %533 = vmax.xlane.f32.xlu1 %v532_v15  ;;  %v467_v22 = vpop.f32.mrb[15].mxu1 }
 0x25d   :  { %v6964_v25 = vadd.f32 %v467_v22, %v63_v16 }
 0x25e   :  { %v538_v29 = vsel %vm516_vm3, %v6962_v21, -inf }
 0x25f   :  { %v5529_v33 = vpop.f32.mrb[16].mxu1  ;;  %v535_v36 = vsel %vm516_vm3, %v6964_v25, -inf }
 0x260   :  { %v6976_v37 = vadd.f32 %v5529_v33, %v66_v28  ;;  %539 = vmax.xlane.f32.xlu1 %v538_v29  ;;  %v477_v39 = vpop.f32.mrb[17].mxu1  ;;  %536 = vmax.xlane.f32.xlu0 %v535_v36 }
 0x261   :  { %v6978_v41 = vadd.f32 %v477_v39, %v65_v31 }
 0x262   :  { %v544_v43 = vsel %vm516_vm3, %v6976_v37, -inf }
 0x263   :  { %v5532_v24 = vpop.f32.mrb[18].mxu1  ;;  %v541_v38 = vsel %vm516_vm3, %v6978_v41, -inf }
 0x264   :  { %v6990_v48 = vadd.f32 %v5532_v24, %v68_v27  ;;  %545 = vmax.xlane.f32.xlu1 %v544_v43  ;;  %v487_v50 = vpop.f32.mrb[19].mxu1  ;;  %542 = vmax.xlane.f32.xlu0 %v541_v38 }
 0x265   :  { %v6992_v34 = vadd.f32 %v487_v50, %v67_v46 }
 0x266   :  { %v550_v53 = vsel %vm516_vm3, %v6990_v48, -inf }
 0x267   :  { %v5535_v42 = vpop.f32.mrb[20].mxu1  ;;  %v547_v52 = vsel %vm516_vm3, %v6992_v34, -inf }
 0x268   :  { %v7004_v55 = vadd.f32 %v5535_v42, %v70_v45  ;;  %551 = vmax.xlane.f32.xlu1 %v550_v53  ;;  %v497_v49 = vpop.f32.mrb[21].mxu1  ;;  %548 = vmax.xlane.f32.xlu0 %v547_v52 }
 0x269   :  { %v498_v59 = vadd.f32 %v497_v49, %v69_v54 }
 0x26a   :  { %v556_v60 = vsel %vm516_vm3, %v7004_v55, -inf }
 0x26b   :  { %v7008_v61 = vpop.f32.mrb[22].mxu1  ;;  %v553_v62 = vsel %vm516_vm3, %v498_v59, -inf }
 0x26c   :  { %557 = vmax.xlane.f32.xlu1 %v556_v60  ;;  %v7011_v63 = vpop.f32.mrb[23].mxu1  ;;  %554 = vmax.xlane.f32.xlu0 %v553_v62 }
 0x282   :  { %240 = vrot.lane.b32.xlu0 %v238_v3, %s6669_s12 }
 0x2e0   :  { %v522_v4 = vpop.xlane.xlu0 %521 }
 0x2e1   :  { %v519_v15 = vpop.xlane.xlu1 %518  ;;  %v566_v53 = vsub.f32 %v6920_v56, %v522_v4  ;;  %v71_v4 = vld [vmem:[%s8555_s1 + $0x70] sm:$0xff] }
 0x2e3   :  { %v583_v49 = vmul.f32 1.442695, %v566_v53 }
 0x2e5   :  { %v7019_v5 = vpop.xlane.xlu0 %524  ;;  %v528_v17 = vpop.xlane.xlu1 %527 }
 0x2e6   :  { %v568_v3 = vsub.f32 %v6934_v0, %v528_v17 }
 0x2e8   :  { %v587_v0 = vmul.f32 1.442695, %v568_v3 }
 0x2e9   :  { %v531_v6 = vpop.xlane.xlu0 %530  ;;  %v534_v43 = vpop.xlane.xlu1 %533 }
 0x2ed   :  { %v7021_v8 = vpop.xlane.xlu0 %536 }
 0x2f1   :  { %v543_v12 = vpop.xlane.xlu0 %542 }
 0x2f2   :  { %v573_v24 = vsub.f32 %v6978_v41, %v543_v12  ;;  %v72_v41 = vld [vmem:[%s8555_s1 + $0x78] sm:$0xff] }
 0x2f4   :  { %v597_v50 = vmul.f32 1.442695, %v573_v24 }
 0x2f5   :  { %v7023_v14 = vpop.xlane.xlu0 %548 }
 0x2f9   :  { %v555_v16 = vpop.xlane.xlu0 %554 }
 0x2fa   :  { %v577_v42 = vsub.f32 %v498_v59, %v555_v16 }
 0x2fc   :  { %v605_v62 = vmul.f32 1.442695, %v577_v42 }
 0x2fd   :  { %v241_v18 = vpop.permute.xlu0 %240 }
 0x2fe   :  { %v245_v22 = vadd.f32 %v241_v18, %v6808_v35  ;;  %v246_v10 = vadd.f32 %v6803_v32, %v241_v18  ;;  %v243_v28 = vadd.f32 %v241_v18, %v6793_v26  ;;  %v244_v29 = vadd.f32 %v6787_v23, %v241_v18  ;;  %v540_v32 = vpop.xlane.xlu1 %539 }
 0x2ff   :  { %v7030_v31 = vadd.f32 %v241_v18, %v6823_v44  ;;  %v7033_v36 = vadd.f32 %v6816_v40, %v241_v18  ;;  %v7036_v39 = vadd.f32 %v241_v18, %v6836_v51  ;;  %v7039_v27 = vadd.f32 %v6830_v47, %v241_v18 }
 0x300   :  { %v6283_v33 = vpack.i.bf16 %v246_v10, %v245_v22  ;;  %v6278_v35 = vpack.i.bf16 %v244_v29, %v243_v28  ;;  %v569_v40 = vsub.f32 %v6950_v13, %v531_v6  ;;  %v572_v47 = vsub.f32 %v6962_v21, %v540_v32 }
 0x301   :  { %v6288_v23 = vpack.i.bf16 %v7033_v36, %v7030_v31  ;;  %v6293_v26 = vpack.i.bf16 %v7039_v27, %v7036_v39  ;;  %v565_v21 = vsub.f32 %v6922_v57, %v519_v15  ;;  %v7067_v57 = vadd.f32 %v7008_v61, %v72_v41 }
 0x302   :  { %6284 = vrot.lane.b32.xlu0 %v6283_v33, %s6669_s12  ;;  %6279 = vrot.lane.b32.xlu1 %v6278_v35, %s6669_s12  ;;  %v7048_v44 = vpop.xlane.xlu1 %545  ;;  %v589_v51 = vmul.f32 1.442695, %v569_v40  ;;  %v595_v46 = vmul.f32 1.442695, %v572_v47  ;;  %v567_v15 = vsub.f32 %v6936_v2, %v7019_v5  ;;  %v7079_v61 = vadd.f32 %v7011_v63, %v71_v4 }
 0x303   :  { %v581_v59 = vmul.f32 1.442695, %v565_v21  ;;  %v562_v16 = vsel %vm516_vm3, %v7067_v57, -inf  ;;  %v570_v10 = vsub.f32 %v6948_v11, %v534_v43  ;;  %v571_v33 = vsub.f32 %v6964_v25, %v7021_v8 }
 0x304   :  { %6358 = vpow2.f32 %v589_v51  ;;  %v585_v22 = vmul.f32 1.442695, %v567_v15  ;;  %v559_v2 = vsel %vm516_vm3, %v7079_v61, -inf  ;;  %v574_v51 = vsub.f32 %v6976_v37, %v7048_v44 }
 0x305   :  { %6360 = vpow2.f32 %v595_v46  ;;  %v591_v29 = vmul.f32 1.442695, %v570_v10  ;;  %v593_v40 = vmul.f32 1.442695, %v571_v33 }
 0x306   :  { %v552_v38 = vpop.xlane.xlu1 %551  ;;  %6362 = vpow2.f32 %v597_v50  ;;  %v599_v46 = vmul.f32 1.442695, %v574_v51 }
 0x307   :  { %v576_v45 = vsub.f32 %v6990_v48, %v552_v38 }
 0x309   :  { %v603_v54 = vmul.f32 1.442695, %v576_v45 }
 0x30a   :  { %v558_v13 = vpop.xlane.xlu1 %557 }
 0x30b   :  { %6364 = vpow2.f32 %v603_v54  ;;  %v578_v60 = vsub.f32 %v7004_v55, %v558_v13  ;;  %v575_v13 = vsub.f32 %v6992_v34, %v7023_v14 }
 0x30c   :  { %6366 = vpow2.f32 %v583_v49 }
 0x30d   :  { %v607_v6 = vmul.f32 1.442695, %v578_v60  ;;  %6368 = vpow2.f32 %v605_v62  ;;  %v601_v49 = vmul.f32 1.442695, %v575_v13 }
 0x30e   :  { %v7054_v52 = vpop.eup %6358  ;;  %6370 = vpow2.f32 %v581_v59 }
 0x30f   :  { %v625_v56 = vsel %vm516_vm3, %v7054_v52, 0.0  ;;  %v7063_v48 = vpop.eup %6360  ;;  %6372 = vpow2.f32 %v607_v6 }
 0x310   :  { %v634_v55 = vsel %vm516_vm3, %v7063_v48, 0.0  ;;  %v7074_v12 = vpop.eup %6362  ;;  %6374 = vpow2.f32 %v587_v0 }
 0x311   :  { %v637_v17 = vsel %vm516_vm3, %v7074_v12, 0.0  ;;  %6376 = vpow2.f32 %v585_v22 }
 0x312   :  { %6378 = vpow2.f32 %v591_v29 }
 0x313   :  { %6380 = vpow2.f32 %v593_v40 }
 0x314   :  { %6382 = vpow2.f32 %v599_v46 }
 0x315   :  { %v7085_v18 = vpop.eup %6364  ;;  %6384 = vpow2.f32 %v601_v49 }
 0x316   :  { %v7090_v63 = vpop.eup %6366  ;;  %v646_v5 = vsel %vm516_vm3, %v7085_v18, 0.0 }
 0x317   :  { %v7094_v28 = vpop.eup %6368  ;;  %v616_v11 = vsel %vm516_vm3, %v7090_v63, 0.0 }
 0x318   :  { %v7100_v35 = vpop.eup %6370  ;;  %v649_v43 = vsel %vm516_vm3, %v7094_v28, 0.0 }
 0x319   :  { %v7104_v32 = vpop.eup %6372  ;;  %v613_v25 = vsel %vm516_vm3, %v7100_v35, 0.0 }
 0x31a   :  { %v7110_v8 = vpop.eup %6374  ;;  %v652_v47 = vsel %vm516_vm3, %v7104_v32, 0.0 }
 0x31b   :  { %v622_v24 = vsel %vm516_vm3, %v7110_v8, 0.0  ;;  %v7116_v38 = vpop.eup %6376 }
 0x31c   :  { %v619_v37 = vsel %vm516_vm3, %v7116_v38, 0.0  ;;  %v7120_v44 = vpop.eup %6378 }
 0x31d   :  { %v628_v50 = vsel %vm516_vm3, %v7120_v44, 0.0  ;;  %v7124_v45 = vpop.eup %6380 }
 0x31e   :  { %v631_v53 = vsel %vm516_vm3, %v7124_v45, 0.0  ;;  %v7128_v54 = vpop.eup %6382 }
 0x31f   :  { %v640_v42 = vsel %vm516_vm3, %v7128_v54, 0.0  ;;  %v7142_v36 = vpop.eup %6384 }
 0x320   :  { %v643_v39 = vsel %vm516_vm3, %v7142_v36, 0.0 }
 0x321   :  { %626 = vadd.xlane.f32.xlu0 %v625_v56 }
 0x325   :  { %635 = vadd.xlane.f32.xlu0 %v634_v55 }
 0x326   :  { %563 = vmax.xlane.f32.xlu1 %v562_v16 }
 0x329   :  { %638 = vadd.xlane.f32.xlu0 %v637_v17 }
 0x32a   :  { %560 = vmax.xlane.f32.xlu1 %v559_v2 }
 0x32d   :  { %647 = vadd.xlane.f32.xlu0 %v646_v5 }
 0x32e   :  { %617 = vadd.xlane.f32.xlu1 %v616_v11 }
 0x331   :  { %650 = vadd.xlane.f32.xlu0 %v649_v43 }
 0x332   :  { %614 = vadd.xlane.f32.xlu1 %v613_v25 }
 0x335   :  { %653 = vadd.xlane.f32.xlu0 %v652_v47 }
 0x336   :  { %623 = vadd.xlane.f32.xlu1 %v622_v24 }
 0x33a   :  { %620 = vadd.xlane.f32.xlu1 %v619_v37 }
 0x33e   :  { %629 = vadd.xlane.f32.xlu1 %v628_v50 }
 0x342   :  { %632 = vadd.xlane.f32.xlu1 %v631_v53 }
 0x346   :  { %641 = vadd.xlane.f32.xlu1 %v640_v42 }
 0x357   :  { %6289 = vrot.lane.b32.xlu1 %v6288_v23, %s6669_s12 }
 0x35b   :  { %6294 = vrot.lane.b32.xlu1 %v6293_v26, %s6669_s12 }
 0x374   :  { %v6285_v21 = vpop.permute.xlu0 %6284  ;;  %v6280_v41 = vpop.permute.xlu1 %6279 }
 0x375   :  { %v6287_v60 = vunpack.i.h.bf16 %v6285_v21  ;;  %v6286_v62 = vunpack.i.l.bf16 %v6285_v21  ;;  %v6282_v56 = vunpack.i.h.bf16 %v6280_v41  ;;  %v6281_v59 = vunpack.i.l.bf16 %v6280_v41 }
 0x377   :  { %v6010_v3 = vpack.c.bf16 %v6282_v56, %v6281_v59  ;;  %v6014_v31 = vpack.c.bf16 %v6287_v60, %v6286_v62 }
 0x379   :  { %6011 = vmatprep.subr.bf16.mxu0 %v6010_v3 }
 0x37a   :  { %6013 = vmatpush3.bf16.msra.mxu0 %v6010_v3 }
 0x37b   :  { %6015 = vmatprep.subr.bf16.mxu0 %v6014_v31 }
 0x37e   :  { %6017 = vmatpush3.bf16.msra.mxu0 %v6014_v31 }
 0x37f   :  { %644 = vadd.xlane.f32.xlu1 %v643_v39 }
 0x3ae   :  { %v627_v29 = vpop.xlane.xlu0 %626 }
 0x3b2   :  { %v636_v51 = vpop.xlane.xlu0 %635 }
 0x3b3   :  { %v564_v34 = vpop.xlane.xlu1 %563 }
 0x3b4   :  { %v580_v14 = vsub.f32 %v7067_v57, %v564_v34 }
 0x3b6   :  { %v611_v26 = vmul.f32 1.442695, %v580_v14  ;;  %v639_v50 = vpop.xlane.xlu0 %638 }
 0x3b7   :  { %v561_v27 = vpop.xlane.xlu1 %560 }
 0x3b8   :  { %v579_v23 = vsub.f32 %v7079_v61, %v561_v27 }
 0x3ba   :  { %v609_v4 = vmul.f32 1.442695, %v579_v23 }
 0x3bb   :  { %v618_v6 = vpop.xlane.xlu1 %617 }
 0x3bc   :  { %6386 = vpow2.f32 %v609_v4 }
 0x3bd   :  { %6388 = vpow2.f32 %v611_v26 }
 0x3bf   :  { %v615_v55 = vpop.xlane.xlu1 %614 }
 0x3c0   :  { %6390 = vrcp.f32 %v615_v55  ;;  %v942_v55 = vld [vmem:[%s8556_s5] sm:$0xff] }
 0x3c1   :  { %6392 = vrcp.f32 %v618_v6 }
 0x3c3   :  { %v624_v15 = vpop.xlane.xlu1 %623 }
 0x3c6   :  { %v7148_v0 = vpop.eup %6386 }
 0x3c7   :  { %v621_v16 = vpop.xlane.xlu1 %620  ;;  %v655_v17 = vsel %vm516_vm3, %v7148_v0, 0.0  ;;  %v7152_v22 = vpop.eup %6388 }
 0x3c8   :  { %656 = vadd.xlane.f32.xlu0 %v655_v17  ;;  %v658_v61 = vsel %vm516_vm3, %v7152_v22, 0.0  ;;  %6394 = vrcp.f32 %v621_v16 }
 0x3c9   :  { %6396 = vrcp.f32 %v624_v15 }
 0x3ca   :  { %v6391_v57 = vpop.eup %6390  ;;  %6398 = vrcp.f32 %v627_v29 }
 0x3cb   :  { %v630_v10 = vpop.xlane.xlu1 %629  ;;  %v677_v2 = vmul.f32 %v6391_v57, %v7100_v35  ;;  %v6393_v37 = vpop.eup %6392 }
 0x3cc   :  { %659 = vadd.xlane.f32.xlu0 %v658_v61  ;;  %6400 = vrcp.f32 %v630_v10  ;;  %v678_v42 = vmul.f32 %v6393_v37, %v7090_v63 }
 0x3cd   :  { %5555 = vmatprep.mubr.msk.f32.mxu0 %vm516_vm3, %v677_v2 }
 0x3cf   :  { %v633_v5 = vpop.xlane.xlu1 %632 }
 0x3d0   :  { %6402 = vrcp.f32 %v633_v5 }
 0x3d1   :  { %6404 = vrcp.f32 %v636_v51 }
 0x3d2   :  { %v6395_v53 = vpop.eup %6394  ;;  %6406 = vrcp.f32 %v639_v50 }
 0x3d3   :  { %v642_v33 = vpop.xlane.xlu1 %641  ;;  %v6397_v13 = vpop.eup %6396  ;;  %v679_v49 = vmul.f32 %v6395_v53, %v7116_v38 }
 0x3d4   :  { %v6399_v21 = vpop.eup %6398  ;;  %6408 = vrcp.f32 %v642_v33  ;;  %v680_v41 = vmul.f32 %v6397_v13, %v7110_v8 }
 0x3d5   :  { %v681_v62 = vmul.f32 %v6399_v21, %v7054_v52 }
 0x3d6   :  { %v6401_v60 = vpop.eup %6400 }
 0x3d7   :  { %v6290_v11 = vpop.permute.xlu1 %6289  ;;  %v682_v63 = vmul.f32 %v6401_v60, %v7120_v44  ;;  %v648_v44 = vpop.xlane.xlu0 %647 }
 0x3d8   :  { %v6292_v43 = vunpack.i.h.bf16 %v6290_v11  ;;  %v6291_v40 = vunpack.i.l.bf16 %v6290_v11  ;;  %6410 = vrcp.f32 %v648_v44 }
 0x3da   :  { %v6018_v25 = vpack.c.bf16 %v6292_v43, %v6291_v40  ;;  %v6403_v56 = vpop.eup %6402 }
 0x3db   :  { %v6295_v47 = vpop.permute.xlu1 %6294  ;;  %v6405_v59 = vpop.eup %6404  ;;  %v683_v38 = vmul.f32 %v6403_v56, %v7124_v45 }
 0x3dc   :  { %v6297_v46 = vunpack.i.h.bf16 %v6295_v47  ;;  %v6296_v24 = vunpack.i.l.bf16 %v6295_v47  ;;  %6019 = vmatprep.subr.bf16.mxu0 %v6018_v25  ;;  %v6407_v3 = vpop.eup %6406  ;;  %v684_v8 = vmul.f32 %v6405_v59, %v7063_v48  ;;  %v651_v45 = vpop.xlane.xlu0 %650 }
 0x3dd   :  { %6021 = vmatpush3.bf16.msra.mxu0 %v6018_v25  ;;  %v685_v52 = vmul.f32 %v6407_v3, %v7074_v12  ;;  %6412 = vrcp.f32 %v651_v45 }
 0x3de   :  { %v6022_v35 = vpack.c.bf16 %v6297_v46, %v6296_v24  ;;  %v6409_v31 = vpop.eup %6408 }
 0x3df   :  { %v686_v39 = vmul.f32 %v6409_v31, %v7128_v54 }
 0x3e0   :  { %6023 = vmatprep.subr.bf16.mxu0 %v6022_v35  ;;  %v654_v14 = vpop.xlane.xlu0 %653 }
 0x3e1   :  { %6025 = vmatpush3.bf16.msra.mxu0 %v6022_v35 }
 0x3e2   :  { %v6411_v48 = vpop.eup %6410 }
 0x3e3   :  { %v688_v26 = vmul.f32 %v6411_v48, %v7085_v18  ;;  %v943_v18 = vld [vmem:[%s8556_s5 + $0x8] sm:$0xff] }
 0x3e4   :  { %5556 = vmatmul.mubr.msk.f32.vlgmr.msra.gmra.mrb[0].mxu0 %vm516_vm3, %v678_v42 }
 0x3e5   :  { %5558 = vmatprep.mubr.msk.f32.mxu0 %vm516_vm3, %v679_v49 }
 0x3e7   :  { %v6413_v27 = vpop.eup %6412 }
 0x3e8   :  { %5559 = vmatmul.mubr.msk.f32.gmra.mrb[2].mxu0 %vm516_vm3, %v680_v41  ;;  %v689_v54 = vmul.f32 %v6413_v27, %v7094_v28  ;;  %v944_v28 = vld [vmem:[%s8556_s5 + $0x10] sm:$0xff] }
 0x3e9   :  { %5561 = vmatprep.mubr.msk.f32.mxu0 %vm516_vm3, %v681_v62 }
 0x3ec   :  { %5562 = vmatmul.mubr.msk.f32.gmra.mrb[4].mxu0 %vm516_vm3, %v682_v63 }
 0x3ed   :  { %5564 = vmatprep.mubr.msk.f32.mxu0 %vm516_vm3, %v683_v38 }
 0x3f0   :  { %5565 = vmatmul.mubr.msk.f32.gmra.mrb[6].mxu0 %vm516_vm3, %v684_v8 }
 0x3f1   :  { %5567 = vmatprep.mubr.msk.f32.mxu0 %vm516_vm3, %v685_v52 }
 0x3f4   :  { %5568 = vmatmul.mubr.msk.f32.gmra.mrb[8].mxu0 %vm516_vm3, %v686_v39 }
 0x40c   :  { %v645_v34 = vpop.xlane.xlu1 %644 }
 0x40d   :  { %6414 = vrcp.f32 %v645_v34 }
 0x40e   :  { %6416 = vrcp.f32 %v654_v14 }
 0x417   :  { %v6415_v23 = vpop.eup %6414 }
 0x418   :  { %v687_v12 = vmul.f32 %v6415_v23, %v7142_v36  ;;  %v6417_v4 = vpop.eup %6416  ;;  %v6026_v36 = vpack.c.bf16 %v943_v18, %v942_v55 }
 0x419   :  { %v690_v6 = vmul.f32 %v6417_v4, %v7104_v32  ;;  %v945_v32 = vld [vmem:[%s8556_s5 + $0x18] sm:$0xff] }
 0x41a   :  { %5570 = vmatprep.mubr.msk.f32.mxu0 %vm516_vm3, %v687_v12  ;;  %6027 = vmatprep.subr.bf16.mxu0 %v6026_v36  ;;  %v6030_v15 = vpack.c.bf16 %v945_v32, %v944_v28  ;;  %v7225_v12 = vsub.s32 3, %v6740_v7 }
 0x41b   :  { %5571 = vmatmul.mubr.msk.f32.gmra.mrb[10].mxu0 %vm516_vm3, %v688_v26  ;;  %v7230_v26 = vld [vmem:[%s8554_s8] sm:$0xff] }
 0x41c   :  { %5573 = vmatprep.mubr.msk.f32.mxu0 %vm516_vm3, %v689_v54  ;;  %6029 = vmatpush3.bf16.msra.mxu0 %v6026_v36  ;;  %v949_v4 = vrot.slane %v7230_v26, %v7225_v12  ;;  %v6637_v36 = vld [vmem:[%s8553_s0] sm:$0xff] }
 0x41d   :  { %6031 = vmatprep.subr.bf16.mxu0 %v6030_v15 }
 0x41f   :  { %5574 = vmatmul.mubr.msk.f32.gmra.mrb[12].mxu0 %vm516_vm3, %v690_v6 }
 0x420   :  { %6033 = vmatpush3.bf16.msra.mxu0 %v6030_v15  ;;  %v6638_v15 = vld [vmem:[%s8553_s0 + $0x8] sm:$0xff] }
 0x455   :  { %v657_v16 = vpop.xlane.xlu0 %656 }
 0x456   :  { %6418 = vrcp.f32 %v657_v16 }
 0x459   :  { %v660_v17 = vpop.xlane.xlu0 %659 }
 0x45a   :  { %6420 = vrcp.f32 %v660_v17 }
 0x460   :  { %v6419_v57 = vpop.eup %6418 }
 0x461   :  { %v691_v10 = vmul.f32 %v6419_v57, %v7148_v0 }
 0x463   :  { %5576 = vmatprep.mubr.msk.f32.mxu0 %vm516_vm3, %v691_v10 }
 0x464   :  { %v6421_v61 = vpop.eup %6420 }
 0x465   :  { %v692_v2 = vmul.f32 %v6421_v61, %v7152_v22 }
 0x467   :  { %5577 = vmatmul.mubr.msk.f32.gmra.mrb[14].mxu0 %vm516_vm3, %v692_v2 }
 0x4b7   :  { %v5557_v5 = vpop.f32.mrb[0].mxu0 }
 0x4b8   :  { %v839_v29 = vpop.f32.mrb[1].mxu0  ;;  %v919_v46 = vmul.f32 %v5557_v5, %v6799_v30 }
 0x4b9   :  { %v918_v35 = vmul.f32 %v6799_v30, %v839_v29  ;;  %v6639_v29 = vld [vmem:[%s8553_s0 + $0x10] sm:$0xff] }
 0x4bb   :  { %v5560_v33 = vpop.f32.mrb[2].mxu0 }
 0x4bc   :  { %v849_v11 = vpop.f32.mrb[3].mxu0  ;;  %v921_v42 = vmul.f32 %v5560_v33, %v6799_v30 }
 0x4bd   :  { %v920_v21 = vmul.f32 %v6799_v30, %v849_v11 }
 0x4bf   :  { %v5563_v43 = vpop.f32.mrb[4].mxu0 }
 0x4c0   :  { %v859_v40 = vpop.f32.mrb[5].mxu0  ;;  %v923_v63 = vmul.f32 %v5563_v43, %v6799_v30 }
 0x4c1   :  { %v922_v3 = vmul.f32 %v6799_v30, %v859_v40 }
 0x4c3   :  { %v5566_v51 = vpop.f32.mrb[6].mxu0 }
 0x4c4   :  { %v869_v25 = vpop.f32.mrb[7].mxu0  ;;  %v925_v44 = vmul.f32 %v5566_v51, %v6799_v30 }
 0x4c5   :  { %v924_v14 = vmul.f32 %v6799_v30, %v869_v25  ;;  %v6640_v25 = vld [vmem:[%s8553_s0 + $0x18] sm:$0xff] }
 0x4c7   :  { %v5569_v47 = vpop.f32.mrb[8].mxu0 }
 0x4c8   :  { %v927_v0 = vmul.f32 %v5569_v47, %v6879_v20  ;;  %v879_v24 = vpop.f32.mrb[9].mxu0 }
 0x4c9   :  { %v926_v22 = vmul.f32 %v879_v24, %v6879_v20 }
 0x4ca   :  { %v935_v37 = vadd.f32 %v927_v0, %v919_v46  ;;  %v6641_v46 = vld [vmem:[%s8553_s0 + $0x20] sm:$0xff] }
 0x4cb   :  { %v934_v50 = vadd.f32 %v926_v22, %v918_v35  ;;  %v6642_v22 = vld [vmem:[%s8553_s0 + $0x28] sm:$0xff] }
 0x4cd   :  { %5587 = vmatprep.mubr.msk.f32.mxu0 %vm77_vm0, %v934_v50 }
 0x4ce   :  { %5588 = vmatmul.mubr.msk.f32.vlgmr.msra.gmra.mrb[16].mxu0 %vm77_vm0, %v935_v37 }
 0x4ee   :  { %v5572_v53 = vpop.f32.mrb[10].mxu0 }
 0x4ef   :  { %v929_v13 = vmul.f32 %v5572_v53, %v6879_v20  ;;  %v889_v49 = vpop.f32.mrb[11].mxu0 }
 0x4f0   :  { %v928_v41 = vmul.f32 %v889_v49, %v6879_v20 }
 0x4f1   :  { %v937_v60 = vadd.f32 %v929_v13, %v921_v42 }
 0x4f2   :  { %v936_v62 = vadd.f32 %v928_v41, %v920_v21  ;;  %v5575_v56 = vpop.f32.mrb[12].mxu0  ;;  %v6643_v21 = vld [vmem:[%s8553_s0 + $0x38] sm:$0xff] }
 0x4f3   :  { %v931_v59 = vmul.f32 %v5575_v56, %v6879_v20  ;;  %v899_v38 = vpop.f32.mrb[13].mxu0 }
 0x4f4   :  { %v930_v8 = vmul.f32 %v899_v38, %v6879_v20  ;;  %5590 = vmatprep.mubr.msk.f32.mxu0 %vm77_vm0, %v936_v62 }
 0x4f5   :  { %v939_v31 = vadd.f32 %v931_v59, %v923_v63  ;;  %5591 = vmatmul.mubr.msk.f32.gmra.mrb[18].mxu0 %vm77_vm0, %v937_v60  ;;  %v6644_v60 = vld [vmem:[%s8553_s0 + $0x30] sm:$0xff] }
 0x4f6   :  { %v938_v52 = vadd.f32 %v930_v8, %v922_v3 }
 0x4f8   :  { %5593 = vmatprep.mubr.msk.f32.mxu0 %vm77_vm0, %v938_v52 }
 0x4f9   :  { %5594 = vmatmul.mubr.msk.f32.gmra.mrb[20].mxu0 %vm77_vm0, %v939_v31 }
 0x53a   :  { %v5578_v39 = vpop.f32.mrb[14].mxu0 }
 0x53b   :  { %v933_v45 = vmul.f32 %v5578_v39, %v6879_v20  ;;  %v909_v34 = vpop.f32.mrb[15].mxu0 }
 0x53c   :  { %v932_v48 = vmul.f32 %v909_v34, %v6879_v20 }
 0x53d   :  { %v941_v27 = vadd.f32 %v933_v45, %v925_v44 }
 0x53e   :  { %v940_v23 = vadd.f32 %v932_v48, %v924_v14  ;;  %v1216_v14 = vld [vmem:[%s8557_s6] sm:$0xff]  ;;  %v1217_v48 = vld [vmem:[%s8557_s6 + $0x8] sm:$0xff] }
 0x540   :  { %5596 = vmatprep.mubr.msk.f32.mxu0 %vm77_vm0, %v940_v23 }
 0x541   :  { %5597 = vmatmul.mubr.msk.f32.gmra.mrb[22].mxu0 %vm77_vm0, %v941_v27  ;;  %v6034_v27 = vpack.c.bf16 %v1217_v48, %v1216_v14 }
 0x543   :  { %6035 = vmatprep.subr.bf16.mxu1 %v6034_v27 }
 0x544   :  { %6037 = vmatpush3.bf16.msra.mxu1 %v6034_v27 }
 0x5a1   :  { %v5589_v54 = vpop.f32.mrb[16].mxu0 }
 0x5a2   :  { %v1040_v6 = vpop.f32.mrb[17].mxu0  ;;  %v1046_v55 = vadd.f32 %v5589_v54, %v949_v4  ;;  %v1218_v54 = vld [vmem:[%s8557_s6 + $0x10] sm:$0xff] }
 0x5a3   :  { %v1041_v18 = vadd.f32 %v1040_v6, %v949_v4  ;;  %v1219_v6 = vld [vmem:[%s8557_s6 + $0x18] sm:$0xff] }
 0x5a4   :  { %v1080_v16 = vadd.f32 %v6638_v15, %v1046_v55 }
 0x5a5   :  { %v1079_v28 = vadd.f32 %v6637_v36, %v1041_v18  ;;  %v6038_v18 = vpack.c.bf16 %v1219_v6, %v1218_v54 }
 0x5a6   :  { %v1090_v17 = vsel %vm77_vm0, %v1080_v16, 0.0 }
 0x5a7   :  { %v1087_v32 = vsel %vm77_vm0, %v1079_v28, 0.0  ;;  %6039 = vmatprep.subr.bf16.mxu1 %v6038_v18 }
 0x5a8   :  { %1088 = vadd.xlane.f32.xlu0 %v1087_v32  ;;  %6041 = vmatpush3.bf16.msra.mxu1 %v6038_v18 }
 0x5ac   :  { %1091 = vadd.xlane.f32.xlu0 %v1090_v17 }
 0x5c8   :  { %v5592_v57 = vpop.f32.mrb[18].mxu0 }
 0x5c9   :  { %v1050_v10 = vpop.f32.mrb[19].mxu0  ;;  %v1056_v61 = vadd.f32 %v5592_v57, %v949_v4 }
 0x5ca   :  { %v1051_v2 = vadd.f32 %v1050_v10, %v949_v4 }
 0x5cb   :  { %v1082_v47 = vadd.f32 %v6640_v25, %v1056_v61 }
 0x5cc   :  { %v5595_v5 = vpop.f32.mrb[20].mxu0  ;;  %v1081_v33 = vadd.f32 %v6639_v29, %v1051_v2 }
 0x5cd   :  { %v1060_v11 = vpop.f32.mrb[21].mxu0  ;;  %v1066_v43 = vadd.f32 %v5595_v5, %v949_v4  ;;  %v1096_v35 = vsel %vm77_vm0, %v1082_v47, 0.0 }
 0x5ce   :  { %v1061_v40 = vadd.f32 %v1060_v11, %v949_v4  ;;  %v1093_v51 = vsel %vm77_vm0, %v1081_v33, 0.0 }
 0x5cf   :  { %1094 = vadd.xlane.f32.xlu0 %v1093_v51  ;;  %v1084_v37 = vadd.f32 %v6642_v22, %v1066_v43 }
 0x5d0   :  { %v1083_v0 = vadd.f32 %v6641_v46, %v1061_v40 }
 0x5d1   :  { %v1102_v50 = vsel %vm77_vm0, %v1084_v37, 0.0 }
 0x5d2   :  { %v1099_v24 = vsel %vm77_vm0, %v1083_v0, 0.0 }
 0x5d3   :  { %1100 = vadd.xlane.f32.xlu1 %v1099_v24  ;;  %1097 = vadd.xlane.f32.xlu0 %v1096_v35 }
 0x5d7   :  { %1103 = vadd.xlane.f32.xlu0 %v1102_v50 }
 0x614   :  { %v5598_v53 = vpop.f32.mrb[22].mxu0 }
 0x615   :  { %v1076_v42 = vadd.f32 %v5598_v53, %v949_v4  ;;  %v1070_v13 = vpop.f32.mrb[23].mxu0 }
 0x616   :  { %v1071_v49 = vadd.f32 %v1070_v13, %v949_v4 }
 0x617   :  { %v1086_v41 = vadd.f32 %v6643_v21, %v1076_v42 }
 0x618   :  { %v1085_v62 = vadd.f32 %v6644_v60, %v1071_v49 }
 0x619   :  { %v1108_v56 = vsel %vm77_vm0, %v1086_v41, 0.0 }
 0x61a   :  { %1109 = vadd.xlane.f32.xlu0 %v1108_v56  ;;  %v1105_v63 = vsel %vm77_vm0, %v1085_v62, 0.0  ;;  %v7322_v56 = vsub.s32 5, %v6740_v7 }
 0x61b   :  { %1106 = vadd.xlane.f32.xlu1 %v1105_v63 }
 0x635   :  { %v1089_v59 = vpop.xlane.xlu0 %1088 }
 0x636   :  { %v1112_v38 = vmul.f32 0.03125, %v1089_v59 }
 0x638   :  { %v7266_v3 = vsub.f32 %v1079_v28, %v1112_v38  ;;  %v7330_v38 = vrot.slane %v7230_v26, %v7322_v56 }
 0x639   :  { %v1092_v8 = vpop.xlane.xlu0 %1091 }
 0x63a   :  { %v1113_v31 = vmul.f32 0.03125, %v1092_v8  ;;  %v1128_v52 = vmul.f32 %v7266_v3, %v7266_v3 }
 0x63c   :  { %v7270_v39 = vsub.f32 %v1080_v16, %v1113_v31  ;;  %v1136_v44 = vsel %vm77_vm0, %v1128_v52, 0.0 }
 0x63d   :  { %1137 = vadd.xlane.f32.xlu1 %v1136_v44 }
 0x63e   :  { %v1129_v45 = vmul.f32 %v7270_v39, %v7270_v39 }
 0x640   :  { %v1139_v34 = vsel %vm77_vm0, %v1129_v45, 0.0 }
 0x641   :  { %1140 = vadd.xlane.f32.xlu0 %v1139_v34 }
 0x65c   :  { %v1095_v23 = vpop.xlane.xlu0 %1094 }
 0x65d   :  { %v1114_v4 = vmul.f32 0.03125, %v1095_v23 }
 0x65f   :  { %v7288_v55 = vsub.f32 %v1081_v33, %v1114_v4 }
 0x660   :  { %v1101_v36 = vpop.xlane.xlu1 %1100  ;;  %v1098_v28 = vpop.xlane.xlu0 %1097 }
 0x661   :  { %v1116_v32 = vmul.f32 0.03125, %v1101_v36  ;;  %v1115_v15 = vmul.f32 0.03125, %v1098_v28  ;;  %v1130_v16 = vmul.f32 %v7288_v55, %v7288_v55 }
 0x663   :  { %v7292_v17 = vsub.f32 %v1083_v0, %v1116_v32  ;;  %v7294_v57 = vsub.f32 %v1082_v47, %v1115_v15  ;;  %v1142_v10 = vsel %vm77_vm0, %v1130_v16, 0.0 }
 0x664   :  { %v1104_v61 = vpop.xlane.xlu0 %1103  ;;  %1143 = vadd.xlane.f32.xlu1 %v1142_v10 }
 0x665   :  { %v1117_v2 = vmul.f32 0.03125, %v1104_v61  ;;  %v1131_v5 = vmul.f32 %v7294_v57, %v7294_v57  ;;  %v1132_v29 = vmul.f32 %v7292_v17, %v7292_v17 }
 0x667   :  { %v7301_v33 = vsub.f32 %v1084_v37, %v1117_v2  ;;  %v1145_v11 = vsel %vm77_vm0, %v1131_v5, 0.0  ;;  %v1148_v43 = vsel %vm77_vm0, %v1132_v29, 0.0 }
 0x668   :  { %1146 = vadd.xlane.f32.xlu0 %v1145_v11  ;;  %1149 = vadd.xlane.f32.xlu1 %v1148_v43 }
 0x669   :  { %v1133_v40 = vmul.f32 %v7301_v33, %v7301_v33 }
 0x66b   :  { %v1151_v51 = vsel %vm77_vm0, %v1133_v40, 0.0 }
 0x66c   :  { %1152 = vadd.xlane.f32.xlu0 %v1151_v51 }
 0x6a7   :  { %v1110_v25 = vpop.xlane.xlu0 %1109 }
 0x6a8   :  { %v1119_v47 = vmul.f32 0.03125, %v1110_v25  ;;  %v1107_v46 = vpop.xlane.xlu1 %1106 }
 0x6a9   :  { %v1118_v0 = vmul.f32 0.03125, %v1107_v46 }
 0x6aa   :  { %v7308_v24 = vsub.f32 %v1086_v41, %v1119_v47 }
 0x6ab   :  { %v7310_v35 = vsub.f32 %v1085_v62, %v1118_v0  ;;  %v7319_v62 = vsub.s32 4, %v6740_v7 }
 0x6ac   :  { %v1135_v22 = vmul.f32 %v7308_v24, %v7308_v24 }
 0x6ad   :  { %v1134_v37 = vmul.f32 %v7310_v35, %v7310_v35  ;;  %v7326_v63 = vrot.slane %v7230_v26, %v7319_v62 }
 0x6ae   :  { %v1157_v50 = vsel %vm77_vm0, %v1135_v22, 0.0 }
 0x6af   :  { %1158 = vadd.xlane.f32.xlu0 %v1157_v50  ;;  %v1154_v53 = vsel %vm77_vm0, %v1134_v37, 0.0 }
 0x6b0   :  { %1155 = vadd.xlane.f32.xlu1 %v1154_v53  ;;  %v1425_v53 = vld [vmem:[%s8558_s7] sm:$0xff] }
 0x6ca   :  { %v1138_v42 = vpop.xlane.xlu1 %1137 }
 0x6cb   :  { %v1160_v13 = vmul.f32 0.03125, %v1138_v42  ;;  %v1426_v42 = vld [vmem:[%s8558_s7 + $0x8] sm:$0xff] }
 0x6cd   :  { %v1168_v49 = vadd.f32 1e-12, %v1160_v13  ;;  %v6042_v13 = vpack.c.bf16 %v1426_v42, %v1425_v53 }
 0x6ce   :  { %v1141_v21 = vpop.xlane.xlu0 %1140 }
 0x6cf   :  { %6422 = vrsqrt.f32 %v1168_v49  ;;  %v1161_v41 = vmul.f32 0.03125, %v1141_v21  ;;  %6043 = vmatprep.subr.bf16.mxu0 %v6042_v13  ;;  %v1427_v49 = vld [vmem:[%s8558_s7 + $0x10] sm:$0xff]  ;;  %v1428_v21 = vld [vmem:[%s8558_s7 + $0x18] sm:$0xff] }
 0x6d0   :  { %6045 = vmatpush3.bf16.msra.mxu0 %v6042_v13 }
 0x6d1   :  { %v1169_v60 = vadd.f32 1e-12, %v1161_v41  ;;  %v6046_v41 = vpack.c.bf16 %v1428_v21, %v1427_v49 }
 0x6d3   :  { %6424 = vrsqrt.f32 %v1169_v60  ;;  %6047 = vmatprep.subr.bf16.mxu0 %v6046_v41 }
 0x6d4   :  { %6049 = vmatpush3.bf16.msra.mxu0 %v6046_v41 }
 0x6d9   :  { %v6423_v59 = vpop.eup %6422 }
 0x6da   :  { %v1184_v8 = vmul.f32 %v6423_v59, %v7266_v3  ;;  %v1429_v59 = vld [vmem:[%s8558_s7 + $0x20] sm:$0xff] }
 0x6dc   :  { %v1196_v31 = vmul.f32 %v7326_v63, %v1184_v8  ;;  %v1430_v8 = vld [vmem:[%s8558_s7 + $0x28] sm:$0xff] }
 0x6dd   :  { %v6425_v52 = vpop.eup %6424 }
 0x6de   :  { %v1185_v44 = vmul.f32 %v6425_v52, %v7270_v39  ;;  %v7336_v45 = vadd.f32 %v7330_v38, %v1196_v31 }
 0x6e0   :  { %v1197_v34 = vmul.f32 %v7326_v63, %v1185_v44  ;;  %5607 = vmatprep.mubr.msk.f32.mxu1 %vm77_vm0, %v7336_v45  ;;  %v6050_v44 = vpack.c.bf16 %v1430_v8, %v1429_v59 }
 0x6e2   :  { %v7342_v14 = vadd.f32 %v7330_v38, %v1197_v34  ;;  %6051 = vmatprep.subr.bf16.mxu0 %v6050_v44 }
 0x6e3   :  { %6053 = vmatpush3.bf16.msra.mxu0 %v6050_v44 }
 0x6e4   :  { %5608 = vmatmul.mubr.msk.f32.vlgmr.msra.gmra.mrb[24].mxu1 %vm77_vm0, %v7342_v14 }
 0x6f1   :  { %v1144_v3 = vpop.xlane.xlu1 %1143 }
 0x6f2   :  { %v1162_v48 = vmul.f32 0.03125, %v1144_v3 }
 0x6f4   :  { %v1170_v27 = vadd.f32 1e-12, %v1162_v48 }
 0x6f5   :  { %v1147_v23 = vpop.xlane.xlu0 %1146  ;;  %v1150_v4 = vpop.xlane.xlu1 %1149 }
 0x6f6   :  { %6426 = vrsqrt.f32 %v1170_v27  ;;  %v1163_v39 = vmul.f32 0.03125, %v1147_v23  ;;  %v1164_v54 = vmul.f32 0.03125, %v1150_v4  ;;  %v1431_v27 = vld [vmem:[%s8558_s7 + $0x30] sm:$0xff]  ;;  %v1432_v23 = vld [vmem:[%s8558_s7 + $0x38] sm:$0xff] }
 0x6f7   :  { %v6054_v4 = vpack.c.bf16 %v1432_v23, %v1431_v27 }
 0x6f8   :  { %v1171_v6 = vadd.f32 1e-12, %v1163_v39  ;;  %v1172_v18 = vadd.f32 1e-12, %v1164_v54 }
 0x6f9   :  { %v1153_v36 = vpop.xlane.xlu0 %1152  ;;  %6055 = vmatprep.subr.bf16.mxu0 %v6054_v4 }
 0x6fa   :  { %6428 = vrsqrt.f32 %v1171_v6  ;;  %v1165_v28 = vmul.f32 0.03125, %v1153_v36  ;;  %6057 = vmatpush3.bf16.msra.mxu0 %v6054_v4 }
 0x6fb   :  { %6430 = vrsqrt.f32 %v1172_v18 }
 0x6fc   :  { %v1173_v32 = vadd.f32 1e-12, %v1165_v28 }
 0x6fe   :  { %6432 = vrsqrt.f32 %v1173_v32 }
 0x700   :  { %v6427_v15 = vpop.eup %6426 }
 0x701   :  { %v1186_v16 = vmul.f32 %v6427_v15, %v7288_v55 }
 0x703   :  { %v1198_v10 = vmul.f32 %v7326_v63, %v1186_v16 }
 0x704   :  { %v6429_v61 = vpop.eup %6428 }
 0x705   :  { %v6431_v2 = vpop.eup %6430  ;;  %v7349_v5 = vadd.f32 %v7330_v38, %v1198_v10  ;;  %v1187_v29 = vmul.f32 %v6429_v61, %v7294_v57 }
 0x706   :  { %v1188_v11 = vmul.f32 %v6431_v2, %v7292_v17 }
 0x707   :  { %5610 = vmatprep.mubr.msk.f32.mxu1 %vm77_vm0, %v7349_v5  ;;  %v1199_v43 = vmul.f32 %v7326_v63, %v1187_v29 }
 0x708   :  { %v6433_v40 = vpop.eup %6432  ;;  %v1200_v51 = vmul.f32 %v7326_v63, %v1188_v11 }
 0x709   :  { %v7358_v55 = vadd.f32 %v7330_v38, %v1199_v43  ;;  %v1189_v25 = vmul.f32 %v6433_v40, %v7301_v33 }
 0x70a   :  { %v7362_v47 = vadd.f32 %v7330_v38, %v1200_v51 }
 0x70b   :  { %5611 = vmatmul.mubr.msk.f32.gmra.mrb[26].mxu1 %vm77_vm0, %v7358_v55  ;;  %v1201_v17 = vmul.f32 %v7326_v63, %v1189_v25 }
 0x70c   :  { %5613 = vmatprep.mubr.msk.f32.mxu1 %vm77_vm0, %v7362_v47 }
 0x70d   :  { %v7370_v57 = vadd.f32 %v7330_v38, %v1201_v17 }
 0x70f   :  { %5614 = vmatmul.mubr.msk.f32.gmra.mrb[28].mxu1 %vm77_vm0, %v7370_v57 }
 0x73c   :  { %v1159_v46 = vpop.xlane.xlu0 %1158 }
 0x73d   :  { %v1167_v0 = vmul.f32 0.03125, %v1159_v46  ;;  %v1156_v33 = vpop.xlane.xlu1 %1155 }
 0x73e   :  { %v1166_v22 = vmul.f32 0.03125, %v1156_v33 }
 0x73f   :  { %v1175_v37 = vadd.f32 1e-12, %v1167_v0 }
 0x740   :  { %v1174_v50 = vadd.f32 1e-12, %v1166_v22 }
 0x741   :  { %6434 = vrsqrt.f32 %v1175_v37 }
 0x742   :  { %6436 = vrsqrt.f32 %v1174_v50 }
 0x74b   :  { %v6435_v60 = vpop.eup %6434 }
 0x74c   :  { %v6437_v31 = vpop.eup %6436  ;;  %v1191_v52 = vmul.f32 %v6435_v60, %v7308_v24 }
 0x74d   :  { %v1190_v34 = vmul.f32 %v6437_v31, %v7310_v35 }
 0x74e   :  { %v1203_v3 = vmul.f32 %v7326_v63, %v1191_v52 }
 0x74f   :  { %v1202_v48 = vmul.f32 %v7326_v63, %v1190_v34  ;;  %v42_v63 = vld [vmem:[%s8559_s9] sm:$0xf] }
 0x750   :  { %v7406_v35 = vadd.f32 %v7330_v38, %v1203_v3  ;;  %v7416_v39 = vrot.slane %v42_v63, %v6783_v19 }
 0x751   :  { %v7403_v24 = vadd.f32 %v7330_v38, %v1202_v48 }
 0x753   :  { %5616 = vmatprep.mubr.msk.f32.mxu1 %vm77_vm0, %v7403_v24 }
 0x754   :  { %5617 = vmatmul.mubr.msk.f32.gmra.mrb[30].mxu1 %vm77_vm0, %v7406_v35 }
 0x7b7   :  { %v5609_v54 = vpop.f32.mrb[24].mxu1 }
 0x7b8   :  { %v1320_v6 = vadd.f32 %v5609_v54, %v7416_v39  ;;  %v1314_v38 = vpop.f32.mrb[25].mxu1 }
 0x7b9   :  { %v1315_v18 = vadd.f32 %v1314_v38, %v7416_v39 }
 0x7ba   :  { %v1362_v36 = vmul.f32 0.044715, %v1320_v6  ;;  %v1354_v46 = vmul.f32 0.5, %v1320_v6 }
 0x7bb   :  { %v1361_v28 = vmul.f32 0.044715, %v1315_v18  ;;  %v1353_v25 = vmul.f32 0.5, %v1315_v18 }
 0x7bc   :  { %v1370_v32 = vmul.f32 %v1362_v36, %v1320_v6 }
 0x7bd   :  { %v1369_v15 = vmul.f32 %v1361_v28, %v1315_v18 }
 0x7be   :  { %v1378_v16 = vmul.f32 %v1370_v32, %v1320_v6 }
 0x7bf   :  { %v1377_v10 = vmul.f32 %v1369_v15, %v1315_v18 }
 0x7c0   :  { %v1386_v61 = vadd.f32 %v1378_v16, %v1320_v6 }
 0x7c1   :  { %v1385_v2 = vadd.f32 %v1377_v10, %v1315_v18 }
 0x7c2   :  { %v1394_v29 = vmul.f32 0.7978846, %v1386_v61 }
 0x7c3   :  { %v1393_v11 = vmul.f32 0.7978846, %v1385_v2 }
 0x7c4   :  { %6438 = vtanh.f32 %v1394_v29 }
 0x7c5   :  { %6440 = vtanh.f32 %v1393_v11 }
 0x7ce   :  { %v6439_v43 = vpop.eup %6438 }
 0x7cf   :  { %v6441_v40 = vpop.eup %6440  ;;  %v1410_v51 = vadd.f32 1.0, %v6439_v43 }
 0x7d0   :  { %v1409_v17 = vadd.f32 1.0, %v6441_v40 }
 0x7d1   :  { %v1418_v33 = vmul.f32 %v1410_v51, %v1354_v46 }
 0x7d2   :  { %v1417_v0 = vmul.f32 %v1409_v17, %v1353_v25 }
 0x7d4   :  { %5635 = vmatprep.mubr.msk.f32.mxu0 %vm516_vm3, %v1417_v0 }
 0x7d5   :  { %5636 = vmatmul.mubr.msk.f32.vlgmr.msra.gmra.mrb[24].mxu0 %vm516_vm3, %v1418_v33 }
 0x7de   :  { %v5612_v22 = vpop.f32.mrb[26].mxu1 }
 0x7df   :  { %v1330_v37 = vadd.f32 %v5612_v22, %v7416_v39  ;;  %v1324_v50 = vpop.f32.mrb[27].mxu1 }
 0x7e0   :  { %v1325_v53 = vadd.f32 %v1324_v50, %v7416_v39 }
 0x7e1   :  { %v1364_v42 = vmul.f32 0.044715, %v1330_v37  ;;  %v1356_v2 = vmul.f32 0.5, %v1330_v37 }
 0x7e2   :  { %v1363_v13 = vmul.f32 0.044715, %v1325_v53  ;;  %v5615_v49 = vpop.f32.mrb[28].mxu1  ;;  %v1355_v10 = vmul.f32 0.5, %v1325_v53 }
 0x7e3   :  { %v1372_v21 = vmul.f32 %v1364_v42, %v1330_v37  ;;  %v1340_v41 = vadd.f32 %v5615_v49, %v7416_v39  ;;  %v1334_v60 = vpop.f32.mrb[29].mxu1 }
 0x7e4   :  { %v1371_v59 = vmul.f32 %v1363_v13, %v1325_v53  ;;  %v1335_v8 = vadd.f32 %v1334_v60, %v7416_v39 }
 0x7e5   :  { %v1380_v31 = vmul.f32 %v1372_v21, %v1330_v37  ;;  %v1366_v52 = vmul.f32 0.044715, %v1340_v41  ;;  %v1358_v46 = vmul.f32 0.5, %v1340_v41 }
 0x7e6   :  { %v1379_v44 = vmul.f32 %v1371_v59, %v1325_v53  ;;  %v1365_v34 = vmul.f32 0.044715, %v1335_v8  ;;  %v1357_v25 = vmul.f32 0.5, %v1335_v8 }
 0x7e7   :  { %v1388_v3 = vadd.f32 %v1380_v31, %v1330_v37  ;;  %v1374_v48 = vmul.f32 %v1366_v52, %v1340_v41 }
 0x7e8   :  { %v1387_v27 = vadd.f32 %v1379_v44, %v1325_v53  ;;  %v1373_v23 = vmul.f32 %v1365_v34, %v1335_v8 }
 0x7e9   :  { %v1382_v4 = vmul.f32 %v1374_v48, %v1340_v41  ;;  %v1396_v63 = vmul.f32 0.7978846, %v1388_v3 }
 0x7ea   :  { %v1381_v54 = vmul.f32 %v1373_v23, %v1335_v8  ;;  %v1395_v6 = vmul.f32 0.7978846, %v1387_v27 }
 0x7eb   :  { %v1390_v38 = vadd.f32 %v1382_v4, %v1340_v41  ;;  %6442 = vtanh.f32 %v1396_v63  ;;  %v7435_v63 = vsub.s32 6, %v6740_v7 }
 0x7ec   :  { %v1389_v18 = vadd.f32 %v1381_v54, %v1335_v8  ;;  %6444 = vtanh.f32 %v1395_v6 }
 0x7ed   :  { %v1398_v36 = vmul.f32 0.7978846, %v1390_v38  ;;  %v1436_v54 = vrot.slane %v7230_v26, %v7435_v63 }
 0x7ee   :  { %v1397_v28 = vmul.f32 0.7978846, %v1389_v18 }
 0x7ef   :  { %6446 = vtanh.f32 %v1398_v36 }
 0x7f0   :  { %6448 = vtanh.f32 %v1397_v28 }
 0x7f5   :  { %v6443_v32 = vpop.eup %6442 }
 0x7f6   :  { %v6445_v15 = vpop.eup %6444  ;;  %v1412_v16 = vadd.f32 1.0, %v6443_v32 }
 0x7f7   :  { %v1411_v61 = vadd.f32 1.0, %v6445_v15 }
 0x7f8   :  { %v1420_v40 = vmul.f32 %v1412_v16, %v1356_v2 }
 0x7f9   :  { %v6447_v29 = vpop.eup %6446  ;;  %v1419_v11 = vmul.f32 %v1411_v61, %v1355_v10 }
 0x7fa   :  { %v6449_v43 = vpop.eup %6448  ;;  %v1414_v51 = vadd.f32 1.0, %v6447_v29 }
 0x7fb   :  { %5638 = vmatprep.mubr.msk.f32.mxu0 %vm516_vm3, %v1419_v11  ;;  %v1413_v17 = vadd.f32 1.0, %v6449_v43 }
 0x7fc   :  { %5639 = vmatmul.mubr.msk.f32.gmra.mrb[26].mxu0 %vm516_vm3, %v1420_v40  ;;  %v1422_v33 = vmul.f32 %v1414_v51, %v1358_v46 }
 0x7fd   :  { %v1421_v0 = vmul.f32 %v1413_v17, %v1357_v25 }
 0x7ff   :  { %5641 = vmatprep.mubr.msk.f32.mxu0 %vm516_vm3, %v1421_v0 }
 0x800   :  { %5642 = vmatmul.mubr.msk.f32.gmra.mrb[28].mxu0 %vm516_vm3, %v1422_v33 }
 0x827   :  { %v5618_v22 = vpop.f32.mrb[30].mxu1 }
 0x828   :  { %v1350_v37 = vadd.f32 %v5618_v22, %v7416_v39  ;;  %v1344_v50 = vpop.f32.mrb[31].mxu1 }
 0x829   :  { %v1345_v53 = vadd.f32 %v1344_v50, %v7416_v39 }
 0x82a   :  { %v1368_v42 = vmul.f32 0.044715, %v1350_v37  ;;  %v1360_v23 = vmul.f32 0.5, %v1350_v37 }
 0x82b   :  { %v1367_v13 = vmul.f32 0.044715, %v1345_v53  ;;  %v1359_v48 = vmul.f32 0.5, %v1345_v53 }
 0x82c   :  { %v1376_v49 = vmul.f32 %v1368_v42, %v1350_v37 }
 0x82d   :  { %v1375_v21 = vmul.f32 %v1367_v13, %v1345_v53 }
 0x82e   :  { %v1384_v60 = vmul.f32 %v1376_v49, %v1350_v37 }
 0x82f   :  { %v1383_v59 = vmul.f32 %v1375_v21, %v1345_v53 }
 0x830   :  { %v1392_v8 = vadd.f32 %v1384_v60, %v1350_v37 }
 0x831   :  { %v1391_v41 = vadd.f32 %v1383_v59, %v1345_v53 }
 0x832   :  { %v1400_v31 = vmul.f32 0.7978846, %v1392_v8 }
 0x833   :  { %v1399_v52 = vmul.f32 0.7978846, %v1391_v41 }
 0x834   :  { %6450 = vtanh.f32 %v1400_v31 }
 0x835   :  { %6452 = vtanh.f32 %v1399_v52  ;;  %v5019_v52 = vld [vmem:[%s8552_s4 + $0x20] sm:$0xff] }
 0x83e   :  { %v6451_v44 = vpop.eup %6450 }
 0x83f   :  { %v6453_v34 = vpop.eup %6452  ;;  %v1416_v3 = vadd.f32 1.0, %v6451_v44  ;;  %v5020_v44 = vld [vmem:[%s8552_s4 + $0x28] sm:$0xff] }
 0x840   :  { %v1415_v27 = vadd.f32 1.0, %v6453_v34  ;;  %v6058_v34 = vpack.c.bf16 %v5020_v44, %v5019_v52 }
 0x841   :  { %v1424_v39 = vmul.f32 %v1416_v3, %v1360_v23 }
 0x842   :  { %v1423_v4 = vmul.f32 %v1415_v27, %v1359_v48  ;;  %6059 = vmatprep.subr.bf16.mxu1 %v6058_v34  ;;  %v5021_v48 = vld [vmem:[%s8552_s4 + $0x30] sm:$0xff]  ;;  %v5022_v27 = vld [vmem:[%s8552_s4 + $0x38] sm:$0xff] }
 0x843   :  { %6061 = vmatpush3.bf16.msra.mxu1 %v6058_v34 }
 0x844   :  { %5644 = vmatprep.mubr.msk.f32.mxu0 %vm516_vm3, %v1423_v4 }
 0x845   :  { %5645 = vmatmul.mubr.msk.f32.gmra.mrb[30].mxu0 %vm516_vm3, %v1424_v39  ;;  %v6062_v39 = vpack.c.bf16 %v5022_v27, %v5021_v48 }
 0x847   :  { %6063 = vmatprep.subr.bf16.mxu1 %v6062_v39 }
 0x848   :  { %6065 = vmatpush3.bf16.msra.mxu1 %v6062_v39 }
 0x8a8   :  { %v5637_v6 = vpop.f32.mrb[24].mxu0 }
 0x8a9   :  { %v1533_v38 = vadd.f32 %v5637_v6, %v1436_v54  ;;  %v1527_v18 = vpop.f32.mrb[25].mxu0 }
 0x8aa   :  { %v1528_v36 = vadd.f32 %v1527_v18, %v1436_v54 }
 0x8ab   :  { %v1567_v28 = vadd.f32 %v1533_v38, %v7342_v14 }
 0x8ac   :  { %v1566_v32 = vadd.f32 %v1528_v36, %v7336_v45 }
 0x8ad   :  { %v1577_v15 = vsel %vm77_vm0, %v1567_v28, 0.0 }
 0x8ae   :  { %1578 = vadd.xlane.f32.xlu0 %v1577_v15  ;;  %v1574_v16 = vsel %vm77_vm0, %v1566_v32, 0.0 }
 0x8af   :  { %1575 = vadd.xlane.f32.xlu1 %v1574_v16 }
 0x8cf   :  { %v5640_v10 = vpop.f32.mrb[26].mxu0 }
 0x8d0   :  { %v1543_v61 = vadd.f32 %v5640_v10, %v1436_v54  ;;  %v1537_v2 = vpop.f32.mrb[27].mxu0 }
 0x8d1   :  { %v1538_v29 = vadd.f32 %v1537_v2, %v1436_v54 }
 0x8d2   :  { %v1569_v11 = vadd.f32 %v1543_v61, %v7358_v55 }
 0x8d3   :  { %v5643_v43 = vpop.f32.mrb[28].mxu0  ;;  %v1568_v40 = vadd.f32 %v1538_v29, %v7349_v5 }
 0x8d4   :  { %v1553_v51 = vadd.f32 %v5643_v43, %v1436_v54  ;;  %v1547_v25 = vpop.f32.mrb[29].mxu0  ;;  %v1583_v14 = vsel %vm77_vm0, %v1569_v11, 0.0 }
 0x8d5   :  { %v1548_v45 = vadd.f32 %v1547_v25, %v1436_v54  ;;  %1584 = vadd.xlane.f32.xlu0 %v1583_v14  ;;  %v1580_v17 = vsel %vm77_vm0, %v1568_v40, 0.0 }
 0x8d6   :  { %1581 = vadd.xlane.f32.xlu1 %v1580_v17  ;;  %v1571_v46 = vadd.f32 %v1553_v51, %v7370_v57 }
 0x8d7   :  { %v1570_v0 = vadd.f32 %v1548_v45, %v7362_v47 }
 0x8d8   :  { %v1589_v33 = vsel %vm77_vm0, %v1571_v46, 0.0 }
 0x8d9   :  { %1590 = vadd.xlane.f32.xlu0 %v1589_v33  ;;  %v1586_v55 = vsel %vm77_vm0, %v1570_v0, 0.0 }
 0x8da   :  { %1587 = vadd.xlane.f32.xlu1 %v1586_v55 }
 0x918   :  { %v5646_v5 = vpop.f32.mrb[30].mxu0 }
 0x919   :  { %v1563_v22 = vadd.f32 %v5646_v5, %v1436_v54  ;;  %v1557_v37 = vpop.f32.mrb[31].mxu0 }
 0x91a   :  { %v1558_v50 = vadd.f32 %v1557_v37, %v1436_v54  ;;  %v7510_v37 = vld [vmem:[%s8554_s8 + $0x8] sm:$0xff] }
 0x91b   :  { %v1573_v53 = vadd.f32 %v1563_v22, %v7406_v35  ;;  %v1693_v52 = vrot.slane %v7510_v37, %v6783_v19 }
 0x91c   :  { %v1572_v42 = vadd.f32 %v1558_v50, %v7403_v24  ;;  %v1851_v50 = vrot.slane %v7510_v37, %v7014_v1 }
 0x91d   :  { %v1595_v13 = vsel %vm77_vm0, %v1573_v53, 0.0 }
 0x91e   :  { %1596 = vadd.xlane.f32.xlu0 %v1595_v13  ;;  %v1592_v57 = vsel %vm77_vm0, %v1572_v42, 0.0 }
 0x91f   :  { %1593 = vadd.xlane.f32.xlu1 %v1592_v57 }
 0x93b   :  { %v1579_v47 = vpop.xlane.xlu0 %1578 }
 0x93c   :  { %v1599_v49 = vmul.f32 0.03125, %v1579_v47  ;;  %v1576_v21 = vpop.xlane.xlu1 %1575 }
 0x93d   :  { %v1598_v60 = vmul.f32 0.03125, %v1576_v21  ;;  %v7516_v21 = vsub.s32 7, %v6740_v7 }
 0x93e   :  { %v7455_v59 = vsub.f32 %v1567_v28, %v1599_v49 }
 0x93f   :  { %v7457_v8 = vsub.f32 %v1566_v32, %v1598_v60  ;;  %v1681_v60 = vrot.slane %v7230_v26, %v7516_v21 }
 0x940   :  { %v1615_v41 = vmul.f32 %v7455_v59, %v7455_v59 }
 0x941   :  { %v1614_v24 = vmul.f32 %v7457_v8, %v7457_v8 }
 0x942   :  { %v1625_v35 = vsel %vm77_vm0, %v1615_v41, 0.0 }
 0x943   :  { %1626 = vadd.xlane.f32.xlu0 %v1625_v35  ;;  %v1622_v31 = vsel %vm77_vm0, %v1614_v24, 0.0 }
 0x944   :  { %1623 = vadd.xlane.f32.xlu1 %v1622_v31 }
 0x962   :  { %v1585_v3 = vpop.xlane.xlu0 %1584 }
 0x963   :  { %v1601_v23 = vmul.f32 0.03125, %v1585_v3  ;;  %v1582_v4 = vpop.xlane.xlu1 %1581 }
 0x964   :  { %v1600_v54 = vmul.f32 0.03125, %v1582_v4 }
 0x965   :  { %v7477_v6 = vsub.f32 %v1569_v11, %v1601_v23 }
 0x966   :  { %v7479_v38 = vsub.f32 %v1568_v40, %v1600_v54  ;;  %v1591_v18 = vpop.xlane.xlu0 %1590 }
 0x967   :  { %v1603_v36 = vmul.f32 0.03125, %v1591_v18  ;;  %v1588_v28 = vpop.xlane.xlu1 %1587  ;;  %v1617_v32 = vmul.f32 %v7477_v6, %v7477_v6 }
 0x968   :  { %v1602_v15 = vmul.f32 0.03125, %v1588_v28  ;;  %v1616_v16 = vmul.f32 %v7479_v38, %v7479_v38 }
 0x969   :  { %v7485_v10 = vsub.f32 %v1571_v46, %v1603_v36  ;;  %v1631_v61 = vsel %vm77_vm0, %v1617_v32, 0.0 }
 0x96a   :  { %v7488_v2 = vsub.f32 %v1570_v0, %v1602_v15  ;;  %1632 = vadd.xlane.f32.xlu0 %v1631_v61  ;;  %v1628_v29 = vsel %vm77_vm0, %v1616_v16, 0.0 }
 0x96b   :  { %1629 = vadd.xlane.f32.xlu1 %v1628_v29  ;;  %v1619_v11 = vmul.f32 %v7485_v10, %v7485_v10 }
 0x96c   :  { %v1618_v43 = vmul.f32 %v7488_v2, %v7488_v2 }
 0x96d   :  { %v1637_v40 = vsel %vm77_vm0, %v1619_v11, 0.0 }
 0x96e   :  { %1638 = vadd.xlane.f32.xlu0 %v1637_v40  ;;  %v1634_v51 = vsel %vm77_vm0, %v1618_v43, 0.0 }
 0x96f   :  { %1635 = vadd.xlane.f32.xlu1 %v1634_v51 }
 0x9ab   :  { %v1597_v25 = vpop.xlane.xlu0 %1596 }
 0x9ac   :  { %v1605_v14 = vmul.f32 0.03125, %v1597_v25  ;;  %v1594_v45 = vpop.xlane.xlu1 %1593 }
 0x9ad   :  { %v1604_v17 = vmul.f32 0.03125, %v1594_v45 }
 0x9ae   :  { %v7497_v46 = vsub.f32 %v1573_v53, %v1605_v14 }
 0x9af   :  { %v7499_v0 = vsub.f32 %v1572_v42, %v1604_v17 }
 0x9b0   :  { %v1621_v33 = vmul.f32 %v7497_v46, %v7497_v46 }
 0x9b1   :  { %v1620_v55 = vmul.f32 %v7499_v0, %v7499_v0 }
 0x9b2   :  { %v1643_v5 = vsel %vm77_vm0, %v1621_v33, 0.0 }
 0x9b3   :  { %1644 = vadd.xlane.f32.xlu0 %v1643_v5  ;;  %v1640_v22 = vsel %vm77_vm0, %v1620_v55, 0.0 }
 0x9b4   :  { %1641 = vadd.xlane.f32.xlu1 %v1640_v22 }
 0x9c5   :  { %1853 = vrot.lane.b32.xlu1 %v1851_v50, %s6666_s25 }
 0x9d0   :  { %v1627_v53 = vpop.xlane.xlu0 %1626 }
 0x9d1   :  { %v1647_v42 = vmul.f32 0.03125, %v1627_v53  ;;  %v1624_v13 = vpop.xlane.xlu1 %1623 }
 0x9d2   :  { %v1646_v57 = vmul.f32 0.03125, %v1624_v13 }
 0x9d3   :  { %v1655_v47 = vadd.f32 1e-12, %v1647_v42 }
 0x9d4   :  { %v1654_v49 = vadd.f32 1e-12, %v1646_v57 }
 0x9d5   :  { %6454 = vrsqrt.f32 %v1655_v47 }
 0x9d6   :  { %6456 = vrsqrt.f32 %v1654_v49 }
 0x9df   :  { %v6455_v41 = vpop.eup %6454 }
 0x9e0   :  { %v6457_v24 = vpop.eup %6456  ;;  %v1671_v35 = vmul.f32 %v6455_v41, %v7455_v59 }
 0x9e1   :  { %v1670_v31 = vmul.f32 %v6457_v24, %v7457_v8 }
 0x9e2   :  { %v1683_v44 = vmul.f32 %v1681_v60, %v1671_v35  ;;  %v7564_v35 = vrot.slane %v7510_v37, %v6744_v9 }
 0x9e3   :  { %v1682_v34 = vmul.f32 %v1681_v60, %v1670_v31 }
 0x9e4   :  { %v7526_v48 = vadd.f32 %v1693_v52, %v1683_v44 }
 0x9e5   :  { %v7524_v3 = vadd.f32 %v1693_v52, %v1682_v34 }
 0x9e7   :  { %5655 = vmatprep.mubr.msk.f32.mxu1 %vm77_vm0, %v7524_v3 }
 0x9e8   :  { %5656 = vmatmul.mubr.msk.f32.vlgmr.msra.gmra.mrb[32].mxu1 %vm77_vm0, %v7526_v48 }
 0x9f7   :  { %v1633_v7 = vpop.xlane.xlu0 %1632 }
 0x9f8   :  { %v1649_v26 = vmul.f32 0.03125, %v1633_v7  ;;  %v1630_v59 = vpop.xlane.xlu1 %1629 }
 0x9f9   :  { %v1648_v27 = vmul.f32 0.03125, %v1630_v59 }
 0x9fa   :  { %v1657_v8 = vadd.f32 1e-12, %v1649_v26 }
 0x9fb   :  { %v1656_v23 = vadd.f32 1e-12, %v1648_v27  ;;  %v1639_v4 = vpop.xlane.xlu0 %1638 }
 0x9fc   :  { %6458 = vrsqrt.f32 %v1657_v8  ;;  %v1651_v39 = vmul.f32 0.03125, %v1639_v4  ;;  %v1636_v54 = vpop.xlane.xlu1 %1635 }
 0x9fd   :  { %6460 = vrsqrt.f32 %v1656_v23  ;;  %v1650_v18 = vmul.f32 0.03125, %v1636_v54 }
 0x9fe   :  { %v1659_v36 = vadd.f32 1e-12, %v1651_v39 }
 0x9ff   :  { %v1658_v28 = vadd.f32 1e-12, %v1650_v18 }
 0xa00   :  { %6462 = vrsqrt.f32 %v1659_v36 }
 0xa01   :  { %6464 = vrsqrt.f32 %v1658_v28 }
 0xa06   :  { %v6459_v32 = vpop.eup %6458 }
 0xa07   :  { %v6461_v15 = vpop.eup %6460  ;;  %v1673_v16 = vmul.f32 %v6459_v32, %v7477_v6 }
 0xa08   :  { %v1672_v61 = vmul.f32 %v6461_v15, %v7479_v38 }
 0xa09   :  { %v1685_v29 = vmul.f32 %v1681_v60, %v1673_v16 }
 0xa0a   :  { %v6463_v11 = vpop.eup %6462  ;;  %v1684_v43 = vmul.f32 %v1681_v60, %v1672_v61 }
 0xa0b   :  { %v6465_v40 = vpop.eup %6464  ;;  %v1675_v51 = vmul.f32 %v6463_v11, %v7485_v10  ;;  %v7538_v45 = vadd.f32 %v1693_v52, %v1685_v29 }
 0xa0c   :  { %v7535_v25 = vadd.f32 %v1693_v52, %v1684_v43  ;;  %v1674_v14 = vmul.f32 %v6465_v40, %v7488_v2 }
 0xa0d   :  { %v1687_v17 = vmul.f32 %v1681_v60, %v1675_v51 }
 0xa0e   :  { %5658 = vmatprep.mubr.msk.f32.mxu1 %vm77_vm0, %v7535_v25  ;;  %v1686_v33 = vmul.f32 %v1681_v60, %v1674_v14 }
 0xa0f   :  { %5659 = vmatmul.mubr.msk.f32.gmra.mrb[34].mxu1 %vm77_vm0, %v7538_v45  ;;  %v7546_v38 = vadd.f32 %v1693_v52, %v1687_v17 }
 0xa10   :  { %v7544_v6 = vadd.f32 %v1693_v52, %v1686_v33 }
 0xa12   :  { %5661 = vmatprep.mubr.msk.f32.mxu1 %vm77_vm0, %v7544_v6 }
 0xa13   :  { %5662 = vmatmul.mubr.msk.f32.gmra.mrb[36].mxu1 %vm77_vm0, %v7546_v38 }
 0xa40   :  { %v1645_v10 = vpop.xlane.xlu0 %1644 }
 0xa41   :  { %v1653_v2 = vmul.f32 0.03125, %v1645_v10  ;;  %v1642_v55 = vpop.xlane.xlu1 %1641 }
 0xa42   :  { %v1652_v5 = vmul.f32 0.03125, %v1642_v55 }
 0xa43   :  { %v1661_v22 = vadd.f32 1e-12, %v1653_v2 }
 0xa44   :  { %v1660_v50 = vadd.f32 1e-12, %v1652_v5 }
 0xa45   :  { %6466 = vrsqrt.f32 %v1661_v22  ;;  %v1854_v31 = vpop.permute.xlu1 %1853 }
 0xa46   :  { %6468 = vrsqrt.f32 %v1660_v50 }
 0xa4f   :  { %v6467_v53 = vpop.eup %6466 }
 0xa50   :  { %v6469_v42 = vpop.eup %6468  ;;  %v1677_v13 = vmul.f32 %v6467_v53, %v7497_v46 }
 0xa51   :  { %v1676_v57 = vmul.f32 %v6469_v42, %v7499_v0 }
 0xa52   :  { %v1689_v47 = vmul.f32 %v1681_v60, %v1677_v13 }
 0xa53   :  { %v1688_v49 = vmul.f32 %v1681_v60, %v1676_v57 }
 0xa54   :  { %v7556_v24 = vadd.f32 %v1693_v52, %v1689_v47 }
 0xa55   :  { %v7554_v41 = vadd.f32 %v1693_v52, %v1688_v49 }
 0xa57   :  { %5664 = vmatprep.mubr.msk.f32.mxu1 %vm77_vm0, %v7554_v41 }
 0xa58   :  { %5665 = vmatmul.mubr.msk.f32.gmra.mrb[38].mxu1 %vm77_vm0, %v7556_v24 }
 0xabb   :  { %v7566_v46 = vpop.f32.mrb[32].mxu1 }
 0xabc   :  { %v7568_v0 = vpop.f32.mrb[33].mxu1  ;;  %v1857_v60 = vadd.f32 %v7566_v46, %v1854_v31  ;;  %v1841_v13 = vadd.f32 %v7566_v46, %v7564_v35 }
 0xabd   :  { %v7573_v52 = vadd.f32 %v7564_v35, %v7568_v0  ;;  %v1856_v44 = vadd.f32 %v1854_v31, %v7568_v0 }
 0xabe   :  { %v1881_v49 = vmul.f32 %v6799_v30, %v1841_v13 }
 0xabf   :  { %v1880_v34 = vmul.f32 %v6799_v30, %v7573_v52  ;;  %v6298_v7 = vpack.i.bf16 %v1857_v60, %v1856_v44 }
 0xac1   :  { %v1896_v26 = vmul.f32 0.25, %v1880_v34  ;;  %6299 = vrot.lane.b32.xlu0 %v6298_v7, %s6668_s20  ;;  %v1897_v34 = vmul.f32 0.25, %v1881_v49  ;;  %v6645_v49 = vld [vmem:[%s8555_s1 + $0x8] sm:$0xff] }
 0xac3   :  { %5683 = vmatprep.mubr.msk.f32.mxu0 %vm77_vm0, %v1896_v26 }
 0xae2   :  { %v7580_v59 = vpop.f32.mrb[34].mxu1 }
 0xae3   :  { %v1859_v27 = vadd.f32 %v7580_v59, %v1854_v31  ;;  %v7583_v8 = vpop.f32.mrb[35].mxu1 }
 0xae4   :  { %v1858_v23 = vadd.f32 %v1854_v31, %v7583_v8  ;;  %v1842_v47 = vadd.f32 %v7564_v35, %v7583_v8 }
 0xae6   :  { %v7586_v4 = vpop.f32.mrb[36].mxu1  ;;  %v6303_v39 = vpack.i.bf16 %v1859_v27, %v1858_v23  ;;  %v1882_v60 = vmul.f32 %v6799_v30, %v1842_v47 }
 0xae7   :  { %v1861_v54 = vadd.f32 %v7586_v4, %v1854_v31  ;;  %v7589_v18 = vpop.f32.mrb[37].mxu1  ;;  %v1845_v26 = vadd.f32 %v7586_v4, %v7564_v35 }
 0xae8   :  { %v1860_v36 = vadd.f32 %v1854_v31, %v7589_v18  ;;  %6304 = vrot.lane.b32.xlu1 %v6303_v39, %s6668_s20  ;;  %v1844_v44 = vadd.f32 %v7564_v35, %v7589_v18  ;;  %v1898_v27 = vmul.f32 0.25, %v1882_v60 }
 0xaea   :  { %v6308_v28 = vpack.i.bf16 %v1861_v54, %v1860_v36  ;;  %v1884_v23 = vmul.f32 %v6799_v30, %v1844_v44  ;;  %v1885_v36 = vmul.f32 %v6799_v30, %v1845_v26 }
 0xaec   :  { %6309 = vrot.lane.b32.xlu1 %v6308_v28, %s6668_s20 }
 0xb2b   :  { %v7594_v32 = vpop.f32.mrb[38].mxu1 }
 0xb2c   :  { %v1863_v15 = vadd.f32 %v7594_v32, %v1854_v31  ;;  %v7597_v16 = vpop.f32.mrb[39].mxu1  ;;  %v1847_v28 = vadd.f32 %v7594_v32, %v7564_v35 }
 0xb2d   :  { %v1862_v61 = vadd.f32 %v1854_v31, %v7597_v16  ;;  %v1843_v31 = vadd.f32 %v7580_v59, %v7564_v35  ;;  %v1846_v39 = vadd.f32 %v7564_v35, %v7597_v16  ;;  %v1889_v35 = vmul.f32 %v1841_v13, %v6879_v20 }
 0xb2f   :  { %v6313_v29 = vpack.i.bf16 %v1863_v15, %v1862_v61  ;;  %v1883_v7 = vmul.f32 %v6799_v30, %v1843_v31  ;;  %v1900_v15 = vmul.f32 0.25, %v1884_v23  ;;  %v1886_v61 = vmul.f32 %v6799_v30, %v1846_v39  ;;  %v6647_v23 = vld [vmem:[%s8555_s1 + $0x18] sm:$0xff] }
 0xb31   :  { %6314 = vrot.lane.b32.xlu0 %v6313_v29, %s6668_s20  ;;  %v1899_v54 = vmul.f32 0.25, %v1883_v7  ;;  %v1901_v29 = vmul.f32 0.25, %v1885_v36  ;;  %v6648_v36 = vld [vmem:[%s8555_s1 + $0x10] sm:$0xff] }
 0xb33   :  { %v6300_v11 = vpop.permute.xlu0 %6299 }
 0xb34   :  { %v6302_v43 = vunpack.i.h.bf16 %v6300_v11  ;;  %v6301_v40 = vunpack.i.l.bf16 %v6300_v11  ;;  %v1887_v11 = vmul.f32 %v6799_v30, %v1847_v28 }
 0xb36   :  { %v6066_v51 = vpack.c.bf16 %v6302_v43, %v6301_v40  ;;  %v1888_v43 = vmul.f32 %v7573_v52, %v6879_v20  ;;  %v1902_v40 = vmul.f32 0.25, %v1886_v61  ;;  %v1892_v52 = vmul.f32 %v1844_v44, %v6879_v20  ;;  %v6646_v44 = vld [vmem:[%s8555_s1] sm:$0xff] }
 0xb38   :  { %6068 = vmatprep.subr.msk.bf16.mxu0 %vm6846_vm2, %v6066_v51 }
 0xb39   :  { %6071 = vmatpush3.bf16.xpose.msk.msra.mxu0 %vm6846_vm2, %v6066_v51  ;;  %v1903_v51 = vmul.f32 0.25, %v1887_v11  ;;  %v6649_v11 = vld [vmem:[%s8555_s1 + $0x28] sm:$0xff] }
 0xb5a   :  { %v6305_v14 = vpop.permute.xlu1 %6304 }
 0xb5b   :  { %v6307_v17 = vunpack.i.h.bf16 %v6305_v14  ;;  %v6306_v33 = vunpack.i.l.bf16 %v6305_v14  ;;  %v1904_v14 = vmul.f32 0.25, %v1888_v43 }
 0xb5d   :  { %v6072_v10 = vpack.c.bf16 %v6307_v17, %v6306_v33  ;;  %v1890_v17 = vmul.f32 %v1842_v47, %v6879_v20  ;;  %v1905_v33 = vmul.f32 0.25, %v1889_v35  ;;  %v6650_v35 = vld [vmem:[%s8555_s1 + $0x20] sm:$0xff] }
 0xb5e   :  { %v6310_v2 = vpop.permute.xlu1 %6309 }
 0xb5f   :  { %v6312_v55 = vunpack.i.h.bf16 %v6310_v2  ;;  %v6311_v5 = vunpack.i.l.bf16 %v6310_v2  ;;  %6074 = vmatprep.subr.msk.bf16.mxu0 %vm6846_vm2, %v6072_v10  ;;  %v1906_v2 = vmul.f32 0.25, %v1890_v17 }
 0xb60   :  { %6077 = vmatpush3.bf16.xpose.msk.msra.mxu0 %vm6846_vm2, %v6072_v10  ;;  %v1891_v10 = vmul.f32 %v1843_v31, %v6879_v20 }
 0xb61   :  { %v6078_v22 = vpack.c.bf16 %v6312_v55, %v6311_v5  ;;  %v1893_v5 = vmul.f32 %v1845_v26, %v6879_v20 }
 0xb62   :  { %v1907_v55 = vmul.f32 0.25, %v1891_v10  ;;  %v6651_v10 = vld [vmem:[%s8555_s1 + $0x38] sm:$0xff] }
 0xb63   :  { %6080 = vmatprep.subr.msk.bf16.mxu0 %vm6846_vm2, %v6078_v22 }
 0xb68   :  { %6083 = vmatpush3.bf16.xpose.msk.msra.mxu0 %vm6846_vm2, %v6078_v22  ;;  %v1908_v22 = vmul.f32 0.25, %v1892_v52 }
 0xba3   :  { %v6315_v50 = vpop.permute.xlu0 %6314 }
 0xba4   :  { %v6317_v53 = vunpack.i.h.bf16 %v6315_v50  ;;  %v6316_v42 = vunpack.i.l.bf16 %v6315_v50  ;;  %v1894_v50 = vmul.f32 %v1846_v39, %v6879_v20 }
 0xba6   :  { %v6084_v57 = vpack.c.bf16 %v6317_v53, %v6316_v42  ;;  %v1909_v53 = vmul.f32 0.25, %v1893_v5  ;;  %v1895_v42 = vmul.f32 %v1847_v28, %v6879_v20  ;;  %v1910_v13 = vmul.f32 0.25, %v1894_v50 }
 0xba8   :  { %6086 = vmatprep.subr.msk.bf16.mxu0 %vm6846_vm2, %v6084_v57 }
 0xba9   :  { %6089 = vmatpush3.bf16.xpose.msk.msra.mxu0 %vm6846_vm2, %v6084_v57  ;;  %v1911_v57 = vmul.f32 0.25, %v1895_v42  ;;  %v6653_v42 = vld [vmem:[%s8555_s1 + $0x48] sm:$0xff] }
 0xbb0   :  { %5684 = vmatmul.mubr.msk.f32.vlgmr.msra.gmra.mrb[32].mxu0 %vm77_vm0, %v1897_v34 }
 0xbb1   :  { %5686 = vmatprep.mubr.msk.f32.mxu0 %vm77_vm0, %v1898_v27 }
 0xbb4   :  { %5687 = vmatmul.mubr.msk.f32.gmra.mrb[34].mxu0 %vm77_vm0, %v1899_v54 }
 0xbb5   :  { %5689 = vmatprep.mubr.msk.f32.mxu0 %vm77_vm0, %v1900_v15 }
 0xbb8   :  { %5690 = vmatmul.mubr.msk.f32.gmra.mrb[36].mxu0 %vm77_vm0, %v1901_v29 }
 0xbb9   :  { %5692 = vmatprep.mubr.msk.f32.mxu0 %vm77_vm0, %v1902_v40 }
 0xbbc   :  { %5693 = vmatmul.mubr.msk.f32.gmra.mrb[38].mxu0 %vm77_vm0, %v1903_v51 }
 0xbbd   :  { %5695 = vmatprep.mubr.msk.f32.mxu0 %vm77_vm0, %v1904_v14 }
 0xbc0   :  { %5696 = vmatmul.mubr.msk.f32.gmra.mrb[40].mxu0 %vm77_vm0, %v1905_v33 }
 0xbc1   :  { %5698 = vmatprep.mubr.msk.f32.mxu0 %vm77_vm0, %v1906_v2 }
 0xbc4   :  { %5699 = vmatmul.mubr.msk.f32.gmra.mrb[42].mxu0 %vm77_vm0, %v1907_v55  ;;  %v6652_v55 = vld [vmem:[%s8555_s1 + $0x30] sm:$0xff] }
 0xbc5   :  { %5701 = vmatprep.mubr.msk.f32.mxu0 %vm77_vm0, %v1908_v22 }
 0xbc8   :  { %5702 = vmatmul.mubr.msk.f32.gmra.mrb[44].mxu0 %vm77_vm0, %v1909_v53 }
 0xbc9   :  { %5704 = vmatprep.mubr.msk.f32.mxu0 %vm77_vm0, %v1910_v13 }
 0xbcc   :  { %5705 = vmatmul.mubr.msk.f32.gmra.mrb[46].mxu0 %vm77_vm0, %v1911_v57 }
 0xc83   :  { %v5685_v47 = vpop.f32.mrb[32].mxu0 }
 0xc84   :  { %v7665_v31 = vadd.f32 %v6645_v49, %v5685_v47  ;;  %v2066_v60 = vpop.f32.mrb[33].mxu0  ;;  %v6654_v47 = vld [vmem:[%s8555_s1 + $0x40] sm:$0xff] }
 0xc85   :  { %v7670_v34 = vadd.f32 %v6646_v44, %v2066_v60 }
 0xc86   :  { %v2148_v7 = vsel %vm516_vm3, %v7665_v31, -inf }
 0xc87   :  { %2149 = vmax.xlane.f32.xlu0 %v2148_v7  ;;  %v5688_v26 = vpop.f32.mrb[34].mxu0  ;;  %v2145_v27 = vsel %vm516_vm3, %v7670_v34, -inf }
 0xc88   :  { %v7679_v39 = vadd.f32 %v6647_v23, %v5688_v26  ;;  %v2076_v54 = vpop.f32.mrb[35].mxu0  ;;  %2146 = vmax.xlane.f32.xlu1 %v2145_v27  ;;  %v6655_v26 = vld [vmem:[%s8555_s1 + $0x58] sm:$0xff] }
 0xc89   :  { %v7684_v28 = vadd.f32 %v6648_v36, %v2076_v54  ;;  %v6656_v54 = vld [vmem:[%s8555_s1 + $0x50] sm:$0xff] }
 0xc8a   :  { %v2154_v15 = vsel %vm516_vm3, %v7679_v39, -inf }
 0xc8b   :  { %v5691_v61 = vpop.f32.mrb[36].mxu0  ;;  %v2151_v29 = vsel %vm516_vm3, %v7684_v28, -inf }
 0xc8c   :  { %v7693_v43 = vadd.f32 %v6649_v11, %v5691_v61  ;;  %v2086_v40 = vpop.f32.mrb[37].mxu0  ;;  %2152 = vmax.xlane.f32.xlu0 %v2151_v29  ;;  %2155 = vmax.xlane.f32.xlu1 %v2154_v15  ;;  %v6657_v11 = vld [vmem:[%s8555_s1 + $0x68] sm:$0xff] }
 0xc8d   :  { %v7698_v51 = vadd.f32 %v6650_v35, %v2086_v40 }
 0xc8e   :  { %v2160_v14 = vsel %vm516_vm3, %v7693_v43, -inf }
 0xc8f   :  { %v5694_v17 = vpop.f32.mrb[38].mxu0  ;;  %v2157_v33 = vsel %vm516_vm3, %v7698_v51, -inf }
 0xc90   :  { %v7707_v2 = vadd.f32 %v6651_v10, %v5694_v17  ;;  %v2096_v52 = vpop.f32.mrb[39].mxu0  ;;  %2158 = vmax.xlane.f32.xlu0 %v2157_v33  ;;  %2161 = vmax.xlane.f32.xlu1 %v2160_v14  ;;  %v6658_v14 = vld [vmem:[%s8555_s1 + $0x60] sm:$0xff] }
 0xc91   :  { %v7712_v5 = vadd.f32 %v6652_v55, %v2096_v52  ;;  %v6659_v55 = vld [vmem:[%s8555_s1 + $0x78] sm:$0xff] }
 0xc92   :  { %v2166_v22 = vsel %vm516_vm3, %v7707_v2, -inf }
 0xc93   :  { %v5697_v50 = vpop.f32.mrb[40].mxu0  ;;  %v2163_v53 = vsel %vm516_vm3, %v7712_v5, -inf }
 0xc94   :  { %v7721_v13 = vadd.f32 %v6653_v42, %v5697_v50  ;;  %v2106_v57 = vpop.f32.mrb[41].mxu0  ;;  %2164 = vmax.xlane.f32.xlu0 %v2163_v53  ;;  %2167 = vmax.xlane.f32.xlu1 %v2166_v22  ;;  %v6660_v53 = vld [vmem:[%s8555_s1 + $0x70] sm:$0xff] }
 0xc95   :  { %v7726_v49 = vadd.f32 %v6654_v47, %v2106_v57 }
 0xc96   :  { %v2172_v60 = vsel %vm516_vm3, %v7721_v13, -inf }
 0xc97   :  { %v5700_v44 = vpop.f32.mrb[42].mxu0  ;;  %v2169_v7 = vsel %vm516_vm3, %v7726_v49, -inf }
 0xc98   :  { %v7735_v27 = vadd.f32 %v6655_v26, %v5700_v44  ;;  %v2116_v23 = vpop.f32.mrb[43].mxu0  ;;  %2170 = vmax.xlane.f32.xlu0 %v2169_v7  ;;  %2173 = vmax.xlane.f32.xlu1 %v2172_v60  ;;  %v1867_v60 = vrot.slane %v7510_v37, %v7225_v12 }
 0xc99   :  { %v7740_v36 = vadd.f32 %v6656_v54, %v2116_v23 }
 0xc9a   :  { %v2178_v15 = vsel %vm516_vm3, %v7735_v27, -inf }
 0xc9b   :  { %v5703_v61 = vpop.f32.mrb[44].mxu0  ;;  %v2175_v29 = vsel %vm516_vm3, %v7740_v36, -inf }
 0xc9c   :  { %v7749_v40 = vadd.f32 %v6657_v11, %v5703_v61  ;;  %v2126_v35 = vpop.f32.mrb[45].mxu0  ;;  %2176 = vmax.xlane.f32.xlu0 %v2175_v29  ;;  %2179 = vmax.xlane.f32.xlu1 %v2178_v15 }
 0xc9d   :  { %v7754_v17 = vadd.f32 %v6658_v14, %v2126_v35 }
 0xc9e   :  { %v2184_v33 = vsel %vm516_vm3, %v7749_v40, -inf }
 0xc9f   :  { %v5706_v10 = vpop.f32.mrb[46].mxu0  ;;  %v2181_v52 = vsel %vm516_vm3, %v7754_v17, -inf }
 0xca0   :  { %v7763_v22 = vadd.f32 %v6659_v55, %v5706_v10  ;;  %v2136_v50 = vpop.f32.mrb[47].mxu0  ;;  %2182 = vmax.xlane.f32.xlu0 %v2181_v52  ;;  %2185 = vmax.xlane.f32.xlu1 %v2184_v33 }
 0xca1   :  { %v7768_v42 = vadd.f32 %v6660_v53, %v2136_v50 }
 0xca2   :  { %v2190_v57 = vsel %vm516_vm3, %v7763_v22, -inf }
 0xca3   :  { %v2187_v47 = vsel %vm516_vm3, %v7768_v42, -inf }
 0xca4   :  { %2188 = vmax.xlane.f32.xlu0 %v2187_v47  ;;  %2191 = vmax.xlane.f32.xlu1 %v2190_v57 }
 0xcba   :  { %1869 = vrot.lane.b32.xlu0 %v1867_v60, %s6669_s12 }
 0xd14   :  { %v2150_v44 = vpop.xlane.xlu0 %2149 }
 0xd15   :  { %v2147_v61 = vpop.xlane.xlu1 %2146 }
 0xd19   :  { %v2153_v7 = vpop.xlane.xlu0 %2152  ;;  %v2156_v35 = vpop.xlane.xlu1 %2155 }
 0xd1d   :  { %v7777_v26 = vpop.xlane.xlu0 %2158  ;;  %v2162_v53 = vpop.xlane.xlu1 %2161 }
 0xd21   :  { %v7779_v23 = vpop.xlane.xlu0 %2164 }
 0xd25   :  { %v7781_v54 = vpop.xlane.xlu0 %2170 }
 0xd29   :  { %v7783_v15 = vpop.xlane.xlu0 %2176 }
 0xd2d   :  { %v7785_v29 = vpop.xlane.xlu0 %2182 }
 0xd31   :  { %v2189_v11 = vpop.xlane.xlu0 %2188 }
 0xd35   :  { %v1870_v14 = vpop.permute.xlu0 %1869 }
 0xd36   :  { %v1872_v37 = vadd.f32 %v1870_v14, %v7568_v0  ;;  %v1873_v33 = vadd.f32 %v7566_v46, %v1870_v14  ;;  %v1874_v10 = vadd.f32 %v1870_v14, %v7583_v8  ;;  %v1875_v52 = vadd.f32 %v7580_v59, %v1870_v14  ;;  %v2168_v46 = vpop.xlane.xlu1 %2167 }
 0xd37   :  { %v1876_v55 = vadd.f32 %v1870_v14, %v7589_v18  ;;  %v1877_v50 = vadd.f32 %v7586_v4, %v1870_v14  ;;  %v1878_v47 = vadd.f32 %v1870_v14, %v7597_v16  ;;  %v1879_v60 = vadd.f32 %v7594_v32, %v1870_v14 }
 0xd38   :  { %v6318_v57 = vpack.i.bf16 %v1873_v33, %v1872_v37  ;;  %v6323_v58 = vpack.i.bf16 %v1875_v52, %v1874_v10  ;;  %v2200_v8 = vsub.f32 %v7707_v2, %v2168_v46  ;;  %v2194_v32 = vsub.f32 %v7665_v31, %v2150_v44 }
 0xd39   :  { %v6328_v1 = vpack.i.bf16 %v1877_v50, %v1876_v55  ;;  %v6333_v0 = vpack.i.bf16 %v1879_v60, %v1878_v47  ;;  %v2193_v10 = vsub.f32 %v7670_v34, %v2147_v61  ;;  %v2196_v55 = vsub.f32 %v7679_v39, %v2156_v35 }
 0xd3a   :  { %6319 = vrot.lane.b32.xlu0 %v6318_v57, %s6669_s12  ;;  %6324 = vrot.lane.b32.xlu1 %v6323_v58, %s6669_s12  ;;  %v2174_v59 = vpop.xlane.xlu1 %2173  ;;  %v2223_v18 = vmul.f32 1.442695, %v2200_v8  ;;  %v2211_v58 = vmul.f32 1.442695, %v2194_v32  ;;  %v2207_v31 = vsub.f32 %v7768_v42, %v2189_v11  ;;  %v2198_v42 = vsub.f32 %v7693_v43, %v2162_v53 }
 0xd3b   :  { %v2202_v16 = vsub.f32 %v7721_v13, %v2174_v59  ;;  %v2209_v2 = vmul.f32 1.442695, %v2193_v10  ;;  %v2215_v57 = vmul.f32 1.442695, %v2196_v55  ;;  %v2199_v8 = vsub.f32 %v7712_v5, %v7779_v23 }
 0xd3c   :  { %6470 = vpow2.f32 %v2223_v18  ;;  %v2237_v34 = vmul.f32 1.442695, %v2207_v31  ;;  %v2219_v60 = vmul.f32 1.442695, %v2198_v42  ;;  %v2201_v32 = vsub.f32 %v7726_v49, %v7781_v54 }
 0xd3d   :  { %v2227_v14 = vmul.f32 1.442695, %v2202_v16  ;;  %v2221_v16 = vmul.f32 1.442695, %v2199_v8 }
 0xd3e   :  { %6329 = vrot.lane.b32.xlu0 %v6328_v1, %s6669_s12  ;;  %6334 = vrot.lane.b32.xlu1 %v6333_v0, %s6669_s12  ;;  %v2180_v4 = vpop.xlane.xlu1 %2179 }
 0xd3f   :  { %v2204_v37 = vsub.f32 %v7735_v27, %v2180_v4  ;;  %6472 = vpow2.f32 %v2227_v14  ;;  %v2195_v27 = vsub.f32 %v7684_v28, %v2153_v7 }
 0xd40   :  { %6474 = vpow2.f32 %v2211_v58  ;;  %v2203_v58 = vsub.f32 %v7740_v36, %v7783_v15 }
 0xd41   :  { %v2231_v1 = vmul.f32 1.442695, %v2204_v37  ;;  %v2213_v39 = vmul.f32 1.442695, %v2195_v27 }
 0xd42   :  { %v2186_v33 = vpop.xlane.xlu1 %2185 }
 0xd43   :  { %v2206_v52 = vsub.f32 %v7749_v40, %v2186_v33  ;;  %6476 = vpow2.f32 %v2231_v1  ;;  %v2225_v33 = vmul.f32 1.442695, %v2201_v32  ;;  %v2229_v1 = vmul.f32 1.442695, %v2203_v58 }
 0xd44   :  { %6478 = vpow2.f32 %v2209_v2 }
 0xd45   :  { %v2235_v13 = vmul.f32 1.442695, %v2206_v52  ;;  %v2205_v52 = vsub.f32 %v7754_v17, %v7785_v29 }
 0xd46   :  { %v2192_v44 = vpop.xlane.xlu1 %2191  ;;  %v7807_v50 = vpop.eup %6470 }
 0xd47   :  { %6480 = vpow2.f32 %v2235_v13  ;;  %v2208_v61 = vsub.f32 %v7763_v22, %v2192_v44  ;;  %v2262_v40 = vsel %vm516_vm3, %v7807_v50, 0.0  ;;  %v2197_v22 = vsub.f32 %v7698_v51, %v7777_v26 }
 0xd48   :  { %6482 = vpow2.f32 %v2215_v57  ;;  %v2233_v15 = vmul.f32 1.442695, %v2205_v52 }
 0xd49   :  { %v7813_v47 = vpop.eup %6472  ;;  %6484 = vpow2.f32 %v2237_v34  ;;  %v2239_v35 = vmul.f32 1.442695, %v2208_v61  ;;  %v2217_v59 = vmul.f32 1.442695, %v2197_v22 }
 0xd4a   :  { %v7816_v11 = vpop.eup %6474  ;;  %v2268_v28 = vsel %vm516_vm3, %v7813_v47, 0.0  ;;  %6486 = vpow2.f32 %v2213_v39 }
 0xd4b   :  { %v2244_v0 = vsel %vm516_vm3, %v7816_v11, 0.0  ;;  %6488 = vpow2.f32 %v2239_v35 }
 0xd4c   :  { %6490 = vpow2.f32 %v2219_v60 }
 0xd4d   :  { %v7820_v7 = vpop.eup %6476  ;;  %6492 = vpow2.f32 %v2217_v59 }
 0xd4e   :  { %v7826_v43 = vpop.eup %6478  ;;  %v2274_v53 = vsel %vm516_vm3, %v7820_v7, 0.0  ;;  %6494 = vpow2.f32 %v2221_v16 }
 0xd4f   :  { %v2241_v51 = vsel %vm516_vm3, %v7826_v43, 0.0  ;;  %6496 = vpow2.f32 %v2225_v33 }
 0xd50   :  { %6498 = vpow2.f32 %v2229_v1 }
 0xd51   :  { %v7830_v46 = vpop.eup %6480  ;;  %6500 = vpow2.f32 %v2233_v15 }
 0xd52   :  { %v7836_v26 = vpop.eup %6482  ;;  %v2280_v4 = vsel %vm516_vm3, %v7830_v46, 0.0 }
 0xd53   :  { %v7840_v18 = vpop.eup %6484  ;;  %v2250_v5 = vsel %vm516_vm3, %v7836_v26, 0.0 }
 0xd54   :  { %v7846_v23 = vpop.eup %6486  ;;  %v2283_v14 = vsel %vm516_vm3, %v7840_v18, 0.0 }
 0xd55   :  { %v7850_v37 = vpop.eup %6488  ;;  %v2247_v49 = vsel %vm516_vm3, %v7846_v23, 0.0 }
 0xd56   :  { %v7856_v54 = vpop.eup %6490  ;;  %v2286_v10 = vsel %vm516_vm3, %v7850_v37, 0.0 }
 0xd57   :  { %v2256_v2 = vsel %vm516_vm3, %v7856_v54, 0.0  ;;  %v7864_v36 = vpop.eup %6492 }
 0xd58   :  { %v2253_v55 = vsel %vm516_vm3, %v7864_v36, 0.0  ;;  %v7868_v13 = vpop.eup %6494 }
 0xd59   :  { %v2259_v31 = vsel %vm516_vm3, %v7868_v13, 0.0  ;;  %v7872_v17 = vpop.eup %6496 }
 0xd5a   :  { %v2265_v29 = vsel %vm516_vm3, %v7872_v17, 0.0  ;;  %v7876_v44 = vpop.eup %6498 }
 0xd5b   :  { %v2271_v27 = vsel %vm516_vm3, %v7876_v44, 0.0  ;;  %v7880_v57 = vpop.eup %6500 }
 0xd5c   :  { %v2277_v34 = vsel %vm516_vm3, %v7880_v57, 0.0 }
 0xd5d   :  { %2263 = vadd.xlane.f32.xlu0 %v2262_v40 }
 0xd61   :  { %2269 = vadd.xlane.f32.xlu0 %v2268_v28 }
 0xd62   :  { %2245 = vadd.xlane.f32.xlu1 %v2244_v0 }
 0xd65   :  { %2275 = vadd.xlane.f32.xlu0 %v2274_v53 }
 0xd66   :  { %2242 = vadd.xlane.f32.xlu1 %v2241_v51 }
 0xd69   :  { %2281 = vadd.xlane.f32.xlu0 %v2280_v4 }
 0xd6a   :  { %2251 = vadd.xlane.f32.xlu1 %v2250_v5 }
 0xd6d   :  { %2284 = vadd.xlane.f32.xlu0 %v2283_v14 }
 0xd6e   :  { %2248 = vadd.xlane.f32.xlu1 %v2247_v49 }
 0xd71   :  { %2287 = vadd.xlane.f32.xlu0 %v2286_v10 }
 0xd72   :  { %2257 = vadd.xlane.f32.xlu1 %v2256_v2 }
 0xd76   :  { %2254 = vadd.xlane.f32.xlu1 %v2253_v55 }
 0xd7a   :  { %2260 = vadd.xlane.f32.xlu1 %v2259_v31 }
 0xd7e   :  { %2266 = vadd.xlane.f32.xlu1 %v2265_v29 }
 0xd82   :  { %2272 = vadd.xlane.f32.xlu1 %v2271_v27 }
 0xd86   :  { %2278 = vadd.xlane.f32.xlu1 %v2277_v34 }
 0xdac   :  { %v6320_v61 = vpop.permute.xlu0 %6319  ;;  %v6325_v42 = vpop.permute.xlu1 %6324 }
 0xdad   :  { %v6322_v40 = vunpack.i.h.bf16 %v6320_v61  ;;  %v6321_v39 = vunpack.i.l.bf16 %v6320_v61  ;;  %v6327_v35 = vunpack.i.h.bf16 %v6325_v42  ;;  %v6326_v28 = vunpack.i.l.bf16 %v6325_v42 }
 0xdaf   :  { %v6090_v22 = vpack.c.bf16 %v6322_v40, %v6321_v39  ;;  %v6094_v0 = vpack.c.bf16 %v6327_v35, %v6326_v28 }
 0xdb0   :  { %v6330_v60 = vpop.permute.xlu0 %6329  ;;  %v6335_v8 = vpop.permute.xlu1 %6334 }
 0xdb1   :  { %v6332_v53 = vunpack.i.h.bf16 %v6330_v60  ;;  %v6331_v59 = vunpack.i.l.bf16 %v6330_v60  ;;  %6091 = vmatprep.subr.bf16.mxu1 %v6090_v22  ;;  %v6337_v51 = vunpack.i.h.bf16 %v6335_v8  ;;  %v6336_v4 = vunpack.i.l.bf16 %v6335_v8 }
 0xdb2   :  { %6093 = vmatpush3.bf16.msra.mxu1 %v6090_v22 }
 0xdb3   :  { %6095 = vmatprep.subr.bf16.mxu1 %v6094_v0  ;;  %v6098_v16 = vpack.c.bf16 %v6332_v53, %v6331_v59  ;;  %v6102_v32 = vpack.c.bf16 %v6337_v51, %v6336_v4 }
 0xdb6   :  { %6097 = vmatpush3.bf16.msra.mxu1 %v6094_v0 }
 0xdb7   :  { %6099 = vmatprep.subr.bf16.mxu1 %v6098_v16 }
 0xdba   :  { %6101 = vmatpush3.bf16.msra.mxu1 %v6098_v16 }
 0xdbb   :  { %6103 = vmatprep.subr.bf16.mxu1 %v6102_v32 }
 0xdbe   :  { %6105 = vmatpush3.bf16.msra.mxu1 %v6102_v32 }
 0xdea   :  { %v2264_v33 = vpop.xlane.xlu0 %2263 }
 0xdee   :  { %v2270_v10 = vpop.xlane.xlu0 %2269 }
 0xdef   :  { %v2246_v5 = vpop.xlane.xlu1 %2245 }
 0xdf0   :  { %6502 = vrcp.f32 %v2246_v5 }
 0xdf2   :  { %v2276_v31 = vpop.xlane.xlu0 %2275 }
 0xdf3   :  { %v2243_v14 = vpop.xlane.xlu1 %2242 }
 0xdf4   :  { %6504 = vrcp.f32 %v2243_v14 }
 0xdf6   :  { %v2282_v39 = vpop.xlane.xlu0 %2281 }
 0xdf7   :  { %v2252_v58 = vpop.xlane.xlu1 %2251 }
 0xdf8   :  { %6506 = vrcp.f32 %v2252_v58 }
 0xdfa   :  { %v6503_v1 = vpop.eup %6502  ;;  %v2285_v28 = vpop.xlane.xlu0 %2284 }
 0xdfb   :  { %v2249_v49 = vpop.xlane.xlu1 %2248  ;;  %v2306_v55 = vmul.f32 %v6503_v1, %v7816_v11 }
 0xdfc   :  { %6508 = vrcp.f32 %v2249_v49 }
 0xdfe   :  { %v6505_v52 = vpop.eup %6504  ;;  %v2288_v8 = vpop.xlane.xlu0 %2287 }
 0xdff   :  { %v2258_v2 = vpop.xlane.xlu1 %2257  ;;  %v2305_v15 = vmul.f32 %v6505_v52, %v7826_v43 }
 0xe00   :  { %6510 = vrcp.f32 %v2258_v2 }
 0xe01   :  { %5723 = vmatprep.mubr.msk.f32.mxu1 %vm516_vm3, %v2305_v15 }
 0xe02   :  { %5724 = vmatmul.mubr.msk.f32.vlgmr.msra.gmra.mrb[40].mxu1 %vm516_vm3, %v2306_v55  ;;  %v6507_v27 = vpop.eup %6506 }
 0xe03   :  { %v2255_v29 = vpop.xlane.xlu1 %2254  ;;  %v2308_v43 = vmul.f32 %v6507_v27, %v7836_v26 }
 0xe04   :  { %6512 = vrcp.f32 %v2255_v29 }
 0xe05   :  { %6514 = vrcp.f32 %v2264_v33 }
 0xe06   :  { %v6509_v34 = vpop.eup %6508 }
 0xe07   :  { %v2261_v61 = vpop.xlane.xlu1 %2260  ;;  %v2307_v40 = vmul.f32 %v6509_v34, %v7846_v23 }
 0xe08   :  { %6516 = vrcp.f32 %v2261_v61 }
 0xe09   :  { %5726 = vmatprep.mubr.msk.f32.mxu1 %vm516_vm3, %v2307_v40  ;;  %6518 = vrcp.f32 %v2270_v10 }
 0xe0a   :  { %5727 = vmatmul.mubr.msk.f32.gmra.mrb[42].mxu1 %vm516_vm3, %v2308_v43  ;;  %v6511_v42 = vpop.eup %6510 }
 0xe0b   :  { %v2267_v11 = vpop.xlane.xlu1 %2266  ;;  %v2310_v23 = vmul.f32 %v6511_v42, %v7856_v54 }
 0xe0c   :  { %6520 = vrcp.f32 %v2267_v11 }
 0xe0d   :  { %6522 = vrcp.f32 %v2276_v31 }
 0xe0e   :  { %v6513_v35 = vpop.eup %6512 }
 0xe0f   :  { %v2273_v22 = vpop.xlane.xlu1 %2272  ;;  %v2309_v60 = vmul.f32 %v6513_v35, %v7864_v36  ;;  %v6515_v0 = vpop.eup %6514 }
 0xe10   :  { %6524 = vrcp.f32 %v2273_v22  ;;  %v2312_v51 = vmul.f32 %v6515_v0, %v7807_v50 }
 0xe11   :  { %5729 = vmatprep.mubr.msk.f32.mxu1 %vm516_vm3, %v2309_v60  ;;  %6526 = vrcp.f32 %v2282_v39 }
 0xe12   :  { %v6517_v26 = vpop.eup %6516  ;;  %5730 = vmatmul.mubr.msk.f32.gmra.mrb[44].mxu1 %vm516_vm3, %v2310_v23  ;;  %6528 = vrcp.f32 %v2285_v28 }
 0xe13   :  { %v2279_v53 = vpop.xlane.xlu1 %2278  ;;  %v2311_v59 = vmul.f32 %v6517_v26, %v7868_v13  ;;  %v6519_v4 = vpop.eup %6518 }
 0xe14   :  { %6530 = vrcp.f32 %v2279_v53  ;;  %v2314_v16 = vmul.f32 %v6519_v4, %v7813_v47 }
 0xe15   :  { %5732 = vmatprep.mubr.msk.f32.mxu1 %vm516_vm3, %v2311_v59  ;;  %6532 = vrcp.f32 %v2288_v8 }
 0xe16   :  { %v6521_v36 = vpop.eup %6520  ;;  %5733 = vmatmul.mubr.msk.f32.gmra.mrb[46].mxu1 %vm516_vm3, %v2312_v51 }
 0xe17   :  { %v2313_v54 = vmul.f32 %v6521_v36, %v7872_v17  ;;  %v6523_v32 = vpop.eup %6522 }
 0xe18   :  { %v2316_v14 = vmul.f32 %v6523_v32, %v7820_v7 }
 0xe19   :  { %5735 = vmatprep.mubr.msk.f32.mxu1 %vm516_vm3, %v2313_v54 }
 0xe1a   :  { %v6525_v5 = vpop.eup %6524  ;;  %5736 = vmatmul.mubr.msk.f32.gmra.mrb[48].mxu1 %vm516_vm3, %v2314_v16 }
 0xe1b   :  { %v2315_v13 = vmul.f32 %v6525_v5, %v7876_v44  ;;  %v6527_v50 = vpop.eup %6526  ;;  %v5071_v44 = vld [vmem:[%s8556_s5 + $0x20] sm:$0xff] }
 0xe1c   :  { %v6529_v33 = vpop.eup %6528  ;;  %v2318_v47 = vmul.f32 %v6527_v50, %v7830_v46  ;;  %v5072_v46 = vld [vmem:[%s8556_s5 + $0x28] sm:$0xff] }
 0xe1d   :  { %5738 = vmatprep.mubr.msk.f32.mxu1 %vm516_vm3, %v2315_v13  ;;  %v2319_v10 = vmul.f32 %v6529_v33, %v7840_v18  ;;  %v5073_v18 = vld [vmem:[%s8556_s5 + $0x30] sm:$0xff] }
 0xe1e   :  { %v6531_v58 = vpop.eup %6530  ;;  %5739 = vmatmul.mubr.msk.f32.gmra.mrb[50].mxu1 %vm516_vm3, %v2316_v14 }
 0xe1f   :  { %v2317_v17 = vmul.f32 %v6531_v58, %v7880_v57  ;;  %v6533_v49 = vpop.eup %6532  ;;  %v6106_v57 = vpack.c.bf16 %v5072_v46, %v5071_v44 }
 0xe20   :  { %v2320_v7 = vmul.f32 %v6533_v49, %v7850_v37  ;;  %v5074_v37 = vld [vmem:[%s8556_s5 + $0x38] sm:$0xff] }
 0xe21   :  { %5741 = vmatprep.mubr.msk.f32.mxu1 %vm516_vm3, %v2317_v17  ;;  %6107 = vmatprep.subr.bf16.mxu1 %v6106_v57  ;;  %v6110_v1 = vpack.c.bf16 %v5074_v37, %v5073_v18 }
 0xe22   :  { %5742 = vmatmul.mubr.msk.f32.gmra.mrb[52].mxu1 %vm516_vm3, %v2318_v47 }
 0xe23   :  { %5744 = vmatprep.mubr.msk.f32.mxu1 %vm516_vm3, %v2319_v10  ;;  %6109 = vmatpush3.bf16.msra.mxu1 %v6106_v57 }
 0xe24   :  { %6111 = vmatprep.subr.bf16.mxu1 %v6110_v1 }
 0xe26   :  { %5745 = vmatmul.mubr.msk.f32.gmra.mrb[54].mxu1 %vm516_vm3, %v2320_v7  ;;  %v7955_v7 = vld [vmem:[%s8554_s8 + $0x8] sm:$0xff] }
 0xe27   :  { %6113 = vmatpush3.bf16.msra.mxu1 %v6110_v1  ;;  %v2578_v44 = vrot.slane %v7955_v7, %v7319_v62 }
 0xed5   :  { %v5725_v52 = vpop.f32.mrb[40].mxu1 }
 0xed6   :  { %v2467_v2 = vpop.f32.mrb[41].mxu1  ;;  %v2547_v40 = vmul.f32 %v5725_v52, %v6799_v30 }
 0xed7   :  { %v2546_v11 = vmul.f32 %v6799_v30, %v2467_v2 }
 0xedd   :  { %v5728_v15 = vpop.f32.mrb[42].mxu1 }
 0xede   :  { %v2477_v55 = vpop.f32.mrb[43].mxu1  ;;  %v2549_v60 = vmul.f32 %v5728_v15, %v6799_v30 }
 0xedf   :  { %v2548_v26 = vmul.f32 %v6799_v30, %v2477_v55 }
 0xee5   :  { %v5731_v31 = vpop.f32.mrb[44].mxu1 }
 0xee6   :  { %v2487_v29 = vpop.f32.mrb[45].mxu1  ;;  %v2551_v4 = vmul.f32 %v5731_v31, %v6799_v30 }
 0xee7   :  { %v2550_v16 = vmul.f32 %v6799_v30, %v2487_v29 }
 0xee9   :  { %v5734_v27 = vpop.f32.mrb[46].mxu1 }
 0xeea   :  { %v2497_v34 = vpop.f32.mrb[47].mxu1  ;;  %v2553_v14 = vmul.f32 %v5734_v27, %v6799_v30 }
 0xeeb   :  { %v2552_v17 = vmul.f32 %v6799_v30, %v2497_v34 }
 0xeed   :  { %v5737_v61 = vpop.f32.mrb[48].mxu1 }
 0xeee   :  { %v2555_v39 = vmul.f32 %v5737_v61, %v6879_v20  ;;  %v2507_v43 = vpop.f32.mrb[49].mxu1 }
 0xeef   :  { %v2554_v42 = vmul.f32 %v2507_v43, %v6879_v20 }
 0xef0   :  { %v2563_v35 = vadd.f32 %v2555_v39, %v2547_v40 }
 0xef1   :  { %v2562_v28 = vadd.f32 %v2554_v42, %v2546_v11  ;;  %v5740_v22 = vpop.f32.mrb[50].mxu1 }
 0xef2   :  { %v2557_v23 = vmul.f32 %v5740_v22, %v6879_v20  ;;  %v2517_v0 = vpop.f32.mrb[51].mxu1 }
 0xef3   :  { %v2556_v53 = vmul.f32 %v2517_v0, %v6879_v20  ;;  %5755 = vmatprep.mubr.msk.f32.mxu1 %vm77_vm0, %v2562_v28 }
 0xef4   :  { %v2565_v59 = vadd.f32 %v2557_v23, %v2549_v60  ;;  %5756 = vmatmul.mubr.msk.f32.vlgmr.msra.gmra.mrb[56].mxu1 %vm77_vm0, %v2563_v35 }
 0xef5   :  { %v2564_v8 = vadd.f32 %v2556_v53, %v2548_v26  ;;  %v5743_v51 = vpop.f32.mrb[52].mxu1 }
 0xef6   :  { %v2559_v36 = vmul.f32 %v5743_v51, %v6879_v20  ;;  %v2527_v54 = vpop.f32.mrb[53].mxu1 }
 0xef7   :  { %v2558_v32 = vmul.f32 %v2527_v54, %v6879_v20  ;;  %5758 = vmatprep.mubr.msk.f32.mxu1 %vm77_vm0, %v2564_v8 }
 0xef8   :  { %v2567_v5 = vadd.f32 %v2559_v36, %v2551_v4  ;;  %5759 = vmatmul.mubr.msk.f32.gmra.mrb[58].mxu1 %vm77_vm0, %v2565_v59 }
 0xef9   :  { %v2566_v13 = vadd.f32 %v2558_v32, %v2550_v16  ;;  %v5746_v50 = vpop.f32.mrb[54].mxu1 }
 0xefa   :  { %v2561_v33 = vmul.f32 %v5746_v50, %v6879_v20  ;;  %v2537_v58 = vpop.f32.mrb[55].mxu1 }
 0xefb   :  { %v2560_v47 = vmul.f32 %v2537_v58, %v6879_v20  ;;  %5761 = vmatprep.mubr.msk.f32.mxu1 %vm77_vm0, %v2566_v13 }
 0xefc   :  { %v2569_v49 = vadd.f32 %v2561_v33, %v2553_v14  ;;  %5762 = vmatmul.mubr.msk.f32.gmra.mrb[60].mxu1 %vm77_vm0, %v2567_v5 }
 0xefd   :  { %v2568_v10 = vadd.f32 %v2560_v47, %v2552_v17 }
 0xeff   :  { %5764 = vmatprep.mubr.msk.f32.mxu1 %vm77_vm0, %v2568_v10 }
 0xf00   :  { %5765 = vmatmul.mubr.msk.f32.gmra.mrb[62].mxu1 %vm77_vm0, %v2569_v49 }
 0xfc7   :  { %v5757_v46 = vpop.f32.mrb[56].mxu1 }
 0xfc8   :  { %v2675_v57 = vadd.f32 %v5757_v46, %v2578_v44  ;;  %v2669_v18 = vpop.f32.mrb[57].mxu1 }
 0xfc9   :  { %v2670_v37 = vadd.f32 %v2669_v18, %v2578_v44 }
 0xfca   :  { %v2709_v1 = vadd.f32 %v2675_v57, %v7526_v48 }
 0xfcb   :  { %v5760_v52 = vpop.f32.mrb[58].mxu1  ;;  %v2708_v2 = vadd.f32 %v2670_v37, %v7524_v3 }
 0xfcc   :  { %v2679_v15 = vpop.f32.mrb[59].mxu1  ;;  %v2719_v55 = vsel %vm77_vm0, %v2709_v1, 0.0  ;;  %v2685_v27 = vadd.f32 %v5760_v52, %v2578_v44 }
 0xfcd   :  { %v2680_v31 = vadd.f32 %v2679_v15, %v2578_v44  ;;  %2720 = vadd.xlane.f32.xlu0 %v2719_v55  ;;  %v2716_v40 = vsel %vm77_vm0, %v2708_v2, 0.0 }
 0xfce   :  { %v2711_v11 = vadd.f32 %v2685_v27, %v7538_v45 }
 0xfcf   :  { %v5763_v29 = vpop.f32.mrb[60].mxu1  ;;  %v2710_v34 = vadd.f32 %v2680_v31, %v7535_v25 }
 0xfd0   :  { %v2689_v61 = vpop.f32.mrb[61].mxu1  ;;  %v2695_v3 = vadd.f32 %v5763_v29, %v2578_v44  ;;  %v2725_v0 = vsel %vm77_vm0, %v2711_v11, 0.0 }
 0xfd1   :  { %v2690_v39 = vadd.f32 %v2689_v61, %v2578_v44  ;;  %2717 = vadd.xlane.f32.xlu0 %v2716_v40  ;;  %v2722_v35 = vsel %vm77_vm0, %v2710_v34, 0.0 }
 0xfd2   :  { %v2713_v60 = vadd.f32 %v2695_v3, %v7546_v38  ;;  %v5084_v3 = vld [vmem:[%s8557_s6 + $0x28] sm:$0xff] }
 0xfd3   :  { %v2712_v43 = vadd.f32 %v2690_v39, %v7544_v6  ;;  %v5766_v48 = vpop.f32.mrb[62].mxu1 }
 0xfd4   :  { %v2699_v42 = vpop.f32.mrb[63].mxu1  ;;  %v2705_v23 = vadd.f32 %v5766_v48, %v2578_v44  ;;  %v2731_v26 = vsel %vm77_vm0, %v2713_v60, 0.0 }
 0xfd5   :  { %v2700_v28 = vadd.f32 %v2699_v42, %v2578_v44  ;;  %2723 = vadd.xlane.f32.xlu0 %v2722_v35  ;;  %v2728_v22 = vsel %vm77_vm0, %v2712_v43, 0.0  ;;  %v5085_v35 = vld [vmem:[%s8557_s6 + $0x30] sm:$0xff] }
 0xfd6   :  { %2729 = vadd.xlane.f32.xlu1 %v2728_v22  ;;  %v2715_v45 = vadd.f32 %v2705_v23, %v7556_v24 }
 0xfd7   :  { %v2714_v25 = vadd.f32 %v2700_v28, %v7554_v41  ;;  %v5086_v28 = vld [vmem:[%s8557_s6 + $0x38] sm:$0xff] }
 0xfd8   :  { %v2737_v53 = vsel %vm77_vm0, %v2715_v45, 0.0  ;;  %v6118_v22 = vpack.c.bf16 %v5086_v28, %v5085_v35 }
 0xfd9   :  { %2726 = vadd.xlane.f32.xlu0 %v2725_v0  ;;  %v2734_v6 = vsel %vm77_vm0, %v2714_v25, 0.0 }
 0xfda   :  { %2735 = vadd.xlane.f32.xlu1 %v2734_v6 }
 0xfdd   :  { %2732 = vadd.xlane.f32.xlu0 %v2731_v26 }
 0xfe1   :  { %2738 = vadd.xlane.f32.xlu0 %v2737_v53 }
0x105a   :  { %v2721_v59 = vpop.xlane.xlu0 %2720 }
0x105b   :  { %v2741_v8 = vmul.f32 0.03125, %v2721_v59 }
0x105d   :  { %v7975_v41 = vsub.f32 %v2709_v1, %v2741_v8 }
0x105e   :  { %v2718_v38 = vpop.xlane.xlu0 %2717 }
0x105f   :  { %v2740_v51 = vmul.f32 0.03125, %v2718_v38  ;;  %v2757_v4 = vmul.f32 %v7975_v41, %v7975_v41 }
0x1061   :  { %v7979_v36 = vsub.f32 %v2708_v2, %v2740_v51  ;;  %v2767_v54 = vsel %vm77_vm0, %v2757_v4, 0.0 }
0x1062   :  { %v2724_v24 = vpop.xlane.xlu0 %2723  ;;  %2768 = vadd.xlane.f32.xlu0 %v2767_v54 }
0x1063   :  { %v2742_v16 = vmul.f32 0.03125, %v2724_v24  ;;  %v2730_v32 = vpop.xlane.xlu1 %2729  ;;  %v2756_v5 = vmul.f32 %v7979_v36, %v7979_v36 }
0x1064   :  { %v2744_v13 = vmul.f32 0.03125, %v2730_v32  ;;  %v2823_v32 = vrot.slane %v7955_v7, %v7322_v56 }
0x1065   :  { %v7984_v50 = vsub.f32 %v2710_v34, %v2742_v16  ;;  %v2764_v14 = vsel %vm77_vm0, %v2756_v5, 0.0 }
0x1066   :  { %v7987_v33 = vsub.f32 %v2712_v43, %v2744_v13  ;;  %v2727_v58 = vpop.xlane.xlu0 %2726  ;;  %2765 = vadd.xlane.f32.xlu1 %v2764_v14 }
0x1067   :  { %v2743_v17 = vmul.f32 0.03125, %v2727_v58  ;;  %v2736_v47 = vpop.xlane.xlu1 %2735  ;;  %v2758_v49 = vmul.f32 %v7984_v50, %v7984_v50 }
0x1068   :  { %v2746_v10 = vmul.f32 0.03125, %v2736_v47  ;;  %v2760_v57 = vmul.f32 %v7987_v33, %v7987_v33 }
0x1069   :  { %v7991_v44 = vsub.f32 %v2711_v11, %v2743_v17  ;;  %v2770_v46 = vsel %vm77_vm0, %v2758_v49, 0.0  ;;  %v5083_v11 = vld [vmem:[%s8557_s6 + $0x20] sm:$0xff] }
0x106a   :  { %v7996_v18 = vsub.f32 %v2714_v25, %v2746_v10  ;;  %v2733_v37 = vpop.xlane.xlu0 %2732  ;;  %2771 = vadd.xlane.f32.xlu1 %v2770_v46  ;;  %v2776_v55 = vsel %vm77_vm0, %v2760_v57, 0.0  ;;  %v6114_v42 = vpack.c.bf16 %v5084_v3, %v5083_v11 }
0x106b   :  { %v2745_v1 = vmul.f32 0.03125, %v2733_v37  ;;  %v2759_v52 = vmul.f32 %v7991_v44, %v7991_v44  ;;  %v2835_v37 = vrot.slane %v7955_v7, %v7435_v63 }
0x106c   :  { %v2762_v31 = vmul.f32 %v7996_v18, %v7996_v18  ;;  %6115 = vmatprep.subr.bf16.mxu0 %v6114_v42 }
0x106d   :  { %v8000_v2 = vsub.f32 %v2713_v60, %v2745_v1  ;;  %v2773_v15 = vsel %vm77_vm0, %v2759_v52, 0.0  ;;  %6117 = vmatpush3.bf16.msra.mxu0 %v6114_v42 }
0x106e   :  { %2774 = vadd.xlane.f32.xlu0 %v2773_v15  ;;  %v2739_v29 = vpop.xlane.xlu0 %2738  ;;  %2777 = vadd.xlane.f32.xlu1 %v2776_v55  ;;  %v2782_v39 = vsel %vm77_vm0, %v2762_v31, 0.0 }
0x106f   :  { %v2747_v27 = vmul.f32 0.03125, %v2739_v29  ;;  %v2761_v34 = vmul.f32 %v8000_v2, %v8000_v2  ;;  %6119 = vmatprep.subr.bf16.mxu0 %v6118_v22 }
0x1071   :  { %v8008_v61 = vsub.f32 %v2715_v45, %v2747_v27  ;;  %v2779_v40 = vsel %vm77_vm0, %v2761_v34, 0.0  ;;  %6121 = vmatpush3.bf16.msra.mxu0 %v6118_v22 }
0x1072   :  { %2780 = vadd.xlane.f32.xlu0 %v2779_v40  ;;  %2783 = vadd.xlane.f32.xlu1 %v2782_v39 }
0x1073   :  { %v2763_v43 = vmul.f32 %v8008_v61, %v8008_v61 }
0x1075   :  { %v2785_v48 = vsel %vm77_vm0, %v2763_v43, 0.0 }
0x1076   :  { %2786 = vadd.xlane.f32.xlu0 %v2785_v48 }
0x10ef   :  { %v2769_v25 = vpop.xlane.xlu0 %2768 }
0x10f0   :  { %v2789_v60 = vmul.f32 0.03125, %v2769_v25 }
0x10f2   :  { %v2797_v23 = vadd.f32 1e-12, %v2789_v60 }
0x10f3   :  { %v2766_v0 = vpop.xlane.xlu1 %2765 }
0x10f4   :  { %6534 = vrsqrt.f32 %v2797_v23  ;;  %v2788_v6 = vmul.f32 0.03125, %v2766_v0 }
0x10f6   :  { %v2796_v45 = vadd.f32 1e-12, %v2788_v6 }
0x10f7   :  { %v2772_v26 = vpop.xlane.xlu1 %2771 }
0x10f8   :  { %6536 = vrsqrt.f32 %v2796_v45  ;;  %v2790_v53 = vmul.f32 0.03125, %v2772_v26  ;;  %v5095_v45 = vld [vmem:[%s8558_s7 + $0x40] sm:$0xff] }
0x10fa   :  { %v2798_v59 = vadd.f32 1e-12, %v2790_v53  ;;  %v5097_v53 = vld [vmem:[%s8558_s7 + $0x50] sm:$0xff] }
0x10fb   :  { %v2775_v8 = vpop.xlane.xlu0 %2774  ;;  %v2778_v38 = vpop.xlane.xlu1 %2777 }
0x10fc   :  { %6538 = vrsqrt.f32 %v2798_v59  ;;  %v2791_v51 = vmul.f32 0.03125, %v2775_v8  ;;  %v2792_v4 = vmul.f32 0.03125, %v2778_v38  ;;  %v5098_v59 = vld [vmem:[%s8558_s7 + $0x58] sm:$0xff]  ;;  %v5099_v38 = vld [vmem:[%s8558_s7 + $0x60] sm:$0xff] }
0x10fd   :  { %v6126_v8 = vpack.c.bf16 %v5098_v59, %v5097_v53 }
0x10fe   :  { %v6535_v54 = vpop.eup %6534  ;;  %v2799_v24 = vadd.f32 1e-12, %v2791_v51  ;;  %v2800_v16 = vadd.f32 1e-12, %v2792_v4  ;;  %v5100_v51 = vld [vmem:[%s8558_s7 + $0x68] sm:$0xff] }
0x10ff   :  { %v2781_v5 = vpop.xlane.xlu0 %2780  ;;  %v2784_v13 = vpop.xlane.xlu1 %2783  ;;  %v2813_v14 = vmul.f32 %v6535_v54, %v7975_v41  ;;  %v6130_v4 = vpack.c.bf16 %v5100_v51, %v5099_v38  ;;  %v5101_v54 = vld [vmem:[%s8558_s7 + $0x70] sm:$0xff] }
0x1100   :  { %6540 = vrsqrt.f32 %v2799_v24  ;;  %v2793_v58 = vmul.f32 0.03125, %v2781_v5  ;;  %v2794_v17 = vmul.f32 0.03125, %v2784_v13  ;;  %v5102_v24 = vld [vmem:[%s8558_s7 + $0x78] sm:$0xff] }
0x1101   :  { %6542 = vrsqrt.f32 %v2800_v16  ;;  %v2825_v1 = vmul.f32 %v2823_v32, %v2813_v14  ;;  %v6134_v16 = vpack.c.bf16 %v5102_v24, %v5101_v54 }
0x1102   :  { %v6537_v47 = vpop.eup %6536  ;;  %v2801_v49 = vadd.f32 1e-12, %v2793_v58  ;;  %v2802_v10 = vadd.f32 1e-12, %v2794_v17 }
0x1103   :  { %v2787_v46 = vpop.xlane.xlu0 %2786  ;;  %v2812_v57 = vmul.f32 %v6537_v47, %v7979_v36  ;;  %v8036_v27 = vadd.f32 %v2835_v37, %v2825_v1 }
0x1104   :  { %6544 = vrsqrt.f32 %v2801_v49  ;;  %v2795_v52 = vmul.f32 0.03125, %v2787_v46 }
0x1105   :  { %6546 = vrsqrt.f32 %v2802_v10  ;;  %v2824_v15 = vmul.f32 %v2823_v32, %v2812_v57 }
0x1106   :  { %v6539_v55 = vpop.eup %6538  ;;  %v2803_v41 = vadd.f32 1e-12, %v2795_v52 }
0x1107   :  { %v8033_v31 = vadd.f32 %v2835_v37, %v2824_v15  ;;  %v2814_v29 = vmul.f32 %v6539_v55, %v7984_v50 }
0x1108   :  { %6548 = vrsqrt.f32 %v2803_v41 }
0x1109   :  { %5775 = vmatprep.mubr.msk.f32.mxu0 %vm77_vm0, %v8033_v31  ;;  %v2826_v36 = vmul.f32 %v2823_v32, %v2814_v29 }
0x110a   :  { %v6541_v34 = vpop.eup %6540  ;;  %5776 = vmatmul.mubr.msk.f32.vlgmr.msra.gmra.mrb[48].mxu0 %vm77_vm0, %v8036_v27 }
0x110b   :  { %v6543_v40 = vpop.eup %6542  ;;  %v8042_v39 = vadd.f32 %v2835_v37, %v2826_v36  ;;  %v2815_v43 = vmul.f32 %v6541_v34, %v7991_v44 }
0x110c   :  { %v2816_v48 = vmul.f32 %v6543_v40, %v7987_v33 }
0x110d   :  { %5778 = vmatprep.mubr.msk.f32.mxu0 %vm77_vm0, %v8042_v39  ;;  %v2827_v50 = vmul.f32 %v2823_v32, %v2815_v43 }
0x110e   :  { %v6545_v11 = vpop.eup %6544  ;;  %v2828_v3 = vmul.f32 %v2823_v32, %v2816_v48 }
0x110f   :  { %v6547_v42 = vpop.eup %6546  ;;  %v8048_v35 = vadd.f32 %v2835_v37, %v2827_v50  ;;  %v2817_v28 = vmul.f32 %v6545_v11, %v8000_v2 }
0x1110   :  { %v8051_v22 = vadd.f32 %v2835_v37, %v2828_v3  ;;  %v2818_v25 = vmul.f32 %v6547_v42, %v7996_v18 }
0x1111   :  { %5779 = vmatmul.mubr.msk.f32.gmra.mrb[50].mxu0 %vm77_vm0, %v8048_v35  ;;  %v2829_v44 = vmul.f32 %v2823_v32, %v2817_v28 }
0x1112   :  { %v6549_v33 = vpop.eup %6548  ;;  %5781 = vmatprep.mubr.msk.f32.mxu0 %vm77_vm0, %v8051_v22  ;;  %v2830_v60 = vmul.f32 %v2823_v32, %v2818_v25 }
0x1113   :  { %v8058_v23 = vadd.f32 %v2835_v37, %v2829_v44  ;;  %v2819_v0 = vmul.f32 %v6549_v33, %v8008_v61  ;;  %v5096_v61 = vld [vmem:[%s8558_s7 + $0x48] sm:$0xff] }
0x1114   :  { %v8061_v6 = vadd.f32 %v2835_v37, %v2830_v60  ;;  %v6122_v26 = vpack.c.bf16 %v5096_v61, %v5095_v45 }
0x1115   :  { %5782 = vmatmul.mubr.msk.f32.gmra.mrb[52].mxu0 %vm77_vm0, %v8058_v23  ;;  %v2831_v2 = vmul.f32 %v2823_v32, %v2819_v0  ;;  %v8098_v32 = vld [vmem:[%s8559_s9] sm:$0xf] }
0x1116   :  { %5784 = vmatprep.mubr.msk.f32.mxu0 %vm77_vm0, %v8061_v6  ;;  %6123 = vmatprep.subr.bf16.mxu1 %v6122_v26  ;;  %v2852_v5 = vrot.slane %v8098_v32, %v6744_v9 }
0x1117   :  { %v8067_v18 = vadd.f32 %v2835_v37, %v2831_v2  ;;  %6125 = vmatpush3.bf16.msra.mxu1 %v6122_v26 }
0x1118   :  { %6127 = vmatprep.subr.bf16.mxu1 %v6126_v8 }
0x1119   :  { %5785 = vmatmul.mubr.msk.f32.gmra.mrb[54].mxu0 %vm77_vm0, %v8067_v18 }
0x111b   :  { %6129 = vmatpush3.bf16.msra.mxu1 %v6126_v8 }
0x111c   :  { %6131 = vmatprep.subr.bf16.mxu1 %v6130_v4 }
0x111f   :  { %6133 = vmatpush3.bf16.msra.mxu1 %v6130_v4 }
0x1120   :  { %6135 = vmatprep.subr.bf16.mxu1 %v6134_v16 }
0x1123   :  { %6137 = vmatpush3.bf16.msra.mxu1 %v6134_v16 }
0x11dd   :  { %v5777_v13 = vpop.f32.mrb[48].mxu0 }
0x11de   :  { %v8102_v14 = vadd.f32 %v5777_v13, %v2852_v5  ;;  %v2943_v58 = vpop.f32.mrb[49].mxu0 }
0x11df   :  { %v2944_v17 = vadd.f32 %v2943_v58, %v2852_v5 }
0x11e0   :  { %v2991_v47 = vmul.f32 0.044715, %v8102_v14 }
0x11e1   :  { %v2990_v49 = vmul.f32 0.044715, %v2944_v17 }
0x11e2   :  { %v2999_v10 = vmul.f32 %v2991_v47, %v8102_v14 }
0x11e3   :  { %v2998_v46 = vmul.f32 %v2990_v49, %v2944_v17 }
0x11e4   :  { %v3007_v57 = vmul.f32 %v2999_v10, %v8102_v14  ;;  %v5780_v37 = vpop.f32.mrb[50].mxu0 }
0x11e5   :  { %v3006_v1 = vmul.f32 %v2998_v46, %v2944_v17  ;;  %v8107_v52 = vadd.f32 %v5780_v37, %v2852_v5  ;;  %v2953_v15 = vpop.f32.mrb[51].mxu0 }
0x11e6   :  { %v3015_v55 = vadd.f32 %v3007_v57, %v8102_v14  ;;  %v2954_v41 = vadd.f32 %v2953_v15, %v2852_v5 }
0x11e7   :  { %v3014_v29 = vadd.f32 %v3006_v1, %v2944_v17  ;;  %v2993_v36 = vmul.f32 0.044715, %v8107_v52 }
0x11e8   :  { %v3023_v34 = vmul.f32 0.7978846, %v3015_v55  ;;  %v2992_v40 = vmul.f32 0.044715, %v2954_v41  ;;  %v5783_v43 = vpop.f32.mrb[52].mxu0 }
0x11e9   :  { %v3001_v48 = vmul.f32 %v2993_v36, %v8107_v52  ;;  %v8112_v50 = vadd.f32 %v5783_v43, %v2852_v5  ;;  %v2963_v11 = vpop.f32.mrb[53].mxu0  ;;  %v3022_v3 = vmul.f32 0.7978846, %v3014_v29  ;;  %v2982_v36 = vmul.f32 0.5, %v2944_v17 }
0x11ea   :  { %6550 = vtanh.f32 %v3023_v34  ;;  %v3000_v42 = vmul.f32 %v2992_v40, %v2954_v41  ;;  %v2964_v28 = vadd.f32 %v2963_v11, %v2852_v5  ;;  %v2983_v40 = vmul.f32 0.5, %v8102_v14 }
0x11eb   :  { %v3009_v25 = vmul.f32 %v3001_v48, %v8107_v52  ;;  %v2995_v44 = vmul.f32 0.044715, %v8112_v50  ;;  %6552 = vtanh.f32 %v3022_v3  ;;  %v2985_v17 = vmul.f32 0.5, %v8107_v52 }
0x11ec   :  { %v3008_v33 = vmul.f32 %v3000_v42, %v2954_v41  ;;  %v2994_v60 = vmul.f32 0.044715, %v2964_v28  ;;  %v5786_v0 = vpop.f32.mrb[54].mxu0 }
0x11ed   :  { %v3017_v2 = vadd.f32 %v3009_v25, %v8107_v52  ;;  %v3003_v45 = vmul.f32 %v2995_v44, %v8112_v50  ;;  %v8118_v61 = vadd.f32 %v5786_v0, %v2852_v5  ;;  %v2973_v26 = vpop.f32.mrb[55].mxu0 }
0x11ee   :  { %v3016_v53 = vadd.f32 %v3008_v33, %v2954_v41  ;;  %v3002_v59 = vmul.f32 %v2994_v60, %v2964_v28  ;;  %v2974_v8 = vadd.f32 %v2973_v26, %v2852_v5  ;;  %v2984_v33 = vmul.f32 0.5, %v2954_v41 }
0x11ef   :  { %v3011_v38 = vmul.f32 %v3003_v45, %v8112_v50  ;;  %v2997_v51 = vmul.f32 0.044715, %v8118_v61  ;;  %v3025_v4 = vmul.f32 0.7978846, %v3017_v2 }
0x11f0   :  { %v3010_v54 = vmul.f32 %v3002_v59, %v2964_v28  ;;  %v2996_v24 = vmul.f32 0.044715, %v2974_v8  ;;  %v3024_v16 = vmul.f32 0.7978846, %v3016_v53  ;;  %v2986_v53 = vmul.f32 0.5, %v2964_v28 }
0x11f1   :  { %v3019_v13 = vadd.f32 %v3011_v38, %v8112_v50  ;;  %v3005_v58 = vmul.f32 %v2997_v51, %v8118_v61  ;;  %6554 = vtanh.f32 %v3025_v4  ;;  %v2987_v38 = vmul.f32 0.5, %v8112_v50 }
0x11f2   :  { %v3018_v47 = vadd.f32 %v3010_v54, %v2964_v28  ;;  %v3004_v49 = vmul.f32 %v2996_v24, %v2974_v8  ;;  %6556 = vtanh.f32 %v3024_v16  ;;  %v2988_v52 = vmul.f32 0.5, %v2974_v8 }
0x11f3   :  { %v3013_v10 = vmul.f32 %v3005_v58, %v8118_v61  ;;  %v3027_v46 = vmul.f32 0.7978846, %v3019_v13  ;;  %v2989_v13 = vmul.f32 0.5, %v8118_v61  ;;  %v3066_v50 = vrot.slane %v7955_v7, %v7516_v21 }
0x11f4   :  { %v6551_v5 = vpop.eup %6550  ;;  %v3012_v57 = vmul.f32 %v3004_v49, %v2974_v8  ;;  %v3026_v37 = vmul.f32 0.7978846, %v3018_v47 }
0x11f5   :  { %v6553_v1 = vpop.eup %6552  ;;  %v3039_v15 = vadd.f32 1.0, %v6551_v5  ;;  %v3021_v55 = vadd.f32 %v3013_v10, %v8118_v61  ;;  %6558 = vtanh.f32 %v3027_v46 }
0x11f6   :  { %v3020_v29 = vadd.f32 %v3012_v57, %v2974_v8  ;;  %v3038_v34 = vadd.f32 1.0, %v6553_v1  ;;  %6560 = vtanh.f32 %v3026_v37 }
0x11f7   :  { %v3029_v43 = vmul.f32 0.7978846, %v3021_v55  ;;  %v3047_v3 = vmul.f32 %v3039_v15, %v2983_v40 }
0x11f8   :  { %v3046_v48 = vmul.f32 %v3038_v34, %v2982_v36  ;;  %v3028_v11 = vmul.f32 0.7978846, %v3020_v29 }
0x11f9   :  { %6562 = vtanh.f32 %v3029_v43 }
0x11fa   :  { %5803 = vmatprep.mubr.msk.f32.mxu1 %vm516_vm3, %v3046_v48  ;;  %6564 = vtanh.f32 %v3028_v11 }
0x11fb   :  { %v6555_v42 = vpop.eup %6554  ;;  %5804 = vmatmul.mubr.msk.f32.vlgmr.msra.gmra.mrb[64].mxu1 %vm516_vm3, %v3047_v3 }
0x11fc   :  { %v6557_v25 = vpop.eup %6556  ;;  %v3041_v44 = vadd.f32 1.0, %v6555_v42 }
0x11fd   :  { %v3040_v60 = vadd.f32 1.0, %v6557_v25 }
0x11fe   :  { %v3049_v45 = vmul.f32 %v3041_v44, %v2985_v17 }
0x11ff   :  { %v6559_v0 = vpop.eup %6558  ;;  %v3048_v2 = vmul.f32 %v3040_v60, %v2984_v33 }
0x1200   :  { %v6561_v14 = vpop.eup %6560  ;;  %v3043_v26 = vadd.f32 1.0, %v6559_v0 }
0x1201   :  { %5806 = vmatprep.mubr.msk.f32.mxu1 %vm516_vm3, %v3048_v2  ;;  %v3042_v59 = vadd.f32 1.0, %v6561_v14 }
0x1202   :  { %5807 = vmatmul.mubr.msk.f32.gmra.mrb[66].mxu1 %vm516_vm3, %v3049_v45  ;;  %v3051_v41 = vmul.f32 %v3043_v26, %v2987_v38 }
0x1203   :  { %v6563_v51 = vpop.eup %6562  ;;  %v3050_v4 = vmul.f32 %v3042_v59, %v2986_v53 }
0x1204   :  { %v6565_v54 = vpop.eup %6564  ;;  %v3045_v24 = vadd.f32 1.0, %v6563_v51 }
0x1205   :  { %5809 = vmatprep.mubr.msk.f32.mxu1 %vm516_vm3, %v3050_v4  ;;  %v3044_v16 = vadd.f32 1.0, %v6565_v54 }
0x1206   :  { %5810 = vmatmul.mubr.msk.f32.gmra.mrb[68].mxu1 %vm516_vm3, %v3051_v41  ;;  %v3053_v28 = vmul.f32 %v3045_v24, %v2989_v13 }
0x1207   :  { %v3052_v58 = vmul.f32 %v3044_v16, %v2988_v52 }
0x1209   :  { %5812 = vmatprep.mubr.msk.f32.mxu1 %vm516_vm3, %v3052_v58 }
0x120a   :  { %5813 = vmatmul.mubr.msk.f32.gmra.mrb[70].mxu1 %vm516_vm3, %v3053_v28 }
0x12ce   :  { %v5805_v47 = vpop.f32.mrb[64].mxu1 }
0x12cf   :  { %v3163_v49 = vadd.f32 %v5805_v47, %v3066_v50  ;;  %v3157_v10 = vpop.f32.mrb[65].mxu1 }
0x12d0   :  { %v3158_v46 = vadd.f32 %v3157_v10, %v3066_v50 }
0x12d1   :  { %v3197_v8 = vadd.f32 %v3163_v49, %v8036_v27 }
0x12d2   :  { %v3196_v5 = vadd.f32 %v3158_v46, %v8033_v31 }
0x12d3   :  { %v3207_v57 = vsel %vm77_vm0, %v3197_v8, 0.0 }
0x12d4   :  { %3208 = vadd.xlane.f32.xlu0 %v3207_v57  ;;  %v3204_v61 = vsel %vm77_vm0, %v3196_v5, 0.0 }
0x12d5   :  { %3205 = vadd.xlane.f32.xlu1 %v3204_v61  ;;  %v5808_v37 = vpop.f32.mrb[66].mxu1 }
0x12d6   :  { %v3173_v1 = vadd.f32 %v5808_v37, %v3066_v50  ;;  %v3167_v15 = vpop.f32.mrb[67].mxu1 }
0x12d7   :  { %v3168_v55 = vadd.f32 %v3167_v15, %v3066_v50 }
0x12d8   :  { %v3199_v7 = vadd.f32 %v3173_v1, %v8048_v35 }
0x12d9   :  { %v3198_v29 = vadd.f32 %v3168_v55, %v8042_v39  ;;  %v5811_v36 = vpop.f32.mrb[68].mxu1 }
0x12da   :  { %v3183_v34 = vadd.f32 %v5811_v36, %v3066_v50  ;;  %v3177_v40 = vpop.f32.mrb[69].mxu1  ;;  %v3213_v27 = vsel %vm77_vm0, %v3199_v7, 0.0 }
0x12db   :  { %v3178_v31 = vadd.f32 %v3177_v40, %v3066_v50  ;;  %3214 = vadd.xlane.f32.xlu0 %v3213_v27  ;;  %v3210_v43 = vsel %vm77_vm0, %v3198_v29, 0.0 }
0x12dc   :  { %v3201_v48 = vadd.f32 %v3183_v34, %v8058_v23  ;;  %3211 = vadd.xlane.f32.xlu1 %v3210_v43 }
0x12dd   :  { %v3200_v11 = vadd.f32 %v3178_v31, %v8051_v22  ;;  %v5814_v3 = vpop.f32.mrb[70].mxu1  ;;  %v3332_v31 = vld [vmem:[%s8560_s3] sm:$0xff] }
0x12de   :  { %v3193_v42 = vadd.f32 %v5814_v3, %v3066_v50  ;;  %v3187_v25 = vpop.f32.mrb[71].mxu1  ;;  %v3219_v35 = vsel %vm77_vm0, %v3201_v48, 0.0  ;;  %5831 = vmatprep.mubr.msk.f32.mxu0 %vm516_vm3, %v3332_v31 }
0x12df   :  { %v3188_v39 = vadd.f32 %v3187_v25, %v3066_v50  ;;  %3220 = vadd.xlane.f32.xlu0 %v3219_v35  ;;  %v3216_v44 = vsel %vm77_vm0, %v3200_v11, 0.0 }
0x12e0   :  { %v3203_v33 = vadd.f32 %v3193_v42, %v8067_v18  ;;  %3217 = vadd.xlane.f32.xlu1 %v3216_v44 }
0x12e1   :  { %v3202_v60 = vadd.f32 %v3188_v39, %v8061_v6 }
0x12e2   :  { %v3225_v17 = vsel %vm77_vm0, %v3203_v33, 0.0 }
0x12e3   :  { %3226 = vadd.xlane.f32.xlu0 %v3225_v17  ;;  %v3222_v23 = vsel %vm77_vm0, %v3202_v60, 0.0  ;;  %v8203_v17 = vld [vmem:[%s8554_s8 + $0x10] sm:$0xff] }
0x12e4   :  { %3223 = vadd.xlane.f32.xlu1 %v3222_v23 }
0x1361   :  { %v3209_v22 = vpop.xlane.xlu0 %3208 }
0x1362   :  { %v3229_v0 = vmul.f32 0.03125, %v3209_v22  ;;  %v3206_v2 = vpop.xlane.xlu1 %3205 }
0x1363   :  { %v3228_v14 = vmul.f32 0.03125, %v3206_v2 }
0x1364   :  { %v8156_v45 = vsub.f32 %v3197_v8, %v3229_v0 }
0x1365   :  { %v8158_v26 = vsub.f32 %v3196_v5, %v3228_v14 }
0x1366   :  { %v3245_v18 = vmul.f32 %v8156_v45, %v8156_v45 }
0x1367   :  { %v3244_v6 = vmul.f32 %v8158_v26, %v8158_v26 }
0x1368   :  { %v3215_v53 = vpop.xlane.xlu0 %3214  ;;  %v3255_v59 = vsel %vm77_vm0, %v3245_v18, 0.0 }
0x1369   :  { %v3231_v38 = vmul.f32 0.03125, %v3215_v53  ;;  %3256 = vadd.xlane.f32.xlu0 %v3255_v59  ;;  %v3212_v51 = vpop.xlane.xlu1 %3211  ;;  %v3252_v4 = vsel %vm77_vm0, %v3244_v6, 0.0  ;;  %v3311_v6 = vrot.slane %v8203_v17, %v6783_v19 }
0x136a   :  { %v3230_v54 = vmul.f32 0.03125, %v3212_v51  ;;  %3253 = vadd.xlane.f32.xlu1 %v3252_v4  ;;  %v3323_v4 = vrot.slane %v8203_v17, %v6744_v9 }
0x136b   :  { %v8166_v41 = vsub.f32 %v3199_v7, %v3231_v38 }
0x136c   :  { %v8168_v24 = vsub.f32 %v3198_v29, %v3230_v54  ;;  %v3221_v52 = vpop.xlane.xlu0 %3220 }
0x136d   :  { %v3233_v16 = vmul.f32 0.03125, %v3221_v52  ;;  %v3218_v13 = vpop.xlane.xlu1 %3217  ;;  %v3247_v58 = vmul.f32 %v8166_v41, %v8166_v41 }
0x136e   :  { %v3232_v28 = vmul.f32 0.03125, %v3218_v13  ;;  %v3246_v50 = vmul.f32 %v8168_v24, %v8168_v24 }
0x136f   :  { %v8174_v47 = vsub.f32 %v3201_v48, %v3233_v16  ;;  %v3261_v49 = vsel %vm77_vm0, %v3247_v58, 0.0 }
0x1370   :  { %v8177_v10 = vsub.f32 %v3200_v11, %v3232_v28  ;;  %3262 = vadd.xlane.f32.xlu0 %v3261_v49  ;;  %v3227_v46 = vpop.xlane.xlu0 %3226  ;;  %v3258_v8 = vsel %vm77_vm0, %v3246_v50, 0.0 }
0x1371   :  { %v3235_v5 = vmul.f32 0.03125, %v3227_v46  ;;  %3259 = vadd.xlane.f32.xlu1 %v3258_v8  ;;  %v3224_v57 = vpop.xlane.xlu1 %3223  ;;  %v3249_v61 = vmul.f32 %v8174_v47, %v8174_v47 }
0x1372   :  { %v3234_v37 = vmul.f32 0.03125, %v3224_v57  ;;  %v3248_v1 = vmul.f32 %v8177_v10, %v8177_v10 }
0x1373   :  { %v8184_v15 = vsub.f32 %v3203_v33, %v3235_v5  ;;  %v3267_v55 = vsel %vm77_vm0, %v3249_v61, 0.0 }
0x1374   :  { %v8187_v7 = vsub.f32 %v3202_v60, %v3234_v37  ;;  %3268 = vadd.xlane.f32.xlu0 %v3267_v55  ;;  %v3264_v29 = vsel %vm77_vm0, %v3248_v1, 0.0 }
0x1375   :  { %3265 = vadd.xlane.f32.xlu1 %v3264_v29  ;;  %v3251_v36 = vmul.f32 %v8184_v15, %v8184_v15 }
0x1376   :  { %v3250_v34 = vmul.f32 %v8187_v7, %v8187_v7 }
0x1377   :  { %v3273_v40 = vsel %vm77_vm0, %v3251_v36, 0.0 }
0x1378   :  { %3274 = vadd.xlane.f32.xlu0 %v3273_v40  ;;  %v3270_v27 = vsel %vm77_vm0, %v3250_v34, 0.0 }
0x1379   :  { %3271 = vadd.xlane.f32.xlu1 %v3270_v27 }
0x13f6   :  { %v3257_v43 = vpop.xlane.xlu0 %3256 }
0x13f7   :  { %v3277_v48 = vmul.f32 0.03125, %v3257_v43  ;;  %v3254_v11 = vpop.xlane.xlu1 %3253 }
0x13f8   :  { %v3276_v3 = vmul.f32 0.03125, %v3254_v11 }
0x13f9   :  { %v3285_v42 = vadd.f32 1e-12, %v3277_v48 }
0x13fa   :  { %v3284_v25 = vadd.f32 1e-12, %v3276_v3 }
0x13fb   :  { %6566 = vrsqrt.f32 %v3285_v42 }
0x13fc   :  { %6568 = vrsqrt.f32 %v3284_v25 }
0x13fd   :  { %v3263_v35 = vpop.xlane.xlu0 %3262 }
0x13fe   :  { %v3279_v39 = vmul.f32 0.03125, %v3263_v35  ;;  %v3260_v44 = vpop.xlane.xlu1 %3259 }
0x13ff   :  { %v3278_v33 = vmul.f32 0.03125, %v3260_v44 }
0x1400   :  { %v3287_v60 = vadd.f32 1e-12, %v3279_v39 }
0x1401   :  { %v3286_v23 = vadd.f32 1e-12, %v3278_v33  ;;  %v3269_v22 = vpop.xlane.xlu0 %3268 }
0x1402   :  { %6570 = vrsqrt.f32 %v3287_v60  ;;  %v3281_v0 = vmul.f32 0.03125, %v3269_v22  ;;  %v3266_v2 = vpop.xlane.xlu1 %3265  ;;  %v5114_v60 = vld [vmem:[%s8552_s4 + $0x48] sm:$0xff] }
0x1403   :  { %6572 = vrsqrt.f32 %v3286_v23  ;;  %v3280_v14 = vmul.f32 0.03125, %v3266_v2  ;;  %v5116_v2 = vld [vmem:[%s8552_s4 + $0x58] sm:$0xff] }
0x1404   :  { %v3289_v18 = vadd.f32 1e-12, %v3281_v0  ;;  %v5115_v0 = vld [vmem:[%s8552_s4 + $0x50] sm:$0xff] }
0x1405   :  { %v6567_v53 = vpop.eup %6566  ;;  %v3288_v59 = vadd.f32 1e-12, %v3280_v14  ;;  %v3275_v38 = vpop.xlane.xlu0 %3274  ;;  %v6158_v14 = vpack.c.bf16 %v5116_v2, %v5115_v0 }
0x1406   :  { %v6569_v51 = vpop.eup %6568  ;;  %6574 = vrsqrt.f32 %v3289_v18  ;;  %v3283_v54 = vmul.f32 0.03125, %v3275_v38  ;;  %v3272_v52 = vpop.xlane.xlu1 %3271  ;;  %v3301_v16 = vmul.f32 %v6567_v53, %v8156_v45  ;;  %v3525_v18 = vrot.slane %v8203_v17, %v7225_v12  ;;  %v8242_v53 = vld [vmem:[%s8554_s8 + $0x20] sm:$0xff] }
0x1407   :  { %6576 = vrsqrt.f32 %v3288_v59  ;;  %v3282_v13 = vmul.f32 0.03125, %v3272_v52  ;;  %v3300_v58 = vmul.f32 %v6569_v51, %v8158_v26  ;;  %v41_v59 = vld [vmem:[%s8554_s8 + $0x30] sm:$0x3f]  ;;  %v3338_v51 = vrot.slane %v8242_v53, 4 }
0x1408   :  { %v3291_v28 = vadd.f32 1e-12, %v3283_v54  ;;  %v3313_v50 = vmul.f32 %v3311_v6, %v3301_v16  ;;  %3527 = vrot.lane.b32.xlu1 %v3525_v18, %s6666_s25 }
0x1409   :  { %v3290_v49 = vadd.f32 1e-12, %v3282_v13  ;;  %v3312_v46 = vmul.f32 %v3311_v6, %v3300_v58 }
0x140a   :  { %6578 = vrsqrt.f32 %v3291_v28  ;;  %v3325_v8 = vadd.f32 %v3323_v4, %v3313_v50  ;;  %v8571_v50 = vld [vmem:[#allocation3_spill] sm:$0xff] }
0x140b   :  { %6580 = vrsqrt.f32 %v3290_v49  ;;  %v3324_v5 = vadd.f32 %v3323_v4, %v3312_v46  ;;  %v3519_v49 = vrot.slane %v8203_v17, %v8571_v50 }
0x140c   :  { %v6571_v57 = vpop.eup %6570 }
0x140d   :  { %v6573_v61 = vpop.eup %6572  ;;  %v6138_v37 = vpack.c.bf16 %v3325_v8, %v3324_v5  ;;  %v3303_v1 = vmul.f32 %v6571_v57, %v8166_v41 }
0x140e   :  { %v3302_v55 = vmul.f32 %v6573_v61, %v8168_v24 }
0x140f   :  { %6139 = vmatprep.subr.bf16.mxu0 %v6138_v37  ;;  %v3315_v45 = vmul.f32 %v3311_v6, %v3303_v1 }
0x1410   :  { %v6575_v29 = vpop.eup %6574  ;;  %6141 = vmatpush3.bf16.msra.mxu0 %v6138_v37  ;;  %v3314_v26 = vmul.f32 %v3311_v6, %v3302_v55 }
0x1411   :  { %v6577_v36 = vpop.eup %6576  ;;  %v3327_v34 = vadd.f32 %v3323_v4, %v3315_v45  ;;  %v3305_v40 = vmul.f32 %v6575_v29, %v8174_v47 }
0x1412   :  { %v3326_v27 = vadd.f32 %v3323_v4, %v3314_v26  ;;  %v3304_v31 = vmul.f32 %v6577_v36, %v8177_v10  ;;  %v5113_v10 = vld [vmem:[%s8552_s4 + $0x40] sm:$0xff] }
0x1413   :  { %v3317_v43 = vmul.f32 %v3311_v6, %v3305_v40  ;;  %v6154_v22 = vpack.c.bf16 %v5114_v60, %v5113_v10  ;;  %v8296_v10 = vld [vmem:[%s8561_s2 + $0x10] sm:$0xff] }
0x1414   :  { %v6579_v48 = vpop.eup %6578  ;;  %v6142_v11 = vpack.c.bf16 %v3327_v34, %v3326_v27  ;;  %v3316_v3 = vmul.f32 %v3311_v6, %v3304_v31 }
0x1415   :  { %v6581_v42 = vpop.eup %6580  ;;  %v3329_v41 = vadd.f32 %v3323_v4, %v3317_v43  ;;  %v3307_v24 = vmul.f32 %v6579_v48, %v8184_v15 }
0x1416   :  { %6143 = vmatprep.subr.bf16.mxu0 %v6142_v11  ;;  %v3328_v25 = vadd.f32 %v3323_v4, %v3316_v3  ;;  %v3306_v35 = vmul.f32 %v6581_v42, %v8187_v7  ;;  %v3333_v7 = vld [vmem:[%s8560_s3 + $0x8] sm:$0xff] }
0x1417   :  { %6145 = vmatpush3.bf16.msra.mxu0 %v6142_v11  ;;  %v3319_v39 = vmul.f32 %v3311_v6, %v3307_v24  ;;  %v8283_v24 = vld [vmem:[%s8561_s2] sm:$0xff] }
0x1418   :  { %v6146_v44 = vpack.c.bf16 %v3329_v41, %v3328_v25  ;;  %v3318_v33 = vmul.f32 %v3311_v6, %v3306_v35  ;;  %v40_v6 = vld [vmem:[%s8554_s8 + $0x28] sm:$0xff] }
0x1419   :  { %v3331_v47 = vadd.f32 %v3323_v4, %v3319_v39  ;;  %v3339_v38 = vrot.slane %v40_v6, 4  ;;  %v8278_v41 = vld [vmem:[%s8561_s2 + $0x8] sm:$0xff] }
0x141a   :  { %6147 = vmatprep.subr.bf16.mxu0 %v6146_v44  ;;  %v3330_v23 = vadd.f32 %v3323_v4, %v3318_v33  ;;  %v3341_v4 = vrot.slane %v41_v59, 4  ;;  %v8290_v33 = vld [vmem:[%s8561_s2 + $0x18] sm:$0xff] }
0x141b   :  { %6149 = vmatpush3.bf16.msra.mxu0 %v6146_v44  ;;  %v3340_v54 = vsel %vm3337_vm4, %v3338_v51, %v3339_v38 }
0x141c   :  { %v6150_v15 = vpack.c.bf16 %v3331_v47, %v3330_v23  ;;  %v3342_v52 = vsel %vm3337_vm4, %v3339_v38, %v3341_v4 }
0x141e   :  { %6151 = vmatprep.subr.bf16.mxu0 %v6150_v15 }
0x141f   :  { %6153 = vmatpush3.bf16.msra.mxu0 %v6150_v15 }
0x1420   :  { %6155 = vmatprep.subr.bf16.mxu0 %v6154_v22 }
0x1422   :  { %5832 = vmatmul.mubr.msk.f32.vlgmr.msra.gmra.mrb[56].mxu0 %vm516_vm3, %v3333_v7 }
0x1423   :  { %6157 = vmatpush3.bf16.msra.mxu0 %v6154_v22 }
0x1424   :  { %6159 = vmatprep.subr.bf16.mxu0 %v6158_v14 }
0x1427   :  { %6161 = vmatpush3.bf16.msra.mxu0 %v6158_v14  ;;  %v3535_v14 = vrot.slane %v8203_v17, %v7319_v62 }
0x147a   :  { %v3528_v46 = vpop.permute.xlu1 %3527 }
0x14f5   :  { %v5833_v16 = vpop.f32.mrb[56].mxu0 }
0x14f6   :  { %v3417_v13 = vpop.f32.mrb[57].mxu0  ;;  %v8250_v28 = vadd.f32 %v5833_v16, %v3342_v52 }
0x14f7   :  { %v8248_v58 = vadd.f32 %v3417_v13, %v3340_v54 }
0x14f9   :  { %5842 = vmatprep.mubr.msk.f32.mxu0 %vm77_vm0, %v8248_v58 }
0x14fa   :  { %5843 = vmatmul.mubr.msk.f32.vlgmr.msra.gmra.mrb[58].mxu0 %vm77_vm0, %v8250_v28 }
0x15cd   :  { %v8258_v8 = vpop.f32.mrb[58].mxu0 }
0x15ce   :  { %v3521_v5 = vadd.f32 %v8258_v8, %v3519_v49  ;;  %v3531_v57 = vadd.f32 %v8258_v8, %v3528_v46  ;;  %v3507_v61 = vpop.f32.mrb[59].mxu0 }
0x15cf   :  { %v3520_v37 = vadd.f32 %v3519_v49, %v3507_v61  ;;  %v3530_v1 = vadd.f32 %v3528_v46, %v3507_v61 }
0x15d0   :  { %v3543_v31 = vmul.f32 %v6799_v30, %v3521_v5  ;;  %v3545_v48 = vmul.f32 %v3521_v5, %v6879_v20 }
0x15d1   :  { %v3542_v55 = vmul.f32 %v6799_v30, %v3520_v37  ;;  %v6338_v45 = vpack.i.bf16 %v3531_v57, %v3530_v1  ;;  %v3544_v43 = vmul.f32 %v3520_v37, %v6879_v20 }
0x15d2   :  { %v3547_v11 = vmul.f32 0.25, %v3543_v31  ;;  %v3549_v42 = vmul.f32 0.25, %v3545_v48 }
0x15d3   :  { %v3546_v29 = vmul.f32 0.25, %v3542_v55  ;;  %6339 = vrot.lane.b32.xlu0 %v6338_v45, %s6668_s20  ;;  %v3548_v3 = vmul.f32 0.25, %v3544_v43 }
0x15d5   :  { %5849 = vmatprep.mubr.msk.f32.mxu1 %vm77_vm0, %v3546_v29 }
0x1645   :  { %v6340_v26 = vpop.permute.xlu0 %6339 }
0x1646   :  { %v6342_v36 = vunpack.i.h.bf16 %v6340_v26  ;;  %v6341_v34 = vunpack.i.l.bf16 %v6340_v26 }
0x1648   :  { %v6162_v40 = vpack.c.bf16 %v6342_v36, %v6341_v34 }
0x164a   :  { %6164 = vmatprep.subr.msk.bf16.mxu1 %vm6846_vm2, %v6162_v40 }
0x164b   :  { %6167 = vmatpush3.bf16.xpose.msk.msra.mxu1 %vm6846_vm2, %v6162_v40 }
0x1652   :  { %5850 = vmatmul.mubr.msk.f32.vlgmr.msra.gmra.mrb[72].mxu1 %vm77_vm0, %v3547_v11 }
0x1653   :  { %5852 = vmatprep.mubr.msk.f32.mxu1 %vm77_vm0, %v3548_v3 }
0x1656   :  { %5853 = vmatmul.mubr.msk.f32.gmra.mrb[74].mxu1 %vm77_vm0, %v3549_v42 }
0x1725   :  { %v5851_v25 = vpop.f32.mrb[72].mxu1 }
0x1726   :  { %v3644_v35 = vadd.f32 %v5851_v25, %v8278_v41  ;;  %v3638_v39 = vpop.f32.mrb[73].mxu1 }
0x1727   :  { %v3639_v44 = vadd.f32 %v3638_v39, %v8283_v24 }
0x1728   :  { %v3661_v47 = vsel %vm3657_vm5, %v3644_v35, -inf }
0x1729   :  { %3662 = vmax.xlane.f32.xlu0 %v3661_v47  ;;  %v5854_v60 = vpop.f32.mrb[74].mxu1  ;;  %v3658_v23 = vsel %vm3657_vm5, %v3639_v44, -inf }
0x172a   :  { %v3654_v15 = vadd.f32 %v5854_v60, %v8290_v33  ;;  %v3648_v22 = vpop.f32.mrb[75].mxu1  ;;  %3659 = vmax.xlane.f32.xlu1 %v3658_v23 }
0x172b   :  { %v3649_v7 = vadd.f32 %v3648_v22, %v8296_v10 }
0x172c   :  { %v3667_v0 = vsel %vm3657_vm5, %v3654_v15, -inf }
0x172d   :  { %3668 = vmax.xlane.f32.xlu0 %v3667_v0  ;;  %v3664_v2 = vsel %vm3657_vm5, %v3649_v7, -inf  ;;  %v5130_v0 = vld [vmem:[%s8556_s5 + $0x48] sm:$0xff] }
0x172e   :  { %3665 = vmax.xlane.f32.xlu1 %v3664_v2 }
0x173f   :  { %3537 = vrot.lane.b32.xlu1 %v3535_v14, %s6669_s12  ;;  %v5131_v14 = vld [vmem:[%s8556_s5 + $0x50] sm:$0xff] }
0x17b6   :  { %v3663_v18 = vpop.xlane.xlu0 %3662 }
0x17b7   :  { %v3671_v6 = vsub.f32 %v3644_v35, %v3663_v18  ;;  %v3660_v59 = vpop.xlane.xlu1 %3659  ;;  %v5132_v18 = vld [vmem:[%s8556_s5 + $0x58] sm:$0xff] }
0x17b8   :  { %v3670_v38 = vsub.f32 %v3639_v44, %v3660_v59 }
0x17b9   :  { %v3676_v51 = vmul.f32 1.442695, %v3671_v6  ;;  %v6176_v6 = vpack.c.bf16 %v5132_v18, %v5131_v14  ;;  %v3940_v18 = vrot.slane %v8203_v17, %v7516_v21 }
0x17ba   :  { %v3674_v4 = vmul.f32 1.442695, %v3670_v38  ;;  %v3669_v54 = vpop.xlane.xlu0 %3668 }
0x17bb   :  { %6582 = vpow2.f32 %v3676_v51  ;;  %v3666_v52 = vpop.xlane.xlu1 %3665  ;;  %v3673_v13 = vsub.f32 %v3654_v15, %v3669_v54 }
0x17bc   :  { %v3672_v16 = vsub.f32 %v3649_v7, %v3666_v52  ;;  %6584 = vpow2.f32 %v3674_v4  ;;  %v5129_v7 = vld [vmem:[%s8556_s5 + $0x40] sm:$0xff] }
0x17bd   :  { %v3680_v37 = vmul.f32 1.442695, %v3673_v13  ;;  %v6172_v2 = vpack.c.bf16 %v5130_v0, %v5129_v7  ;;  %v3934_v0 = vrot.slane %v8203_v17, %v7435_v63 }
0x17be   :  { %v3678_v49 = vmul.f32 1.442695, %v3672_v16 }
0x17bf   :  { %v3538_v46 = vpop.permute.xlu1 %3537  ;;  %6173 = vmatprep.subr.bf16.mxu1 %v6172_v2 }
0x17c0   :  { %v3540_v5 = vadd.f32 %v3538_v46, %v3507_v61  ;;  %v3541_v57 = vadd.f32 %v8258_v8, %v3538_v46  ;;  %6586 = vpow2.f32 %v3678_v49  ;;  %6175 = vmatpush3.bf16.msra.mxu1 %v6172_v2 }
0x17c1   :  { %6588 = vpow2.f32 %v3680_v37  ;;  %6177 = vmatprep.subr.bf16.mxu1 %v6176_v6 }
0x17c2   :  { %v6343_v1 = vpack.i.bf16 %v3541_v57, %v3540_v5  ;;  %v3821_v5 = vrot.slane %v8203_v17, %v7322_v56  ;;  %v5143_v17 = vld [vmem:[%s8558_s7 + $0x90] sm:$0xff] }
0x17c4   :  { %6344 = vrot.lane.b32.xlu1 %v6343_v1, %s6669_s12  ;;  %6179 = vmatpush3.bf16.msra.mxu1 %v6176_v6 }
0x17c5   :  { %v6583_v55 = vpop.eup %6582 }
0x17c6   :  { %v3685_v45 = vsel %vm3657_vm5, %v6583_v55, 0.0  ;;  %v6585_v29 = vpop.eup %6584 }
0x17c7   :  { %3686 = vadd.xlane.f32.xlu0 %v3685_v45  ;;  %v3682_v26 = vsel %vm3657_vm5, %v6585_v29, 0.0 }
0x17ca   :  { %v6587_v36 = vpop.eup %6586 }
0x17cb   :  { %3683 = vadd.xlane.f32.xlu0 %v3682_v26  ;;  %v3688_v34 = vsel %vm3657_vm5, %v6587_v36, 0.0  ;;  %v6589_v61 = vpop.eup %6588 }
0x17cc   :  { %v3691_v8 = vsel %vm3657_vm5, %v6589_v61, 0.0 }
0x17cf   :  { %3689 = vadd.xlane.f32.xlu0 %v3688_v34 }
0x17d3   :  { %3692 = vadd.xlane.f32.xlu0 %v3691_v8 }
0x1836   :  { %v6345_v40 = vpop.permute.xlu1 %6344 }
0x1837   :  { %v6347_v31 = vunpack.i.h.bf16 %v6345_v40  ;;  %v6346_v43 = vunpack.i.l.bf16 %v6345_v40 }
0x1839   :  { %v6168_v48 = vpack.c.bf16 %v6347_v31, %v6346_v43 }
0x183b   :  { %6169 = vmatprep.subr.bf16.mxu0 %v6168_v48 }
0x183c   :  { %6171 = vmatpush3.bf16.msra.mxu0 %v6168_v48 }
0x1854   :  { %v3687_v11 = vpop.xlane.xlu0 %3686 }
0x1855   :  { %6590 = vrcp.f32 %v3687_v11 }
0x1858   :  { %v3684_v3 = vpop.xlane.xlu0 %3683 }
0x1859   :  { %6592 = vrcp.f32 %v3684_v3 }
0x185c   :  { %v3690_v42 = vpop.xlane.xlu0 %3689 }
0x185d   :  { %6594 = vrcp.f32 %v3690_v42  ;;  %v5136_v42 = vld [vmem:[%s8557_s6 + $0x48] sm:$0xff] }
0x185f   :  { %v6591_v35 = vpop.eup %6590 }
0x1860   :  { %v3693_v25 = vpop.xlane.xlu0 %3692  ;;  %v3699_v47 = vmul.f32 %v6591_v35, %v6583_v55  ;;  %v5137_v35 = vld [vmem:[%s8557_s6 + $0x50] sm:$0xff] }
0x1861   :  { %6596 = vrcp.f32 %v3693_v25 }
0x1863   :  { %v6593_v39 = vpop.eup %6592 }
0x1864   :  { %v3698_v44 = vmul.f32 %v6593_v39, %v6585_v29  ;;  %v5138_v39 = vld [vmem:[%s8557_s6 + $0x58] sm:$0xff] }
0x1866   :  { %5859 = vmatprep.mubr.msk.f32.mxu0 %vm3657_vm5, %v3698_v44  ;;  %v6184_v44 = vpack.c.bf16 %v5138_v39, %v5137_v35 }
0x1867   :  { %v6595_v60 = vpop.eup %6594  ;;  %5860 = vmatmul.mubr.msk.f32.vlgmr.msra.gmra.mrb[60].mxu0 %vm3657_vm5, %v3699_v47 }
0x1868   :  { %v3700_v23 = vmul.f32 %v6595_v60, %v6587_v36 }
0x186a   :  { %5862 = vmatprep.mubr.msk.f32.mxu0 %vm3657_vm5, %v3700_v23 }
0x186b   :  { %v6597_v15 = vpop.eup %6596 }
0x186c   :  { %v3701_v22 = vmul.f32 %v6597_v15, %v6589_v61 }
0x186e   :  { %5863 = vmatmul.mubr.msk.f32.gmra.mrb[62].mxu0 %vm3657_vm5, %v3701_v22 }
0x193a   :  { %v5861_v59 = vpop.f32.mrb[60].mxu0 }
0x193b   :  { %v3788_v38 = vpop.f32.mrb[61].mxu0  ;;  %v3808_v4 = vmul.f32 %v5861_v59, %v6799_v30 }
0x193c   :  { %v3807_v16 = vmul.f32 %v6799_v30, %v3788_v38 }
0x1941   :  { %v5864_v51 = vpop.f32.mrb[62].mxu0 }
0x1942   :  { %v3810_v54 = vmul.f32 %v5864_v51, %v6879_v20  ;;  %v3798_v52 = vpop.f32.mrb[63].mxu0 }
0x1943   :  { %v3809_v13 = vmul.f32 %v3798_v52, %v6879_v20  ;;  %v5141_v52 = vld [vmem:[%s8558_s7 + $0x80] sm:$0xff] }
0x1944   :  { %v3812_v49 = vadd.f32 %v3810_v54, %v3808_v4 }
0x1945   :  { %v3811_v46 = vadd.f32 %v3809_v13, %v3807_v16  ;;  %v5142_v16 = vld [vmem:[%s8558_s7 + $0x88] sm:$0xff] }
0x1946   :  { %v6188_v13 = vpack.c.bf16 %v5142_v16, %v5141_v52 }
0x1947   :  { %5873 = vmatprep.mubr.msk.f32.mxu1 %vm77_vm0, %v3811_v46 }
0x1948   :  { %5874 = vmatmul.mubr.msk.f32.vlgmr.msra.gmra.mrb[76].mxu1 %vm77_vm0, %v3812_v49  ;;  %v5144_v49 = vld [vmem:[%s8558_s7 + $0x98] sm:$0xff]  ;;  %6189 = vmatprep.subr.bf16.mxu1 %v6188_v13 }
0x1949   :  { %v6192_v46 = vpack.c.bf16 %v5144_v49, %v5143_v17  ;;  %6191 = vmatpush3.bf16.msra.mxu1 %v6188_v13 }
0x194b   :  { %6193 = vmatprep.subr.bf16.mxu1 %v6192_v46 }
0x194d   :  { %6195 = vmatpush3.bf16.msra.mxu1 %v6192_v46 }
0x1a1b   :  { %v5875_v57 = vpop.f32.mrb[76].mxu1 }
0x1a1c   :  { %v3900_v37 = vadd.f32 %v5875_v57, %v3821_v5  ;;  %v3894_v1 = vpop.f32.mrb[77].mxu1  ;;  %v5146_v57 = vld [vmem:[%s8558_s7 + $0xa8] sm:$0xff] }
0x1a1d   :  { %v3895_v55 = vadd.f32 %v3894_v1, %v3821_v5  ;;  %v5145_v5 = vld [vmem:[%s8558_s7 + $0xa0] sm:$0xff]  ;;  %v5147_v1 = vld [vmem:[%s8558_s7 + $0xb0] sm:$0xff] }
0x1a1e   :  { %v3904_v45 = vadd.f32 %v3900_v37, %v8250_v28  ;;  %v6196_v37 = vpack.c.bf16 %v5146_v57, %v5145_v5 }
0x1a1f   :  { %v3903_v29 = vadd.f32 %v3895_v55, %v8248_v58  ;;  %v5135_v58 = vld [vmem:[%s8557_s6 + $0x40] sm:$0xff]  ;;  %v5148_v55 = vld [vmem:[%s8558_s7 + $0xb8] sm:$0xff] }
0x1a20   :  { %v3908_v26 = vsel %vm77_vm0, %v3904_v45, 0.0  ;;  %v6180_v25 = vpack.c.bf16 %v5136_v42, %v5135_v58  ;;  %6197 = vmatprep.subr.bf16.mxu1 %v6196_v37 }
0x1a21   :  { %3909 = vadd.xlane.f32.xlu1 %v3908_v26  ;;  %v3905_v36 = vsel %vm77_vm0, %v3903_v29, 0.0  ;;  %6199 = vmatpush3.bf16.msra.mxu1 %v6196_v37  ;;  %v5152_v37 = vld [vmem:[%s8552_s4 + $0x68] sm:$0xff] }
0x1a22   :  { %3906 = vadd.xlane.f32.xlu0 %v3905_v36  ;;  %6181 = vmatprep.subr.bf16.mxu0 %v6180_v25 }
0x1a23   :  { %6183 = vmatpush3.bf16.msra.mxu0 %v6180_v25 }
0x1a24   :  { %6185 = vmatprep.subr.bf16.mxu0 %v6184_v44 }
0x1a27   :  { %6187 = vmatpush3.bf16.msra.mxu0 %v6184_v44 }
0x1aae   :  { %v3910_v34 = vpop.xlane.xlu1 %3909 }
0x1aaf   :  { %v3912_v61 = vmul.f32 0.03125, %v3910_v34  ;;  %v3907_v8 = vpop.xlane.xlu0 %3906 }
0x1ab0   :  { %v3911_v40 = vmul.f32 0.03125, %v3907_v8 }
0x1ab1   :  { %v3914_v31 = vsub.f32 %v3904_v45, %v3912_v61  ;;  %v6200_v45 = vpack.c.bf16 %v5148_v55, %v5147_v1  ;;  %v5153_v55 = vld [vmem:[%s8552_s4 + $0x70] sm:$0xff] }
0x1ab2   :  { %v3913_v43 = vsub.f32 %v3903_v29, %v3911_v40  ;;  %v3951_v29 = vrot.slane %v8098_v32, %v8571_v50 }
0x1ab3   :  { %v3916_v3 = vmul.f32 %v3914_v31, %v3914_v31  ;;  %6201 = vmatprep.subr.bf16.mxu1 %v6200_v45 }
0x1ab4   :  { %v3915_v48 = vmul.f32 %v3913_v43, %v3913_v43  ;;  %6203 = vmatpush3.bf16.msra.mxu1 %v6200_v45  ;;  %v5154_v45 = vld [vmem:[%s8552_s4 + $0x78] sm:$0xff] }
0x1ab5   :  { %v3920_v28 = vsel %vm77_vm0, %v3916_v3, 0.0 }
0x1ab6   :  { %v3917_v11 = vsel %vm77_vm0, %v3915_v48, 0.0 }
0x1ab7   :  { %3918 = vadd.xlane.f32.xlu0 %v3917_v11 }
0x1abb   :  { %3921 = vadd.xlane.f32.xlu0 %v3920_v28 }
0x1b44   :  { %v3919_v47 = vpop.xlane.xlu0 %3918 }
0x1b45   :  { %v3923_v60 = vmul.f32 0.03125, %v3919_v47 }
0x1b47   :  { %v3925_v23 = vadd.f32 1e-12, %v3923_v60 }
0x1b48   :  { %v3922_v15 = vpop.xlane.xlu0 %3921 }
0x1b49   :  { %6598 = vrsqrt.f32 %v3925_v23  ;;  %v3924_v22 = vmul.f32 0.03125, %v3922_v15  ;;  %v8391_v15 = vld [vmem:[%s8554_s8 + $0x18] sm:$0xff] }
0x1b4b   :  { %v3926_v7 = vadd.f32 1e-12, %v3924_v22  ;;  %v4063_v22 = vrot.slane %v8391_v15, %v6783_v19 }
0x1b4d   :  { %6600 = vrsqrt.f32 %v3926_v7 }
0x1b53   :  { %v6599_v2 = vpop.eup %6598 }
0x1b54   :  { %v3929_v14 = vmul.f32 %v6599_v2, %v3913_v43 }
0x1b56   :  { %v3935_v6 = vmul.f32 %v3934_v0, %v3929_v14 }
0x1b57   :  { %v6601_v59 = vpop.eup %6600 }
0x1b58   :  { %v3930_v38 = vmul.f32 %v6601_v59, %v3914_v31  ;;  %v3941_v51 = vadd.f32 %v3940_v18, %v3935_v6 }
0x1b5a   :  { %v3936_v4 = vmul.f32 %v3934_v0, %v3930_v38  ;;  %5884 = vmatprep.mubr.msk.f32.mxu0 %vm77_vm0, %v3941_v51 }
0x1b5c   :  { %v3942_v54 = vadd.f32 %v3940_v18, %v3936_v4 }
0x1b5e   :  { %5885 = vmatmul.mubr.msk.f32.vlgmr.msra.gmra.mrb[64].mxu0 %vm77_vm0, %v3942_v54 }
0x1c31   :  { %v5886_v26 = vpop.f32.mrb[64].mxu0 }
0x1c32   :  { %v4030_v36 = vadd.f32 %v5886_v26, %v3951_v29  ;;  %v4024_v34 = vpop.f32.mrb[65].mxu0  ;;  %v4280_v26 = vrot.slane %v8391_v15, %v7319_v62 }
0x1c33   :  { %v4025_v61 = vadd.f32 %v4024_v34, %v3951_v29  ;;  %v6208_v29 = vpack.c.bf16 %v5154_v45, %v5153_v55 }
0x1c34   :  { %v4036_v8 = vmul.f32 0.044715, %v4030_v36  ;;  %v4034_v47 = vmul.f32 0.5, %v4030_v36 }
0x1c35   :  { %v4035_v40 = vmul.f32 0.044715, %v4025_v61  ;;  %v4033_v32 = vmul.f32 0.5, %v4025_v61 }
0x1c36   :  { %v4038_v31 = vmul.f32 %v4036_v8, %v4030_v36 }
0x1c37   :  { %v4037_v43 = vmul.f32 %v4035_v40, %v4025_v61 }
0x1c38   :  { %v4040_v48 = vmul.f32 %v4038_v31, %v4030_v36 }
0x1c39   :  { %v4039_v11 = vmul.f32 %v4037_v43, %v4025_v61  ;;  %v4176_v43 = vrot.slane %v8391_v15, %v6744_v9 }
0x1c3a   :  { %v4042_v3 = vadd.f32 %v4040_v48, %v4030_v36 }
0x1c3b   :  { %v4041_v28 = vadd.f32 %v4039_v11, %v4025_v61 }
0x1c3c   :  { %v4044_v58 = vmul.f32 0.7978846, %v4042_v3  ;;  %v4182_v3 = vrot.slane %v8391_v15, %v8571_v50 }
0x1c3d   :  { %v4043_v42 = vmul.f32 0.7978846, %v4041_v28 }
0x1c3e   :  { %6602 = vtanh.f32 %v4044_v58 }
0x1c3f   :  { %6604 = vtanh.f32 %v4043_v42 }
0x1c48   :  { %v6603_v25 = vpop.eup %6602 }
0x1c49   :  { %v6605_v35 = vpop.eup %6604  ;;  %v4048_v39 = vadd.f32 1.0, %v6603_v25 }
0x1c4a   :  { %v4047_v44 = vadd.f32 1.0, %v6605_v35 }
0x1c4b   :  { %v4050_v23 = vmul.f32 %v4048_v39, %v4034_v47 }
0x1c4c   :  { %v4049_v60 = vmul.f32 %v4047_v44, %v4033_v32  ;;  %v4274_v32 = vrot.slane %v8391_v15, %v7225_v12 }
0x1c4e   :  { %5903 = vmatprep.mubr.msk.f32.mxu1 %vm516_vm3, %v4049_v60 }
0x1c4f   :  { %5904 = vmatmul.mubr.msk.f32.vlgmr.msra.gmra.mrb[78].mxu1 %vm516_vm3, %v4050_v23 }
0x1d22   :  { %v5905_v7 = vpop.f32.mrb[78].mxu1 }
0x1d23   :  { %v4136_v0 = vpop.f32.mrb[79].mxu1  ;;  %v4142_v2 = vadd.f32 %v5905_v7, %v4063_v22 }
0x1d24   :  { %v4137_v14 = vadd.f32 %v4136_v0, %v4063_v22 }
0x1d25   :  { %v4146_v6 = vadd.f32 %v4142_v2, %v3942_v54  ;;  %v5151_v54 = vld [vmem:[%s8552_s4 + $0x60] sm:$0xff] }
0x1d26   :  { %v4145_v18 = vadd.f32 %v4137_v14, %v3941_v51  ;;  %v6204_v1 = vpack.c.bf16 %v5152_v37, %v5151_v54 }
0x1d27   :  { %v4150_v38 = vsel %vm77_vm0, %v4146_v6, 0.0 }
0x1d28   :  { %v4147_v59 = vsel %vm77_vm0, %v4145_v18, 0.0  ;;  %6205 = vmatprep.subr.bf16.mxu0 %v6204_v1 }
0x1d29   :  { %4148 = vadd.xlane.f32.xlu0 %v4147_v59  ;;  %6207 = vmatpush3.bf16.msra.mxu0 %v6204_v1 }
0x1d2a   :  { %6209 = vmatprep.subr.bf16.mxu0 %v6208_v29 }
0x1d2d   :  { %4151 = vadd.xlane.f32.xlu0 %v4150_v38  ;;  %6211 = vmatpush3.bf16.msra.mxu0 %v6208_v29 }
0x1db6   :  { %v4149_v4 = vpop.xlane.xlu0 %4148 }
0x1db7   :  { %v4153_v52 = vmul.f32 0.03125, %v4149_v4 }
0x1db9   :  { %v4155_v16 = vsub.f32 %v4145_v18, %v4153_v52 }
0x1dba   :  { %v4152_v17 = vpop.xlane.xlu0 %4151 }
0x1dbb   :  { %v4154_v13 = vmul.f32 0.03125, %v4152_v17  ;;  %v4157_v49 = vmul.f32 %v4155_v16, %v4155_v16 }
0x1dbd   :  { %v4156_v46 = vsub.f32 %v4146_v6, %v4154_v13  ;;  %v4159_v5 = vsel %vm77_vm0, %v4157_v49, 0.0 }
0x1dbe   :  { %4160 = vadd.xlane.f32.xlu0 %v4159_v5 }
0x1dbf   :  { %v4158_v57 = vmul.f32 %v4156_v46, %v4156_v46 }
0x1dc1   :  { %v4162_v51 = vsel %vm77_vm0, %v4158_v57, 0.0 }
0x1dc2   :  { %4163 = vadd.xlane.f32.xlu0 %v4162_v51 }
0x1dd8   :  { %4282 = vrot.lane.b32.xlu0 %v4280_v26, %s6666_s25 }
0x1e4b   :  { %v4161_v36 = vpop.xlane.xlu0 %4160 }
0x1e4c   :  { %v4165_v34 = vmul.f32 0.03125, %v4161_v36 }
0x1e4e   :  { %v4167_v61 = vadd.f32 1e-12, %v4165_v34 }
0x1e4f   :  { %v4164_v8 = vpop.xlane.xlu0 %4163 }
0x1e50   :  { %6606 = vrsqrt.f32 %v4167_v61  ;;  %v4166_v40 = vmul.f32 0.03125, %v4164_v8 }
0x1e52   :  { %v4168_v31 = vadd.f32 1e-12, %v4166_v40 }
0x1e53   :  { %v4283_v44 = vpop.permute.xlu0 %4282 }
0x1e54   :  { %6608 = vrsqrt.f32 %v4168_v31 }
0x1e5a   :  { %v6607_v48 = vpop.eup %6606 }
0x1e5b   :  { %v4171_v11 = vmul.f32 %v6607_v48, %v4155_v16 }
0x1e5d   :  { %v4177_v28 = vmul.f32 %v4176_v43, %v4171_v11 }
0x1e5e   :  { %v6609_v58 = vpop.eup %6608 }
0x1e5f   :  { %v4172_v42 = vmul.f32 %v6609_v58, %v4156_v46  ;;  %v8418_v25 = vadd.f32 %v4182_v3, %v4177_v28 }
0x1e61   :  { %v4178_v35 = vmul.f32 %v4176_v43, %v4172_v42  ;;  %5914 = vmatprep.mubr.msk.f32.mxu0 %vm77_vm0, %v8418_v25 }
0x1e63   :  { %v8422_v39 = vadd.f32 %v4182_v3, %v4178_v35 }
0x1e65   :  { %5915 = vmatmul.mubr.msk.f32.vlgmr.msra.gmra.mrb[66].mxu0 %vm77_vm0, %v8422_v39 }
0x1f38   :  { %v5916_v47 = vpop.f32.mrb[66].mxu0 }
0x1f39   :  { %v4276_v60 = vadd.f32 %v5916_v47, %v4274_v32  ;;  %v4286_v23 = vadd.f32 %v5916_v47, %v4283_v44  ;;  %v4262_v22 = vpop.f32.mrb[67].mxu0 }
0x1f3a   :  { %v4275_v7 = vadd.f32 %v4274_v32, %v4262_v22  ;;  %v4285_v0 = vadd.f32 %v4283_v44, %v4262_v22 }
0x1f3b   :  { %v4298_v52 = vmul.f32 %v6799_v30, %v4276_v60  ;;  %v4300_v17 = vmul.f32 %v4276_v60, %v6879_v20 }
0x1f3c   :  { %v4297_v2 = vmul.f32 %v6799_v30, %v4275_v7  ;;  %v6348_v14 = vpack.i.bf16 %v4286_v23, %v4285_v0  ;;  %v4299_v16 = vmul.f32 %v4275_v7, %v6879_v20 }
0x1f3d   :  { %v4302_v13 = vmul.f32 0.25, %v4298_v52  ;;  %v4304_v46 = vmul.f32 0.25, %v4300_v17 }
0x1f3e   :  { %v4301_v18 = vmul.f32 0.25, %v4297_v2  ;;  %6349 = vrot.lane.b32.xlu1 %v6348_v14, %s6668_s20  ;;  %v4303_v49 = vmul.f32 0.25, %v4299_v16 }
0x1f40   :  { %5921 = vmatprep.mubr.msk.f32.mxu0 %vm77_vm0, %v4301_v18 }
0x1fb0   :  { %v6350_v6 = vpop.permute.xlu1 %6349 }
0x1fb1   :  { %v6352_v59 = vunpack.i.h.bf16 %v6350_v6  ;;  %v6351_v38 = vunpack.i.l.bf16 %v6350_v6 }
0x1fb3   :  { %v6212_v4 = vpack.c.bf16 %v6352_v59, %v6351_v38 }
0x1fb5   :  { %6214 = vmatprep.subr.msk.bf16.mxu0 %vm6846_vm2, %v6212_v4 }
0x1fb6   :  { %6217 = vmatpush3.bf16.xpose.msk.msra.mxu0 %vm6846_vm2, %v6212_v4 }
0x1fbd   :  { %5922 = vmatmul.mubr.msk.f32.vlgmr.msra.gmra.mrb[68].mxu0 %vm77_vm0, %v4302_v13 }
0x1fbe   :  { %5924 = vmatprep.mubr.msk.f32.mxu0 %vm77_vm0, %v4303_v49 }
0x1fc1   :  { %5925 = vmatmul.mubr.msk.f32.gmra.mrb[70].mxu0 %vm77_vm0, %v4304_v46 }
0x2090   :  { %v5923_v5 = vpop.f32.mrb[68].mxu0 }
0x2091   :  { %v4399_v57 = vadd.f32 %v5923_v5, %v8278_v41  ;;  %v4393_v27 = vpop.f32.mrb[69].mxu0 }
0x2092   :  { %v4394_v51 = vadd.f32 %v4393_v27, %v8283_v24  ;;  %v4290_v24 = vrot.slane %v8391_v15, %v7322_v56 }
0x2093   :  { %v4415_v54 = vsel %vm3657_vm5, %v4399_v57, -inf }
0x2094   :  { %4416 = vmax.xlane.f32.xlu1 %v4415_v54  ;;  %v5926_v37 = vpop.f32.mrb[70].mxu0  ;;  %v4412_v1 = vsel %vm3657_vm5, %v4394_v51, -inf  ;;  %v5168_v54 = vld [vmem:[%s8556_s5 + $0x68] sm:$0xff] }
0x2095   :  { %v4403_v55 = vpop.f32.mrb[71].mxu0  ;;  %4413 = vmax.xlane.f32.xlu0 %v4412_v1  ;;  %v4409_v29 = vadd.f32 %v5926_v37, %v8290_v33  ;;  %v5169_v1 = vld [vmem:[%s8556_s5 + $0x70] sm:$0xff] }
0x2096   :  { %v4404_v45 = vadd.f32 %v4403_v55, %v8296_v10  ;;  %v5170_v55 = vld [vmem:[%s8556_s5 + $0x78] sm:$0xff] }
0x2097   :  { %v4421_v41 = vsel %vm3657_vm5, %v4409_v29, -inf }
0x2098   :  { %v4418_v26 = vsel %vm3657_vm5, %v4404_v45, -inf }
0x2099   :  { %4419 = vmax.xlane.f32.xlu0 %v4418_v26 }
0x209d   :  { %4422 = vmax.xlane.f32.xlu0 %v4421_v41 }
0x20b3   :  { %4292 = vrot.lane.b32.xlu0 %v4290_v24, %s6669_s12 }
0x2121   :  { %v4417_v36 = vpop.xlane.xlu1 %4416 }
0x2122   :  { %v4425_v34 = vsub.f32 %v4399_v57, %v4417_v36  ;;  %v4414_v61 = vpop.xlane.xlu0 %4413 }
0x2123   :  { %v4424_v8 = vsub.f32 %v4394_v51, %v4414_v61  ;;  %v5167_v51 = vld [vmem:[%s8556_s5 + $0x60] sm:$0xff] }
0x2124   :  { %v4430_v40 = vmul.f32 1.442695, %v4425_v34  ;;  %v6222_v37 = vpack.c.bf16 %v5168_v54, %v5167_v51 }
0x2125   :  { %v4428_v31 = vmul.f32 1.442695, %v4424_v8 }
0x2126   :  { %6610 = vpow2.f32 %v4430_v40  ;;  %v4420_v10 = vpop.xlane.xlu0 %4419  ;;  %6223 = vmatprep.subr.bf16.mxu0 %v6222_v37 }
0x2127   :  { %6612 = vpow2.f32 %v4428_v31  ;;  %v4426_v33 = vsub.f32 %v4404_v45, %v4420_v10  ;;  %6225 = vmatpush3.bf16.msra.mxu0 %v6222_v37  ;;  %v6226_v45 = vpack.c.bf16 %v5170_v55, %v5169_v1  ;;  %v4575_v10 = vrot.slane %v8391_v15, %v7435_v63  ;;  %v5179_v37 = vld [vmem:[%s8558_s7 + $0xc0] sm:$0xff] }
0x2128   :  { %v5183_v55 = vld [vmem:[%s8558_s7 + $0xe0] sm:$0xff] }
0x2129   :  { %v4432_v11 = vmul.f32 1.442695, %v4426_v33  ;;  %6227 = vmatprep.subr.bf16.mxu0 %v6226_v45 }
0x212a   :  { %v4423_v43 = vpop.xlane.xlu0 %4422 }
0x212b   :  { %v4427_v48 = vsub.f32 %v4409_v29, %v4423_v43  ;;  %6229 = vmatpush3.bf16.msra.mxu0 %v6226_v45  ;;  %v5184_v45 = vld [vmem:[%s8558_s7 + $0xe8] sm:$0xff] }
0x212d   :  { %v4434_v3 = vmul.f32 1.442695, %v4427_v48 }
0x212e   :  { %v4293_v28 = vpop.permute.xlu0 %4292 }
0x212f   :  { %6614 = vpow2.f32 %v4434_v3  ;;  %v4295_v58 = vadd.f32 %v4293_v28, %v4262_v22  ;;  %v4296_v42 = vadd.f32 %v5916_v47, %v4293_v28 }
0x2130   :  { %v6611_v35 = vpop.eup %6610  ;;  %6616 = vpow2.f32 %v4432_v11 }
0x2131   :  { %v6353_v32 = vpack.i.bf16 %v4296_v42, %v4295_v58  ;;  %v4439_v44 = vsel %vm3657_vm5, %v6611_v35, 0.0  ;;  %v6613_v60 = vpop.eup %6612 }
0x2132   :  { %4440 = vadd.xlane.f32.xlu1 %v4439_v44  ;;  %v4436_v23 = vsel %vm3657_vm5, %v6613_v60, 0.0 }
0x2136   :  { %4437 = vadd.xlane.f32.xlu1 %v4436_v23 }
0x2139   :  { %v6615_v7 = vpop.eup %6614 }
0x213a   :  { %v4445_v0 = vsel %vm3657_vm5, %v6615_v7, 0.0  ;;  %v6617_v2 = vpop.eup %6616 }
0x213b   :  { %4446 = vadd.xlane.f32.xlu1 %v4445_v0  ;;  %v4442_v14 = vsel %vm3657_vm5, %v6617_v2, 0.0  ;;  %v5174_v0 = vld [vmem:[%s8557_s6 + $0x68] sm:$0xff] }
0x213f   :  { %4443 = vadd.xlane.f32.xlu1 %v4442_v14  ;;  %v5175_v14 = vld [vmem:[%s8557_s6 + $0x70] sm:$0xff] }
0x2150   :  { %6354 = vrot.lane.b32.xlu1 %v6353_v32, %s6669_s12 }
0x21bf   :  { %v4441_v47 = vpop.xlane.xlu1 %4440 }
0x21c3   :  { %v4438_v22 = vpop.xlane.xlu1 %4437 }
0x21c4   :  { %6618 = vrcp.f32 %v4438_v22 }
0x21c5   :  { %6620 = vrcp.f32 %v4441_v47  ;;  %v5176_v47 = vld [vmem:[%s8557_s6 + $0x78] sm:$0xff] }
0x21c6   :  { %v6234_v22 = vpack.c.bf16 %v5176_v47, %v5175_v14 }
0x21c8   :  { %v4447_v18 = vpop.xlane.xlu1 %4446 }
0x21cc   :  { %v4444_v6 = vpop.xlane.xlu1 %4443 }
0x21cd   :  { %6622 = vrcp.f32 %v4444_v6 }
0x21ce   :  { %v6619_v59 = vpop.eup %6618  ;;  %6624 = vrcp.f32 %v4447_v18 }
0x21cf   :  { %v4452_v38 = vmul.f32 %v6619_v59, %v6613_v60  ;;  %v6621_v13 = vpop.eup %6620 }
0x21d0   :  { %v6355_v4 = vpop.permute.xlu1 %6354  ;;  %v4453_v46 = vmul.f32 %v6621_v13, %v6611_v35 }
0x21d1   :  { %v6357_v52 = vunpack.i.h.bf16 %v6355_v4  ;;  %v6356_v16 = vunpack.i.l.bf16 %v6355_v4  ;;  %5931 = vmatprep.mubr.msk.f32.mxu1 %vm3657_vm5, %v4452_v38 }
0x21d3   :  { %v6218_v17 = vpack.c.bf16 %v6357_v52, %v6356_v16  ;;  %v4688_v16 = vrot.slane %v8391_v15, %v7516_v21  ;;  %v5180_v21 = vld [vmem:[%s8558_s7 + $0xc8] sm:$0xff]  ;;  %v5182_v15 = vld [vmem:[%s8558_s7 + $0xd8] sm:$0xff] }
0x21d5   :  { %6219 = vmatprep.subr.bf16.mxu1 %v6218_v17 }
0x21d6   :  { %6221 = vmatpush3.bf16.msra.mxu1 %v6218_v17 }
0x21d7   :  { %v6623_v49 = vpop.eup %6622 }
0x21d8   :  { %v6625_v5 = vpop.eup %6624  ;;  %v4454_v57 = vmul.f32 %v6623_v49, %v6617_v2  ;;  %v4694_v49 = vrot.slane %v8242_v53, %v6783_v19  ;;  %v5181_v19 = vld [vmem:[%s8558_s7 + $0xd0] sm:$0xff]  ;;  %v6238_v53 = vpack.c.bf16 %v5180_v21, %v5179_v37 }
0x21d9   :  { %5932 = vmatmul.mubr.msk.f32.vlgmr.msra.gmra.mrb[80].mxu1 %vm3657_vm5, %v4453_v46  ;;  %v4455_v27 = vmul.f32 %v6625_v5, %v6615_v7  ;;  %v6242_v1 = vpack.c.bf16 %v5182_v15, %v5181_v19 }
0x21da   :  { %5934 = vmatprep.mubr.msk.f32.mxu1 %vm3657_vm5, %v4454_v57  ;;  %6239 = vmatprep.subr.bf16.mxu0 %v6238_v53 }
0x21dd   :  { %5935 = vmatmul.mubr.msk.f32.gmra.mrb[82].mxu1 %vm3657_vm5, %v4455_v27 }
0x22ac   :  { %v5933_v29 = vpop.f32.mrb[80].mxu1 }
0x22ad   :  { %v4542_v26 = vpop.f32.mrb[81].mxu1  ;;  %v4562_v24 = vmul.f32 %v5933_v29, %v6799_v30  ;;  %v6246_v29 = vpack.c.bf16 %v5184_v45, %v5183_v55 }
0x22ae   :  { %v4561_v61 = vmul.f32 %v6799_v30, %v4542_v26  ;;  %v5185_v26 = vld [vmem:[%s8558_s7 + $0xf0] sm:$0xff] }
0x22b0   :  { %v5936_v41 = vpop.f32.mrb[82].mxu1 }
0x22b1   :  { %v4564_v36 = vmul.f32 %v5936_v41, %v6879_v20  ;;  %v4552_v34 = vpop.f32.mrb[83].mxu1  ;;  %v5186_v41 = vld [vmem:[%s8558_s7 + $0xf8] sm:$0xff] }
0x22b2   :  { %v4563_v8 = vmul.f32 %v4552_v34, %v6879_v20 }
0x22b3   :  { %v4566_v40 = vadd.f32 %v4564_v36, %v4562_v24  ;;  %v6250_v24 = vpack.c.bf16 %v5186_v41, %v5185_v26  ;;  %v6663_v36 = vld [vmem:[%s8559_s9] sm:$0xf] }
0x22b4   :  { %v4565_v31 = vadd.f32 %v4563_v8, %v4561_v61  ;;  %v4705_v34 = vrot.slane %v6663_v36, %v7225_v12 }
0x22b6   :  { %5945 = vmatprep.mubr.msk.f32.mxu0 %vm77_vm0, %v4565_v31 }
0x22b7   :  { %5946 = vmatmul.mubr.msk.f32.vlgmr.msra.gmra.mrb[72].mxu0 %vm77_vm0, %v4566_v40 }
0x22b8   :  { %6241 = vmatpush3.bf16.msra.mxu0 %v6238_v53 }
0x22b9   :  { %6243 = vmatprep.subr.bf16.mxu0 %v6242_v1 }
0x22bc   :  { %6245 = vmatpush3.bf16.msra.mxu0 %v6242_v1 }
0x22bd   :  { %6247 = vmatprep.subr.bf16.mxu0 %v6246_v29 }
0x22c0   :  { %6249 = vmatpush3.bf16.msra.mxu0 %v6246_v29 }
0x22c1   :  { %6251 = vmatprep.subr.bf16.mxu0 %v6250_v24 }
0x22c4   :  { %6253 = vmatpush3.bf16.msra.mxu0 %v6250_v24 }
0x238a   :  { %v5947_v33 = vpop.f32.mrb[72].mxu0 }
0x238b   :  { %v4654_v43 = vadd.f32 %v5947_v33, %v4575_v10  ;;  %v4648_v48 = vpop.f32.mrb[73].mxu0 }
0x238c   :  { %v4649_v11 = vadd.f32 %v4648_v48, %v4575_v10 }
0x238d   :  { %v4658_v3 = vadd.f32 %v4654_v43, %v8422_v39 }
0x238e   :  { %v4657_v28 = vadd.f32 %v4649_v11, %v8418_v25  ;;  %v5173_v25 = vld [vmem:[%s8557_s6 + $0x60] sm:$0xff] }
0x238f   :  { %v4662_v30 = vsel %vm77_vm0, %v4658_v3, 0.0  ;;  %v6230_v2 = vpack.c.bf16 %v5174_v0, %v5173_v25 }
0x2390   :  { %4663 = vadd.xlane.f32.xlu1 %v4662_v30  ;;  %v4659_v20 = vsel %vm77_vm0, %v4657_v28, 0.0 }
0x2391   :  { %4660 = vadd.xlane.f32.xlu0 %v4659_v20  ;;  %6231 = vmatprep.subr.bf16.mxu1 %v6230_v2 }
0x2392   :  { %6233 = vmatpush3.bf16.msra.mxu1 %v6230_v2 }
0x2393   :  { %6235 = vmatprep.subr.bf16.mxu1 %v6234_v22 }
0x2396   :  { %6237 = vmatpush3.bf16.msra.mxu1 %v6234_v22 }
0x241d   :  { %v4664_v58 = vpop.xlane.xlu1 %4663 }
0x241e   :  { %v4666_v42 = vmul.f32 0.03125, %v4664_v58  ;;  %v4661_v35 = vpop.xlane.xlu0 %4660 }
0x241f   :  { %v4665_v32 = vmul.f32 0.03125, %v4661_v35 }
0x2420   :  { %v4668_v44 = vsub.f32 %v4658_v3, %v4666_v42 }
0x2421   :  { %v4667_v63 = vsub.f32 %v4657_v28, %v4665_v32 }
0x2422   :  { %v4670_v7 = vmul.f32 %v4668_v44, %v4668_v44 }
0x2423   :  { %v4669_v60 = vmul.f32 %v4667_v63, %v4667_v63 }
0x2424   :  { %v4674_v39 = vsel %vm77_vm0, %v4670_v7, 0.0 }
0x2425   :  { %v4671_v23 = vsel %vm77_vm0, %v4669_v60, 0.0 }
0x2426   :  { %4672 = vadd.xlane.f32.xlu0 %v4671_v23 }
0x242a   :  { %4675 = vadd.xlane.f32.xlu0 %v4674_v39  ;;  %v6664_v39 = vld [vmem:[%s8554_s8 + $0x20] sm:$0xff] }
0x242b   :  { %v4817_v25 = vrot.slane %v6664_v39, %v6744_v9  ;;  %v4915_v9 = vrot.slane %v6664_v39, %v8571_v50 }
0x24b3   :  { %v4673_v18 = vpop.xlane.xlu0 %4672 }
0x24b4   :  { %v4677_v6 = vmul.f32 0.03125, %v4673_v18 }
0x24b6   :  { %v4679_v59 = vadd.f32 1e-12, %v4677_v6 }
0x24b7   :  { %v4676_v38 = vpop.xlane.xlu0 %4675 }
0x24b8   :  { %6626 = vrsqrt.f32 %v4679_v59  ;;  %v4678_v4 = vmul.f32 0.03125, %v4676_v38 }
0x24ba   :  { %v4680_v52 = vadd.f32 1e-12, %v4678_v4 }
0x24bc   :  { %6628 = vrsqrt.f32 %v4680_v52 }
0x24c2   :  { %v6627_v17 = vpop.eup %6626 }
0x24c3   :  { %v4683_v13 = vmul.f32 %v6627_v17, %v4667_v63 }
0x24c5   :  { %v4689_v46 = vmul.f32 %v4688_v16, %v4683_v13 }
0x24c6   :  { %v6629_v5 = vpop.eup %6628 }
0x24c7   :  { %v4684_v57 = vmul.f32 %v6629_v5, %v4668_v44  ;;  %v4695_v27 = vadd.f32 %v4694_v49, %v4689_v46  ;;  %v4920_v46 = vrot.slane %v6664_v39, %v7225_v12 }
0x24c9   :  { %v4690_v51 = vmul.f32 %v4688_v16, %v4684_v57  ;;  %5956 = vmatprep.mubr.msk.f32.mxu1 %vm77_vm0, %v4695_v27  ;;  %v6665_v57 = vld [vmem:[%s8554_s8 + $0x30] sm:$0x3f] }
0x24ca   :  { %v4933_v21 = vrot.slane %v6665_v57, %v7322_v56 }
0x24cb   :  { %v4696_v54 = vadd.f32 %v4694_v49, %v4690_v51 }
0x24cd   :  { %5957 = vmatmul.mubr.msk.f32.vlgmr.msra.gmra.mrb[84].mxu1 %vm77_vm0, %v4696_v54 }
0x25a0   :  { %v5958_v61 = vpop.f32.mrb[84].mxu1 }
0x25a1   :  { %v4784_v8 = vadd.f32 %v5958_v61, %v4705_v34  ;;  %v4778_v40 = vpop.f32.mrb[85].mxu1 }
0x25a2   :  { %v4779_v31 = vadd.f32 %v4778_v40, %v4705_v34 }
0x25a3   :  { %v4790_v10 = vmul.f32 0.044715, %v4784_v8  ;;  %v4788_v60 = vmul.f32 0.5, %v4784_v8 }
0x25a4   :  { %v4789_v33 = vmul.f32 0.044715, %v4779_v31  ;;  %v4787_v44 = vmul.f32 0.5, %v4779_v31 }
0x25a5   :  { %v4792_v43 = vmul.f32 %v4790_v10, %v4784_v8 }
0x25a6   :  { %v4791_v48 = vmul.f32 %v4789_v33, %v4779_v31 }
0x25a7   :  { %v4794_v11 = vmul.f32 %v4792_v43, %v4784_v8 }
0x25a8   :  { %v4793_v3 = vmul.f32 %v4791_v48, %v4779_v31 }
0x25a9   :  { %v4796_v28 = vadd.f32 %v4794_v11, %v4784_v8 }
0x25aa   :  { %v4795_v30 = vadd.f32 %v4793_v3, %v4779_v31 }
0x25ab   :  { %v4798_v20 = vmul.f32 0.7978846, %v4796_v28 }
0x25ac   :  { %v4797_v58 = vmul.f32 0.7978846, %v4795_v30 }
0x25ad   :  { %6630 = vtanh.f32 %v4798_v20 }
0x25ae   :  { %6632 = vtanh.f32 %v4797_v58 }
0x25b7   :  { %v6631_v42 = vpop.eup %6630 }
0x25b8   :  { %v6633_v35 = vpop.eup %6632  ;;  %v4802_v32 = vadd.f32 1.0, %v6631_v42 }
0x25b9   :  { %v4801_v63 = vadd.f32 1.0, %v6633_v35 }
0x25ba   :  { %v4804_v7 = vmul.f32 %v4802_v32, %v4788_v60 }
0x25bb   :  { %v4803_v23 = vmul.f32 %v4801_v63, %v4787_v44 }
0x25bd   :  { %5975 = vmatprep.mubr.msk.f32.mxu0 %vm516_vm3, %v4803_v23 }
0x25be   :  { %5976 = vmatmul.mubr.msk.f32.vlgmr.msra.gmra.mrb[74].mxu0 %vm516_vm3, %v4804_v7 }
0x2691   :  { %v5977_v0 = vpop.f32.mrb[74].mxu0 }
0x2692   :  { %v4890_v2 = vpop.f32.mrb[75].mxu0 }
0x2693   :  { %v4891_v14 = vadd.f32 %v4890_v2, %v4817_v25 }
0x2695   :  { %v4898_v47 = vadd.f32 %v4891_v14, %v4695_v27  ;;  %v4925_v27 = vrot.slane %v6665_v57, %v7319_v62 }
0x2697   :  { %v4899_v22 = vsel %vm77_vm0, %v4898_v47, 0.0 }
0x2698   :  { %4900 = vadd.xlane.f32.xlu0 %v4899_v22 }
0x2725   :  { %v4901_v18 = vpop.xlane.xlu0 %4900 }
0x2726   :  { %v4902_v6 = vmul.f32 0.03125, %v4901_v18 }
0x2728   :  { %v4903_v59 = vsub.f32 %v4898_v47, %v4902_v6 }
0x272a   :  { %v4904_v38 = vmul.f32 %v4903_v59, %v4903_v59 }
0x272c   :  { %v4905_v4 = vsel %vm77_vm0, %v4904_v38, 0.0 }
0x272d   :  { %4906 = vadd.xlane.f32.xlu0 %v4905_v4 }
0x27ba   :  { %v4907_v52 = vpop.xlane.xlu0 %4906 }
0x27bb   :  { %v4908_v16 = vmul.f32 0.03125, %v4907_v52 }
0x27bd   :  { %v4909_v17 = vadd.f32 1e-12, %v4908_v16 }
0x27bf   :  { %6634 = vrsqrt.f32 %v4909_v17 }
0x27c9   :  { %v6635_v13 = vpop.eup %6634 }
0x27ca   :  { %v4911_v49 = vmul.f32 %v6635_v13, %v4903_v59 }
0x27cc   :  { %v4916_v5 = vmul.f32 %v4915_v9, %v4911_v49 }
0x27ce   :  { %v4921_v51 = vadd.f32 %v4920_v46, %v4916_v5 }
0x27d0   :  { %v4926_v54 = vmul.f32 %v4925_v27, %v4921_v51 }
0x27d2   :  { %v4927_v37 = vsel %vm77_vm0, %v4926_v54, 0.0 }
0x27d3   :  { %4928 = vadd.xlane.f32.xlu0 %v4927_v37 }
0x2860   :  { %v4929_v19 = vpop.xlane.xlu0 %4928 }
0x2861   :  { %v4934_v50 = vadd.f32 %v4933_v21, %v4929_v19 }
0x2863   :  { %v4936_v53 = vrot.slane %v4934_v50, 4 }
0x2865   :  { %v4939_v12 = vsel %vm4938_vm6, %v4934_v50, %v4936_v53 }
0x2866   :  { %4941 = vst.msk [vmem:[%s8562_s10] sm:$0x3] %vm4940_vm7, %v4939_v12 }

</bundles_post_ra>
